<compile_context>
chip_gen: v5e
topology: v5e:2x2
jax: 0.10.0
libtpu: 0.0.40
codegen_flags: <defaults>
</compile_context>

<pallas_src>
import math

import numpy as np

import jax
import jax.numpy as jnp
from jax import lax
from jax.experimental import pallas as pl
from jax.experimental.pallas import tpu as pltpu


# ------------------------- configuration (== args) --------------------------
class Args:
    fm = 32               # miRNA feature dim
    fd = 16               # disease feature dim
    miRNA_number = 24
    disease_number = 16
    out_channels = 8
    gcn_layers = 2
    view = 2


MV = 1                    # multi-view index (1..9 supported)
_BN_EPS = 1e-5
_BN_SCALE = 1.0 / math.sqrt(1.0 + _BN_EPS)   # BatchNorm2d(1) eval, default stats


def _xm_channel_sel(mv):
    # channel indices into (f1, f2, g1, g2) GCN outputs used by the miRNA branch
    return {1: (0, 1), 2: (0, 1), 3: (0, 1),
            4: (2, 3), 5: (2, 3), 6: (2, 3),
            7: (0, 1, 2, 3), 8: (0, 1, 2, 3), 9: (0, 1, 2, 3)}[mv]


def _yd_channel_sel(mv):
    return {1: (0, 1), 2: (2, 3), 3: (0, 1, 2, 3),
            4: (0, 1), 5: (2, 3), 6: (0, 1, 2, 3),
            7: (0, 1), 8: (2, 3), 9: (0, 1, 2, 3)}[mv]


# --------------------- host-side parameter packing (once) --------------------
def _banded_spatial_weights(wsp, F):
    """(2, 49) 7x7 SpatialGate weights -> (14, F, F) banded conv matrices.

    wb[cc*7 + kw, f + kh - 3, f] = wsp[cc, kh*7 + kw]; out-of-range taps are
    simply absent, which implements the conv's zero padding along features."""
    w = np.asarray(wsp, np.float32)
    wb = np.zeros((14, F, F), np.float32)
    for cc in range(2):
        for kh in range(7):
            for kw in range(7):
                val = w[cc, kh * 7 + kw]
                for f in range(F):
                    fp = f + kh - 3
                    if 0 <= fp < F:
                        wb[cc * 7 + kw, fp, f] = val
    return jnp.asarray(wb)


def _row_pad_matrix(n):
    """(n+6, n) placement matrix realizing zero padding of 3 along rows."""
    return jnp.asarray(np.eye(n + 6, n, k=-3, dtype=np.float32))


def pack_params(params, args):
    """One-time host-side packing of canonical params into kernel operands."""
    px, py = params["cbam_x"], params["cbam_y"]

    def flat(a):
        return jnp.asarray(a, jnp.float32).reshape(-1)

    return {
        "wxg": params["wxg"], "bxg": params["bxg"],
        "wyg": params["wyg"], "byg": params["byg"],
        "prow_x": _row_pad_matrix(args.miRNA_number),
        "prow_y": _row_pad_matrix(args.disease_number),
        "wb_x": _banded_spatial_weights(px["wsp"], args.fm),
        "wb_y": _banded_spatial_weights(py["wsp"], args.fd),
        "wcnn_x": px["wcnn"], "bcnn_x": px["bcnn"],
        "wcnn_y": py["wcnn"], "bcnn_y": py["bcnn"],
        "w1x": flat(px["w1"]), "b1x": flat(px["b1"]),
        "w2x": flat(px["w2"]), "b2x": flat(px["b2"]),
        "w1y": flat(py["w1"]), "b1y": flat(py["b1"]),
        "w2y": flat(py["w2"]), "b2y": flat(py["b2"]),
    }


# --------------------------- fused Pallas forward ----------------------------
def make_forward(args, mv):
    Nm, Nd = args.miRNA_number, args.disease_number
    fm, fd, OUT = args.fm, args.fd, args.out_channels
    x_sel, y_sel = _xm_channel_sel(mv), _yd_channel_sel(mv)
    Cx, Cy = len(x_sel), len(y_sel)
    HIDx, HIDy = max(1, Cx // 5), max(1, Cy // 5)

    def _bf(v):
        return v.astype(jnp.bfloat16)

    def _mm(a, b):
        # bf16 MXU operands, f32 accumulation (elementwise math stays f32).
        return jnp.dot(_bf(a), _bf(b), preferred_element_type=jnp.float32)

    def _gcn2(x, a, w1, b1, w2, b2):
        """Two chained GCNConv + ReLU layers on a dense normalized adjacency."""
        h1 = jnp.maximum(_mm(a, _mm(x, w1)) + b1, 0.0)
        h2 = jnp.maximum(_mm(a, _mm(h1, w2)) + b2, 0.0)
        return h1, h2

    def _cbam_cnn(chans, C, HID, w1_ref, b1_ref, w2_ref, b2_ref,
                  prow_ref, wb_ref, wcnn_ref, bcnn_ref):
        """CBAM (channel gate + 7x7 spatial gate) followed by the Conv1d head.

        `chans` are the (N, F) GCN layer outputs (== the PyTorch (F, N) channel
        maps transposed); all math is written for that layout, no transposes."""
        N, F = chans[0].shape

        # ---- channel gate: global avg / max pooling + shared 2-layer MLP ----
        avg = [jnp.mean(c) for c in chans]           # C <= 4 scalar reductions
        mxp = [jnp.max(c) for c in chans]

        def mlp(p):                                  # tiny scalar SMEM math
            h = []
            for j in range(HID):
                acc = b1_ref[j]
                for c in range(C):
                    acc = acc + p[c] * w1_ref[c * HID + j]
                h.append(jnp.maximum(acc, 0.0))
            out = []
            for c in range(C):
                acc = b2_ref[c]
                for j in range(HID):
                    acc = acc + h[j] * w2_ref[j * C + c]
                out.append(acc)
            return out

        s_avg, s_max = mlp(avg), mlp(mxp)
        xg = [chans[c] * jax.nn.sigmoid(s_avg[c] + s_max[c]) for c in range(C)]

        # ---- spatial gate: 7x7 conv (padding=3) as banded MXU matmuls -------
        max_map, sum_map = xg[0], xg[0]
        for c in range(1, C):
            max_map = jnp.maximum(max_map, xg[c])
            sum_map = sum_map + xg[c]
        mean_map = sum_map * (1.0 / C)

        prow = prow_ref[...]                          # (N+6, N) precomputed
        pmax = _mm(prow, max_map)                     # (N+6, F), zero-padded rows
        pmean = _mm(prow, mean_map)                   # (N+6, F)
        conv = None
        for kw in range(7):                           # 7 sublane-shifted slabs
            term = (_mm(pmax[kw:kw + N, :], wb_ref[kw]) +
                    _mm(pmean[kw:kw + N, :], wb_ref[7 + kw]))
            conv = term if conv is None else conv + term
        # BatchNorm2d(1) in eval mode with default running stats / affine.
        sp_gate = jax.nn.sigmoid(conv * _BN_SCALE)    # (N, F)

        # ---- Conv1d(kernel=(F,1)) head: contract over (channel, feature) ----
        res = None
        for c in range(C):
            t = _mm(xg[c] * sp_gate, wcnn_ref[c])     # (N, OUT)
            res = t if res is None else res + t
        return res + bcnn_ref[...]                    # (N, OUT)

    def kernel(xm_ref, xd_ref, am_ref, ad_ref,
               wxg_ref, bxg_ref, wyg_ref, byg_ref,
               prowx_ref, prowy_ref, wbx_ref, wby_ref,
               wcnn_x_ref, bcnn_x_ref, wcnn_y_ref, bcnn_y_ref,
               w1x_ref, b1x_ref, w2x_ref, b2x_ref,
               w1y_ref, b1y_ref, w2y_ref, b2y_ref,
               score_ref, x_out_ref, y_out_ref):
        x_m = xm_ref[...]                             # (Nm, fm)
        x_d = xd_ref[...]                             # (Nd, fd)

        # GCN branches.  Only the branches the selected multi-view actually
        # consumes are emitted (the unused ones are dead code in the original
        # forward and do not influence any output).
        xm_all = [None] * 4
        yd_all = [None] * 4
        if 0 in x_sel:
            xm_all[0], xm_all[1] = _gcn2(x_m, am_ref[0], wxg_ref[0], bxg_ref[0],
                                         wxg_ref[1], bxg_ref[1])
        if 2 in x_sel:
            xm_all[2], xm_all[3] = _gcn2(x_m, am_ref[1], wxg_ref[2], bxg_ref[2],
                                         wxg_ref[3], bxg_ref[3])
        if 0 in y_sel:
            yd_all[0], yd_all[1] = _gcn2(x_d, ad_ref[0], wyg_ref[0], byg_ref[0],
                                         wyg_ref[1], byg_ref[1])
        if 2 in y_sel:
            yd_all[2], yd_all[3] = _gcn2(x_d, ad_ref[1], wyg_ref[2], byg_ref[2],
                                         wyg_ref[3], byg_ref[3])

        x_out = _cbam_cnn([xm_all[i] for i in x_sel], Cx, HIDx,
                          w1x_ref, b1x_ref, w2x_ref, b2x_ref,
                          prowx_ref, wbx_ref, wcnn_x_ref, bcnn_x_ref)  # (Nm, OUT)
        y_out = _cbam_cnn([yd_all[i] for i in y_sel], Cy, HIDy,
                          w1y_ref, b1y_ref, w2y_ref, b2y_ref,
                          prowy_ref, wby_ref, wcnn_y_ref, bcnn_y_ref)  # (Nd, OUT)

        x_out_ref[...] = x_out
        y_out_ref[...] = y_out
        score_ref[...] = lax.dot_general(             # x @ y.T (bf16 in, f32 acc)
            _bf(x_out), _bf(y_out),
            dimension_numbers=(((1,), (1,)), ((), ())),
            preferred_element_type=jnp.float32)

    vmem = pl.BlockSpec(memory_space=pltpu.MemorySpace.VMEM)
    smem = pl.BlockSpec(memory_space=pltpu.MemorySpace.SMEM)

    fused = pl.pallas_call(
        kernel,
        out_shape=(jax.ShapeDtypeStruct((Nm, Nd), jnp.float32),
                   jax.ShapeDtypeStruct((Nm, OUT), jnp.float32),
                   jax.ShapeDtypeStruct((Nd, OUT), jnp.float32)),
        in_specs=[vmem] * 16 + [smem] * 8,
        out_specs=(vmem, vmem, vmem),
    )
    # TODO(synk): on v7x the two independent branches (miRNA vs disease) could
    # be split across the two TensorCores via pl.core_map; kept single-core
    # since v5e/v6e have one TC and the fused kernel is ~us.

    def forward(x_m, x_d, data, packed):
        return fused(
            x_m, x_d, data["am"], data["ad"],
            packed["wxg"], packed["bxg"], packed["wyg"], packed["byg"],
            packed["prow_x"], packed["prow_y"], packed["wb_x"], packed["wb_y"],
            packed["wcnn_x"], packed["bcnn_x"], packed["wcnn_y"], packed["bcnn_y"],
            packed["w1x"], packed["b1x"], packed["w2x"], packed["b2x"],
            packed["w1y"], packed["b1y"], packed["w2y"], packed["b2y"])

    return forward


# --------------------------- synthetic data / params -------------------------
def normalized_adj(key, n):
    """Dense GCN-normalized adjacency D^-1/2 (A + I) D^-1/2 (synthetic A)."""
    a = jax.random.uniform(key, (n, n), dtype=jnp.float32)
    a = 0.5 * (a + a.T)
    a = a * (1.0 - jnp.eye(n, dtype=jnp.float32)) + jnp.eye(n, dtype=jnp.float32)
    dinv = 1.0 / jnp.sqrt(jnp.sum(a, axis=1))
    return a * dinv[:, None] * dinv[None, :]


def build_data(key, args):
    ka = jax.random.split(key, 4)
    return {
        "am": jnp.stack([normalized_adj(ka[0], args.miRNA_number),
                         normalized_adj(ka[1], args.miRNA_number)]),   # [f, g]
        "ad": jnp.stack([normalized_adj(ka[2], args.disease_number),
                         normalized_adj(ka[3], args.disease_number)]),
    }


def init_params(key, args, mv):
    ks = iter(jax.random.split(key, 64))

    def nrm(shape, scale=0.1):
        return (scale * jax.random.normal(next(ks), shape)).astype(jnp.float32)

    def gcn_stack(f):
        # layer order: [layer1_f, layer2_f, layer1_s, layer2_s]
        ws = [nrm((f, f)) for _ in range(4)]
        bs = [nrm((f,)).reshape(1, f) for _ in range(4)]
        return jnp.stack(ws), jnp.stack(bs)

    wxg, bxg = gcn_stack(args.fm)
    wyg, byg = gcn_stack(args.fd)

    cx = (args.view if mv in (7, 8, 9) else 1) * args.gcn_layers
    cy = (args.view if mv in (3, 6, 9) else 1) * args.gcn_layers

    def branch(C, F):
        # TODO(synk): PyTorch CBAM with reduction_ratio=5 gives hidden = C//5 == 0
        # for C in {2, 4}; clamp to >= 1 so the channel MLP stays meaningful.
        HID = max(1, C // 5)
        # Conv1d weight (OUT, C, F, 1) stored as (C, F, OUT) so the kernel can
        # use standard (N, F) @ (F, OUT) matmuls; bias as a (1, OUT) row.
        wcnn = jnp.transpose(nrm((args.out_channels, C, F)), (1, 2, 0))
        return {
            "w1": nrm((C, HID)), "b1": nrm((HID,)),
            "w2": nrm((HID, C)), "b2": nrm((C,)),
            "wsp": nrm((2, 49)),                  # SpatialGate 7x7 conv, bias-free
            "wcnn": wcnn, "bcnn": nrm((1, args.out_channels)),
        }

    return {"wxg": wxg, "bxg": bxg, "wyg": wyg, "byg": byg,
            "cbam_x": branch(cx, args.fm), "cbam_y": branch(cy, args.fd)}


# ------------------------------ pure-JAX reference ---------------------------
def reference_forward(x_m, x_d, data, params, args, mv):
    def dot(a, b):
        return jnp.dot(a, b, precision=lax.Precision.HIGHEST)

    def gcn2(x, a, w1, b1, w2, b2):
        h1 = jnp.maximum(dot(a, dot(x, w1)) + b1, 0.0)
        h2 = jnp.maximum(dot(a, dot(h1, w2)) + b2, 0.0)
        return h1, h2

    def cbam_cnn(chans, p):
        C = len(chans)
        N, F = chans[0].shape
        avg = jnp.stack([jnp.mean(c) for c in chans])
        mxp = jnp.stack([jnp.max(c) for c in chans])

        def mlp(v):
            h = jnp.maximum(v @ p["w1"] + p["b1"], 0.0)
            return h @ p["w2"] + p["b2"]

        gate = jax.nn.sigmoid(mlp(avg) + mlp(mxp))
        xg = [chans[c] * gate[c] for c in range(C)]
        stacked = jnp.stack(xg)
        max_map = jnp.max(stacked, axis=0)
        mean_map = jnp.mean(stacked, axis=0)
        conv = jnp.zeros((N, F), jnp.float32)
        for cc, m in enumerate((max_map, mean_map)):
            pm = jnp.pad(m, ((3, 3), (3, 3)))
            for kh in range(7):
                for kw in range(7):
                    conv = conv + p["wsp"][cc, kh * 7 + kw] * pm[kw:kw + N, kh:kh + F]
        sp_gate = jax.nn.sigmoid(conv * _BN_SCALE)
        res = sum(dot(xg[c] * sp_gate, p["wcnn"][c]) for c in range(C))
        return res + p["bcnn"]

    x_sel, y_sel = _xm_channel_sel(mv), _yd_channel_sel(mv)
    wxg, bxg, wyg, byg = params["wxg"], params["bxg"], params["wyg"], params["byg"]
    xf1, xf2 = gcn2(x_m, data["am"][0], wxg[0], bxg[0], wxg[1], bxg[1])
    xs1, xs2 = gcn2(x_m, data["am"][1], wxg[2], bxg[2], wxg[3], bxg[3])
    yf1, yf2 = gcn2(x_d, data["ad"][0], wyg[0], byg[0], wyg[1], byg[1])
    ys1, ys2 = gcn2(x_d, data["ad"][1], wyg[2], byg[2], wyg[3], byg[3])
    xm_all = [xf1, xf2, xs1, xs2]
    yd_all = [yf1, yf2, ys1, ys2]
    x = cbam_cnn([xm_all[i] for i in x_sel], params["cbam_x"])
    y = cbam_cnn([yd_all[i] for i in y_sel], params["cbam_y"])
    return dot(x, y.T), x, y


# ------------------------------------ main -----------------------------------
if __name__ == "__main__":
    args = Args()
    k_adj, k_par, k_xm, k_xd = jax.random.split(jax.random.PRNGKey(0), 4)

    data = build_data(k_adj, args)
    params = init_params(k_par, args, MV)
    # Node features: the PyTorch forward regenerates these internally from
    # torch.manual_seed(1); here they are deterministic synthetic inputs.
    x_m = jax.random.normal(k_xm, (args.miRNA_number, args.fm), dtype=jnp.float32)
    x_d = jax.random.normal(k_xd, (args.disease_number, args.fd), dtype=jnp.float32)

    forward = make_forward(args, MV)
    packed = pack_params(params, args)          # host-side, once
    out, x, y = forward(x_m, x_d, data, packed)
    jax.block_until_ready((out, x, y))

    assert out.shape == (args.miRNA_number, args.disease_number)
    assert x.shape == (args.miRNA_number, args.out_channels)
    assert y.shape == (args.disease_number, args.out_channels)

    ref_out, ref_x, ref_y = reference_forward(x_m, x_d, data, params, args, MV)
    # Tolerances account for bf16 MXU operands (f32 accumulation); observed
    # deviations are ~1e-3 on outputs of magnitude ~0.1.
    assert jnp.allclose(x, ref_x, rtol=2e-2, atol=2e-2)
    assert jnp.allclose(y, ref_y, rtol=2e-2, atol=2e-2)
    assert jnp.allclose(out, ref_out, rtol=2e-2, atol=2e-2)

    print("KERNEL_OK")
</pallas_src>

<mosaic_0001>
module attributes {stable_mosaic.version = 11 : i64} {
  func.func @kernel(%arg0: memref<24x32xf32, #tpu.memory_space<vmem>>, %arg1: memref<16x16xf32, #tpu.memory_space<vmem>>, %arg2: memref<2x24x24xf32, #tpu.memory_space<vmem>>, %arg3: memref<2x16x16xf32, #tpu.memory_space<vmem>>, %arg4: memref<4x32x32xf32, #tpu.memory_space<vmem>>, %arg5: memref<4x1x32xf32, #tpu.memory_space<vmem>>, %arg6: memref<4x16x16xf32, #tpu.memory_space<vmem>>, %arg7: memref<4x1x16xf32, #tpu.memory_space<vmem>>, %arg8: memref<30x24xf32, #tpu.memory_space<vmem>>, %arg9: memref<22x16xf32, #tpu.memory_space<vmem>>, %arg10: memref<14x32x32xf32, #tpu.memory_space<vmem>>, %arg11: memref<14x16x16xf32, #tpu.memory_space<vmem>>, %arg12: memref<2x32x8xf32, #tpu.memory_space<vmem>>, %arg13: memref<1x8xf32, #tpu.memory_space<vmem>>, %arg14: memref<2x16x8xf32, #tpu.memory_space<vmem>>, %arg15: memref<1x8xf32, #tpu.memory_space<vmem>>, %arg16: memref<2xf32, #tpu.memory_space<smem>>, %arg17: memref<1xf32, #tpu.memory_space<smem>>, %arg18: memref<2xf32, #tpu.memory_space<smem>>, %arg19: memref<2xf32, #tpu.memory_space<smem>>, %arg20: memref<2xf32, #tpu.memory_space<smem>>, %arg21: memref<1xf32, #tpu.memory_space<smem>>, %arg22: memref<2xf32, #tpu.memory_space<smem>>, %arg23: memref<2xf32, #tpu.memory_space<smem>>, %arg24: memref<24x16xf32, #tpu.memory_space<vmem>>, %arg25: memref<24x8xf32, #tpu.memory_space<vmem>>, %arg26: memref<16x8xf32, #tpu.memory_space<vmem>>) attributes {dimension_semantics = [], scalar_prefetch = 0 : i64, scratch_operands = 0 : i64, tpu.core_type = #tpu.core_type<tc>} {
    %c0 = arith.constant 0 : index
    %c0_0 = arith.constant 0 : index
    %0 = vector.load %arg0[%c0, %c0_0] : memref<24x32xf32, #tpu.memory_space<vmem>>, vector<24x32xf32>
    %c0_1 = arith.constant 0 : index
    %c0_2 = arith.constant 0 : index
    %1 = vector.load %arg1[%c0_1, %c0_2] : memref<16x16xf32, #tpu.memory_space<vmem>>, vector<16x16xf32>
    %c0_3 = arith.constant 0 : index
    %c0_4 = arith.constant 0 : index
    %c0_5 = arith.constant 0 : index
    %2 = vector.load %arg2[%c0_3, %c0_4, %c0_5] : memref<2x24x24xf32, #tpu.memory_space<vmem>>, vector<1x24x24xf32>
    %3 = vector.shape_cast %2 : vector<1x24x24xf32> to vector<24x24xf32>
    %c0_6 = arith.constant 0 : index
    %c0_7 = arith.constant 0 : index
    %c0_8 = arith.constant 0 : index
    %4 = vector.load %arg4[%c0_6, %c0_7, %c0_8] : memref<4x32x32xf32, #tpu.memory_space<vmem>>, vector<1x32x32xf32>
    %5 = vector.shape_cast %4 : vector<1x32x32xf32> to vector<32x32xf32>
    %c0_9 = arith.constant 0 : index
    %c0_10 = arith.constant 0 : index
    %c0_11 = arith.constant 0 : index
    %6 = vector.load %arg5[%c0_9, %c0_10, %c0_11] : memref<4x1x32xf32, #tpu.memory_space<vmem>>, vector<1x1x32xf32>
    %7 = vector.shape_cast %6 : vector<1x1x32xf32> to vector<1x32xf32>
    %c1 = arith.constant 1 : index
    %c0_12 = arith.constant 0 : index
    %c0_13 = arith.constant 0 : index
    %8 = vector.load %arg4[%c1, %c0_12, %c0_13] : memref<4x32x32xf32, #tpu.memory_space<vmem>>, vector<1x32x32xf32>
    %9 = vector.shape_cast %8 : vector<1x32x32xf32> to vector<32x32xf32>
    %c1_14 = arith.constant 1 : index
    %c0_15 = arith.constant 0 : index
    %c0_16 = arith.constant 0 : index
    %10 = vector.load %arg5[%c1_14, %c0_15, %c0_16] : memref<4x1x32xf32, #tpu.memory_space<vmem>>, vector<1x1x32xf32>
    %11 = vector.shape_cast %10 : vector<1x1x32xf32> to vector<1x32xf32>
    %12 = arith.truncf %0 : vector<24x32xf32> to vector<24x32xbf16>
    %13 = arith.truncf %5 : vector<32x32xf32> to vector<32x32xbf16>
    %cst = arith.constant dense<0.000000e+00> : vector<24x32xf32>
    %14 = tpu.matmul %12, %13, %cst {dimension_numbers = #tpu.dot_dimension_numbers<[1], [0], [0], [1], [0, 0, 1, 1], [], []>} : vector<24x32xbf16>, vector<32x32xbf16>, vector<24x32xf32> -> vector<24x32xf32>
    %15 = arith.truncf %3 : vector<24x24xf32> to vector<24x24xbf16>
    %16 = arith.truncf %14 : vector<24x32xf32> to vector<24x32xbf16>
    %cst_17 = arith.constant dense<0.000000e+00> : vector<24x32xf32>
    %17 = tpu.matmul %15, %16, %cst_17 {dimension_numbers = #tpu.dot_dimension_numbers<[1], [0], [0], [1], [0, 0, 1, 1], [], []>} : vector<24x24xbf16>, vector<24x32xbf16>, vector<24x32xf32> -> vector<24x32xf32>
    %18 = vector.broadcast %7 : vector<1x32xf32> to vector<24x32xf32>
    %19 = arith.addf %17, %18 : vector<24x32xf32>
    %cst_18 = arith.constant 0.000000e+00 : f32
    %20 = vector.broadcast %cst_18 : f32 to vector<24x32xf32>
    %21 = arith.maximumf %19, %20 : vector<24x32xf32>
    %22 = arith.truncf %21 : vector<24x32xf32> to vector<24x32xbf16>
    %23 = arith.truncf %9 : vector<32x32xf32> to vector<32x32xbf16>
    %cst_19 = arith.constant dense<0.000000e+00> : vector<24x32xf32>
    %24 = tpu.matmul %22, %23, %cst_19 {dimension_numbers = #tpu.dot_dimension_numbers<[1], [0], [0], [1], [0, 0, 1, 1], [], []>} : vector<24x32xbf16>, vector<32x32xbf16>, vector<24x32xf32> -> vector<24x32xf32>
    %25 = arith.truncf %3 : vector<24x24xf32> to vector<24x24xbf16>
    %26 = arith.truncf %24 : vector<24x32xf32> to vector<24x32xbf16>
    %cst_20 = arith.constant dense<0.000000e+00> : vector<24x32xf32>
    %27 = tpu.matmul %25, %26, %cst_20 {dimension_numbers = #tpu.dot_dimension_numbers<[1], [0], [0], [1], [0, 0, 1, 1], [], []>} : vector<24x24xbf16>, vector<24x32xbf16>, vector<24x32xf32> -> vector<24x32xf32>
    %28 = vector.broadcast %11 : vector<1x32xf32> to vector<24x32xf32>
    %29 = arith.addf %27, %28 : vector<24x32xf32>
    %cst_21 = arith.constant 0.000000e+00 : f32
    %30 = vector.broadcast %cst_21 : f32 to vector<24x32xf32>
    %31 = arith.maximumf %29, %30 : vector<24x32xf32>
    %c0_22 = arith.constant 0 : index
    %c0_23 = arith.constant 0 : index
    %c0_24 = arith.constant 0 : index
    %32 = vector.load %arg3[%c0_22, %c0_23, %c0_24] : memref<2x16x16xf32, #tpu.memory_space<vmem>>, vector<1x16x16xf32>
    %33 = vector.shape_cast %32 : vector<1x16x16xf32> to vector<16x16xf32>
    %c0_25 = arith.constant 0 : index
    %c0_26 = arith.constant 0 : index
    %c0_27 = arith.constant 0 : index
    %34 = vector.load %arg6[%c0_25, %c0_26, %c0_27] : memref<4x16x16xf32, #tpu.memory_space<vmem>>, vector<1x16x16xf32>
    %35 = vector.shape_cast %34 : vector<1x16x16xf32> to vector<16x16xf32>
    %c0_28 = arith.constant 0 : index
    %c0_29 = arith.constant 0 : index
    %c0_30 = arith.constant 0 : index
    %36 = vector.load %arg7[%c0_28, %c0_29, %c0_30] : memref<4x1x16xf32, #tpu.memory_space<vmem>>, vector<1x1x16xf32>
    %37 = vector.shape_cast %36 : vector<1x1x16xf32> to vector<1x16xf32>
    %c1_31 = arith.constant 1 : index
    %c0_32 = arith.constant 0 : index
    %c0_33 = arith.constant 0 : index
    %38 = vector.load %arg6[%c1_31, %c0_32, %c0_33] : memref<4x16x16xf32, #tpu.memory_space<vmem>>, vector<1x16x16xf32>
    %39 = vector.shape_cast %38 : vector<1x16x16xf32> to vector<16x16xf32>
    %c1_34 = arith.constant 1 : index
    %c0_35 = arith.constant 0 : index
    %c0_36 = arith.constant 0 : index
    %40 = vector.load %arg7[%c1_34, %c0_35, %c0_36] : memref<4x1x16xf32, #tpu.memory_space<vmem>>, vector<1x1x16xf32>
    %41 = vector.shape_cast %40 : vector<1x1x16xf32> to vector<1x16xf32>
    %42 = arith.truncf %1 : vector<16x16xf32> to vector<16x16xbf16>
    %43 = arith.truncf %35 : vector<16x16xf32> to vector<16x16xbf16>
    %cst_37 = arith.constant dense<0.000000e+00> : vector<16x16xf32>
    %44 = tpu.matmul %42, %43, %cst_37 {dimension_numbers = #tpu.dot_dimension_numbers<[1], [0], [0], [1], [0, 0, 1, 1], [], []>} : vector<16x16xbf16>, vector<16x16xbf16>, vector<16x16xf32> -> vector<16x16xf32>
    %45 = arith.truncf %33 : vector<16x16xf32> to vector<16x16xbf16>
    %46 = arith.truncf %44 : vector<16x16xf32> to vector<16x16xbf16>
    %cst_38 = arith.constant dense<0.000000e+00> : vector<16x16xf32>
    %47 = tpu.matmul %45, %46, %cst_38 {dimension_numbers = #tpu.dot_dimension_numbers<[1], [0], [0], [1], [0, 0, 1, 1], [], []>} : vector<16x16xbf16>, vector<16x16xbf16>, vector<16x16xf32> -> vector<16x16xf32>
    %48 = vector.broadcast %37 : vector<1x16xf32> to vector<16x16xf32>
    %49 = arith.addf %47, %48 : vector<16x16xf32>
    %cst_39 = arith.constant 0.000000e+00 : f32
    %50 = vector.broadcast %cst_39 : f32 to vector<16x16xf32>
    %51 = arith.maximumf %49, %50 : vector<16x16xf32>
    %52 = arith.truncf %51 : vector<16x16xf32> to vector<16x16xbf16>
    %53 = arith.truncf %39 : vector<16x16xf32> to vector<16x16xbf16>
    %cst_40 = arith.constant dense<0.000000e+00> : vector<16x16xf32>
    %54 = tpu.matmul %52, %53, %cst_40 {dimension_numbers = #tpu.dot_dimension_numbers<[1], [0], [0], [1], [0, 0, 1, 1], [], []>} : vector<16x16xbf16>, vector<16x16xbf16>, vector<16x16xf32> -> vector<16x16xf32>
    %55 = arith.truncf %33 : vector<16x16xf32> to vector<16x16xbf16>
    %56 = arith.truncf %54 : vector<16x16xf32> to vector<16x16xbf16>
    %cst_41 = arith.constant dense<0.000000e+00> : vector<16x16xf32>
    %57 = tpu.matmul %55, %56, %cst_41 {dimension_numbers = #tpu.dot_dimension_numbers<[1], [0], [0], [1], [0, 0, 1, 1], [], []>} : vector<16x16xbf16>, vector<16x16xbf16>, vector<16x16xf32> -> vector<16x16xf32>
    %58 = vector.broadcast %41 : vector<1x16xf32> to vector<16x16xf32>
    %59 = arith.addf %57, %58 : vector<16x16xf32>
    %cst_42 = arith.constant 0.000000e+00 : f32
    %60 = vector.broadcast %cst_42 : f32 to vector<16x16xf32>
    %61 = arith.maximumf %59, %60 : vector<16x16xf32>
    %62 = vector.shape_cast %21 : vector<24x32xf32> to vector<1x24x32xf32>
    %cst_43 = arith.constant dense<0.000000e+00> : vector<1xf32>
    %63 = vector.multi_reduction <add>, %62, %cst_43 [1, 2] : vector<1x24x32xf32> to vector<1xf32>
    %64 = vector.shape_cast %63 : vector<1xf32> to vector<1x1x1xf32>
    %65 = vector.extract %64[0, 0, 0] : f32 from vector<1x1x1xf32>
    %cst_44 = arith.constant 7.680000e+02 : f32
    %66 = arith.divf %65, %cst_44 : f32
    %67 = vector.shape_cast %31 : vector<24x32xf32> to vector<1x24x32xf32>
    %cst_45 = arith.constant dense<0.000000e+00> : vector<1xf32>
    %68 = vector.multi_reduction <add>, %67, %cst_45 [1, 2] : vector<1x24x32xf32> to vector<1xf32>
    %69 = vector.shape_cast %68 : vector<1xf32> to vector<1x1x1xf32>
    %70 = vector.extract %69[0, 0, 0] : f32 from vector<1x1x1xf32>
    %cst_46 = arith.constant 7.680000e+02 : f32
    %71 = arith.divf %70, %cst_46 : f32
    %72 = vector.shape_cast %21 : vector<24x32xf32> to vector<1x24x32xf32>
    %cst_47 = arith.constant dense<0xFF800000> : vector<1xf32>
    %73 = vector.multi_reduction <maximumf>, %72, %cst_47 [1, 2] : vector<1x24x32xf32> to vector<1xf32>
    %74 = vector.shape_cast %73 : vector<1xf32> to vector<1x1x1xf32>
    %75 = vector.extract %74[0, 0, 0] : f32 from vector<1x1x1xf32>
    %76 = vector.shape_cast %31 : vector<24x32xf32> to vector<1x24x32xf32>
    %cst_48 = arith.constant dense<0xFF800000> : vector<1xf32>
    %77 = vector.multi_reduction <maximumf>, %76, %cst_48 [1, 2] : vector<1x24x32xf32> to vector<1xf32>
    %78 = vector.shape_cast %77 : vector<1xf32> to vector<1x1x1xf32>
    %79 = vector.extract %78[0, 0, 0] : f32 from vector<1x1x1xf32>
    %c0_49 = arith.constant 0 : index
    %80 = memref.load %arg17[%c0_49] : memref<1xf32, #tpu.memory_space<smem>>
    %c0_50 = arith.constant 0 : index
    %81 = memref.load %arg16[%c0_50] : memref<2xf32, #tpu.memory_space<smem>>
    %82 = arith.mulf %66, %81 : f32
    %83 = arith.addf %80, %82 : f32
    %c1_51 = arith.constant 1 : index
    %84 = memref.load %arg16[%c1_51] : memref<2xf32, #tpu.memory_space<smem>>
    %85 = arith.mulf %71, %84 : f32
    %86 = arith.addf %83, %85 : f32
    %cst_52 = arith.constant 0.000000e+00 : f32
    %87 = arith.maximumf %86, %cst_52 : f32
    %c0_53 = arith.constant 0 : index
    %88 = memref.load %arg19[%c0_53] : memref<2xf32, #tpu.memory_space<smem>>
    %c0_54 = arith.constant 0 : index
    %89 = memref.load %arg18[%c0_54] : memref<2xf32, #tpu.memory_space<smem>>
    %90 = arith.mulf %87, %89 : f32
    %91 = arith.addf %88, %90 : f32
    %c1_55 = arith.constant 1 : index
    %92 = memref.load %arg19[%c1_55] : memref<2xf32, #tpu.memory_space<smem>>
    %c1_56 = arith.constant 1 : index
    %93 = memref.load %arg18[%c1_56] : memref<2xf32, #tpu.memory_space<smem>>
    %94 = arith.mulf %87, %93 : f32
    %95 = arith.addf %92, %94 : f32
    %c0_57 = arith.constant 0 : index
    %96 = memref.load %arg17[%c0_57] : memref<1xf32, #tpu.memory_space<smem>>
    %c0_58 = arith.constant 0 : index
    %97 = memref.load %arg16[%c0_58] : memref<2xf32, #tpu.memory_space<smem>>
    %98 = arith.mulf %75, %97 : f32
    %99 = arith.addf %96, %98 : f32
    %c1_59 = arith.constant 1 : index
    %100 = memref.load %arg16[%c1_59] : memref<2xf32, #tpu.memory_space<smem>>
    %101 = arith.mulf %79, %100 : f32
    %102 = arith.addf %99, %101 : f32
    %cst_60 = arith.constant 0.000000e+00 : f32
    %103 = arith.maximumf %102, %cst_60 : f32
    %c0_61 = arith.constant 0 : index
    %104 = memref.load %arg19[%c0_61] : memref<2xf32, #tpu.memory_space<smem>>
    %c0_62 = arith.constant 0 : index
    %105 = memref.load %arg18[%c0_62] : memref<2xf32, #tpu.memory_space<smem>>
    %106 = arith.mulf %103, %105 : f32
    %107 = arith.addf %104, %106 : f32
    %c1_63 = arith.constant 1 : index
    %108 = memref.load %arg19[%c1_63] : memref<2xf32, #tpu.memory_space<smem>>
    %c1_64 = arith.constant 1 : index
    %109 = memref.load %arg18[%c1_64] : memref<2xf32, #tpu.memory_space<smem>>
    %110 = arith.mulf %103, %109 : f32
    %111 = arith.addf %108, %110 : f32
    %112 = arith.addf %91, %107 : f32
    %113 = arith.negf %112 : f32
    %114 = math.exp %113 : f32
    %cst_65 = arith.constant 1.000000e+00 : f32
    %115 = arith.addf %cst_65, %114 : f32
    %116 = arith.divf %cst_65, %115 : f32
    %117 = vector.broadcast %116 : f32 to vector<24x32xf32>
    %118 = arith.mulf %21, %117 : vector<24x32xf32>
    %119 = arith.addf %95, %111 : f32
    %120 = arith.negf %119 : f32
    %121 = math.exp %120 : f32
    %cst_66 = arith.constant 1.000000e+00 : f32
    %122 = arith.addf %cst_66, %121 : f32
    %123 = arith.divf %cst_66, %122 : f32
    %124 = vector.broadcast %123 : f32 to vector<24x32xf32>
    %125 = arith.mulf %31, %124 : vector<24x32xf32>
    %126 = arith.maximumf %118, %125 : vector<24x32xf32>
    %127 = arith.addf %118, %125 : vector<24x32xf32>
    %cst_67 = arith.constant 5.000000e-01 : f32
    %128 = vector.broadcast %cst_67 : f32 to vector<24x32xf32>
    %129 = arith.mulf %127, %128 : vector<24x32xf32>
    %c0_68 = arith.constant 0 : index
    %c0_69 = arith.constant 0 : index
    %130 = vector.load %arg8[%c0_68, %c0_69] : memref<30x24xf32, #tpu.memory_space<vmem>>, vector<30x24xf32>
    %131 = arith.truncf %130 : vector<30x24xf32> to vector<30x24xbf16>
    %132 = arith.truncf %126 : vector<24x32xf32> to vector<24x32xbf16>
    %cst_70 = arith.constant dense<0.000000e+00> : vector<30x32xf32>
    %133 = tpu.matmul %131, %132, %cst_70 {dimension_numbers = #tpu.dot_dimension_numbers<[1], [0], [0], [1], [0, 0, 1, 1], [], []>} : vector<30x24xbf16>, vector<24x32xbf16>, vector<30x32xf32> -> vector<30x32xf32>
    %134 = arith.truncf %130 : vector<30x24xf32> to vector<30x24xbf16>
    %135 = arith.truncf %129 : vector<24x32xf32> to vector<24x32xbf16>
    %cst_71 = arith.constant dense<0.000000e+00> : vector<30x32xf32>
    %136 = tpu.matmul %134, %135, %cst_71 {dimension_numbers = #tpu.dot_dimension_numbers<[1], [0], [0], [1], [0, 0, 1, 1], [], []>} : vector<30x24xbf16>, vector<24x32xbf16>, vector<30x32xf32> -> vector<30x32xf32>
    %137 = vector.extract_strided_slice %133 {offsets = [0, 0], sizes = [24, 32], strides = [1, 1]} : vector<30x32xf32> to vector<24x32xf32>
    %c0_72 = arith.constant 0 : index
    %c0_73 = arith.constant 0 : index
    %c0_74 = arith.constant 0 : index
    %138 = vector.load %arg10[%c0_72, %c0_73, %c0_74] : memref<14x32x32xf32, #tpu.memory_space<vmem>>, vector<1x32x32xf32>
    %139 = vector.shape_cast %138 : vector<1x32x32xf32> to vector<32x32xf32>
    %140 = arith.truncf %137 : vector<24x32xf32> to vector<24x32xbf16>
    %141 = arith.truncf %139 : vector<32x32xf32> to vector<32x32xbf16>
    %cst_75 = arith.constant dense<0.000000e+00> : vector<24x32xf32>
    %142 = tpu.matmul %140, %141, %cst_75 {dimension_numbers = #tpu.dot_dimension_numbers<[1], [0], [0], [1], [0, 0, 1, 1], [], []>} : vector<24x32xbf16>, vector<32x32xbf16>, vector<24x32xf32> -> vector<24x32xf32>
    %143 = vector.extract_strided_slice %136 {offsets = [0, 0], sizes = [24, 32], strides = [1, 1]} : vector<30x32xf32> to vector<24x32xf32>
    %c7 = arith.constant 7 : index
    %c0_76 = arith.constant 0 : index
    %c0_77 = arith.constant 0 : index
    %144 = vector.load %arg10[%c7, %c0_76, %c0_77] : memref<14x32x32xf32, #tpu.memory_space<vmem>>, vector<1x32x32xf32>
    %145 = vector.shape_cast %144 : vector<1x32x32xf32> to vector<32x32xf32>
    %146 = arith.truncf %143 : vector<24x32xf32> to vector<24x32xbf16>
    %147 = arith.truncf %145 : vector<32x32xf32> to vector<32x32xbf16>
    %cst_78 = arith.constant dense<0.000000e+00> : vector<24x32xf32>
    %148 = tpu.matmul %146, %147, %cst_78 {dimension_numbers = #tpu.dot_dimension_numbers<[1], [0], [0], [1], [0, 0, 1, 1], [], []>} : vector<24x32xbf16>, vector<32x32xbf16>, vector<24x32xf32> -> vector<24x32xf32>
    %149 = arith.addf %142, %148 : vector<24x32xf32>
    %150 = vector.extract_strided_slice %133 {offsets = [1, 0], sizes = [24, 32], strides = [1, 1]} : vector<30x32xf32> to vector<24x32xf32>
    %c1_79 = arith.constant 1 : index
    %c0_80 = arith.constant 0 : index
    %c0_81 = arith.constant 0 : index
    %151 = vector.load %arg10[%c1_79, %c0_80, %c0_81] : memref<14x32x32xf32, #tpu.memory_space<vmem>>, vector<1x32x32xf32>
    %152 = vector.shape_cast %151 : vector<1x32x32xf32> to vector<32x32xf32>
    %153 = arith.truncf %150 : vector<24x32xf32> to vector<24x32xbf16>
    %154 = arith.truncf %152 : vector<32x32xf32> to vector<32x32xbf16>
    %cst_82 = arith.constant dense<0.000000e+00> : vector<24x32xf32>
    %155 = tpu.matmul %153, %154, %cst_82 {dimension_numbers = #tpu.dot_dimension_numbers<[1], [0], [0], [1], [0, 0, 1, 1], [], []>} : vector<24x32xbf16>, vector<32x32xbf16>, vector<24x32xf32> -> vector<24x32xf32>
    %156 = vector.extract_strided_slice %136 {offsets = [1, 0], sizes = [24, 32], strides = [1, 1]} : vector<30x32xf32> to vector<24x32xf32>
    %c8 = arith.constant 8 : index
    %c0_83 = arith.constant 0 : index
    %c0_84 = arith.constant 0 : index
    %157 = vector.load %arg10[%c8, %c0_83, %c0_84] : memref<14x32x32xf32, #tpu.memory_space<vmem>>, vector<1x32x32xf32>
    %158 = vector.shape_cast %157 : vector<1x32x32xf32> to vector<32x32xf32>
    %159 = arith.truncf %156 : vector<24x32xf32> to vector<24x32xbf16>
    %160 = arith.truncf %158 : vector<32x32xf32> to vector<32x32xbf16>
    %cst_85 = arith.constant dense<0.000000e+00> : vector<24x32xf32>
    %161 = tpu.matmul %159, %160, %cst_85 {dimension_numbers = #tpu.dot_dimension_numbers<[1], [0], [0], [1], [0, 0, 1, 1], [], []>} : vector<24x32xbf16>, vector<32x32xbf16>, vector<24x32xf32> -> vector<24x32xf32>
    %162 = arith.addf %155, %161 : vector<24x32xf32>
    %163 = arith.addf %149, %162 : vector<24x32xf32>
    %164 = vector.extract_strided_slice %133 {offsets = [2, 0], sizes = [24, 32], strides = [1, 1]} : vector<30x32xf32> to vector<24x32xf32>
    %c2 = arith.constant 2 : index
    %c0_86 = arith.constant 0 : index
    %c0_87 = arith.constant 0 : index
    %165 = vector.load %arg10[%c2, %c0_86, %c0_87] : memref<14x32x32xf32, #tpu.memory_space<vmem>>, vector<1x32x32xf32>
    %166 = vector.shape_cast %165 : vector<1x32x32xf32> to vector<32x32xf32>
    %167 = arith.truncf %164 : vector<24x32xf32> to vector<24x32xbf16>
    %168 = arith.truncf %166 : vector<32x32xf32> to vector<32x32xbf16>
    %cst_88 = arith.constant dense<0.000000e+00> : vector<24x32xf32>
    %169 = tpu.matmul %167, %168, %cst_88 {dimension_numbers = #tpu.dot_dimension_numbers<[1], [0], [0], [1], [0, 0, 1, 1], [], []>} : vector<24x32xbf16>, vector<32x32xbf16>, vector<24x32xf32> -> vector<24x32xf32>
    %170 = vector.extract_strided_slice %136 {offsets = [2, 0], sizes = [24, 32], strides = [1, 1]} : vector<30x32xf32> to vector<24x32xf32>
    %c9 = arith.constant 9 : index
    %c0_89 = arith.constant 0 : index
    %c0_90 = arith.constant 0 : index
    %171 = vector.load %arg10[%c9, %c0_89, %c0_90] : memref<14x32x32xf32, #tpu.memory_space<vmem>>, vector<1x32x32xf32>
    %172 = vector.shape_cast %171 : vector<1x32x32xf32> to vector<32x32xf32>
    %173 = arith.truncf %170 : vector<24x32xf32> to vector<24x32xbf16>
    %174 = arith.truncf %172 : vector<32x32xf32> to vector<32x32xbf16>
    %cst_91 = arith.constant dense<0.000000e+00> : vector<24x32xf32>
    %175 = tpu.matmul %173, %174, %cst_91 {dimension_numbers = #tpu.dot_dimension_numbers<[1], [0], [0], [1], [0, 0, 1, 1], [], []>} : vector<24x32xbf16>, vector<32x32xbf16>, vector<24x32xf32> -> vector<24x32xf32>
    %176 = arith.addf %169, %175 : vector<24x32xf32>
    %177 = arith.addf %163, %176 : vector<24x32xf32>
    %178 = vector.extract_strided_slice %133 {offsets = [3, 0], sizes = [24, 32], strides = [1, 1]} : vector<30x32xf32> to vector<24x32xf32>
    %c3 = arith.constant 3 : index
    %c0_92 = arith.constant 0 : index
    %c0_93 = arith.constant 0 : index
    %179 = vector.load %arg10[%c3, %c0_92, %c0_93] : memref<14x32x32xf32, #tpu.memory_space<vmem>>, vector<1x32x32xf32>
    %180 = vector.shape_cast %179 : vector<1x32x32xf32> to vector<32x32xf32>
    %181 = arith.truncf %178 : vector<24x32xf32> to vector<24x32xbf16>
    %182 = arith.truncf %180 : vector<32x32xf32> to vector<32x32xbf16>
    %cst_94 = arith.constant dense<0.000000e+00> : vector<24x32xf32>
    %183 = tpu.matmul %181, %182, %cst_94 {dimension_numbers = #tpu.dot_dimension_numbers<[1], [0], [0], [1], [0, 0, 1, 1], [], []>} : vector<24x32xbf16>, vector<32x32xbf16>, vector<24x32xf32> -> vector<24x32xf32>
    %184 = vector.extract_strided_slice %136 {offsets = [3, 0], sizes = [24, 32], strides = [1, 1]} : vector<30x32xf32> to vector<24x32xf32>
    %c10 = arith.constant 10 : index
    %c0_95 = arith.constant 0 : index
    %c0_96 = arith.constant 0 : index
    %185 = vector.load %arg10[%c10, %c0_95, %c0_96] : memref<14x32x32xf32, #tpu.memory_space<vmem>>, vector<1x32x32xf32>
    %186 = vector.shape_cast %185 : vector<1x32x32xf32> to vector<32x32xf32>
    %187 = arith.truncf %184 : vector<24x32xf32> to vector<24x32xbf16>
    %188 = arith.truncf %186 : vector<32x32xf32> to vector<32x32xbf16>
    %cst_97 = arith.constant dense<0.000000e+00> : vector<24x32xf32>
    %189 = tpu.matmul %187, %188, %cst_97 {dimension_numbers = #tpu.dot_dimension_numbers<[1], [0], [0], [1], [0, 0, 1, 1], [], []>} : vector<24x32xbf16>, vector<32x32xbf16>, vector<24x32xf32> -> vector<24x32xf32>
    %190 = arith.addf %183, %189 : vector<24x32xf32>
    %191 = arith.addf %177, %190 : vector<24x32xf32>
    %192 = vector.extract_strided_slice %133 {offsets = [4, 0], sizes = [24, 32], strides = [1, 1]} : vector<30x32xf32> to vector<24x32xf32>
    %c4 = arith.constant 4 : index
    %c0_98 = arith.constant 0 : index
    %c0_99 = arith.constant 0 : index
    %193 = vector.load %arg10[%c4, %c0_98, %c0_99] : memref<14x32x32xf32, #tpu.memory_space<vmem>>, vector<1x32x32xf32>
    %194 = vector.shape_cast %193 : vector<1x32x32xf32> to vector<32x32xf32>
    %195 = arith.truncf %192 : vector<24x32xf32> to vector<24x32xbf16>
    %196 = arith.truncf %194 : vector<32x32xf32> to vector<32x32xbf16>
    %cst_100 = arith.constant dense<0.000000e+00> : vector<24x32xf32>
    %197 = tpu.matmul %195, %196, %cst_100 {dimension_numbers = #tpu.dot_dimension_numbers<[1], [0], [0], [1], [0, 0, 1, 1], [], []>} : vector<24x32xbf16>, vector<32x32xbf16>, vector<24x32xf32> -> vector<24x32xf32>
    %198 = vector.extract_strided_slice %136 {offsets = [4, 0], sizes = [24, 32], strides = [1, 1]} : vector<30x32xf32> to vector<24x32xf32>
    %c11 = arith.constant 11 : index
    %c0_101 = arith.constant 0 : index
    %c0_102 = arith.constant 0 : index
    %199 = vector.load %arg10[%c11, %c0_101, %c0_102] : memref<14x32x32xf32, #tpu.memory_space<vmem>>, vector<1x32x32xf32>
    %200 = vector.shape_cast %199 : vector<1x32x32xf32> to vector<32x32xf32>
    %201 = arith.truncf %198 : vector<24x32xf32> to vector<24x32xbf16>
    %202 = arith.truncf %200 : vector<32x32xf32> to vector<32x32xbf16>
    %cst_103 = arith.constant dense<0.000000e+00> : vector<24x32xf32>
    %203 = tpu.matmul %201, %202, %cst_103 {dimension_numbers = #tpu.dot_dimension_numbers<[1], [0], [0], [1], [0, 0, 1, 1], [], []>} : vector<24x32xbf16>, vector<32x32xbf16>, vector<24x32xf32> -> vector<24x32xf32>
    %204 = arith.addf %197, %203 : vector<24x32xf32>
    %205 = arith.addf %191, %204 : vector<24x32xf32>
    %206 = vector.extract_strided_slice %133 {offsets = [5, 0], sizes = [24, 32], strides = [1, 1]} : vector<30x32xf32> to vector<24x32xf32>
    %c5 = arith.constant 5 : index
    %c0_104 = arith.constant 0 : index
    %c0_105 = arith.constant 0 : index
    %207 = vector.load %arg10[%c5, %c0_104, %c0_105] : memref<14x32x32xf32, #tpu.memory_space<vmem>>, vector<1x32x32xf32>
    %208 = vector.shape_cast %207 : vector<1x32x32xf32> to vector<32x32xf32>
    %209 = arith.truncf %206 : vector<24x32xf32> to vector<24x32xbf16>
    %210 = arith.truncf %208 : vector<32x32xf32> to vector<32x32xbf16>
    %cst_106 = arith.constant dense<0.000000e+00> : vector<24x32xf32>
    %211 = tpu.matmul %209, %210, %cst_106 {dimension_numbers = #tpu.dot_dimension_numbers<[1], [0], [0], [1], [0, 0, 1, 1], [], []>} : vector<24x32xbf16>, vector<32x32xbf16>, vector<24x32xf32> -> vector<24x32xf32>
    %212 = vector.extract_strided_slice %136 {offsets = [5, 0], sizes = [24, 32], strides = [1, 1]} : vector<30x32xf32> to vector<24x32xf32>
    %c12 = arith.constant 12 : index
    %c0_107 = arith.constant 0 : index
    %c0_108 = arith.constant 0 : index
    %213 = vector.load %arg10[%c12, %c0_107, %c0_108] : memref<14x32x32xf32, #tpu.memory_space<vmem>>, vector<1x32x32xf32>
    %214 = vector.shape_cast %213 : vector<1x32x32xf32> to vector<32x32xf32>
    %215 = arith.truncf %212 : vector<24x32xf32> to vector<24x32xbf16>
    %216 = arith.truncf %214 : vector<32x32xf32> to vector<32x32xbf16>
    %cst_109 = arith.constant dense<0.000000e+00> : vector<24x32xf32>
    %217 = tpu.matmul %215, %216, %cst_109 {dimension_numbers = #tpu.dot_dimension_numbers<[1], [0], [0], [1], [0, 0, 1, 1], [], []>} : vector<24x32xbf16>, vector<32x32xbf16>, vector<24x32xf32> -> vector<24x32xf32>
    %218 = arith.addf %211, %217 : vector<24x32xf32>
    %219 = arith.addf %205, %218 : vector<24x32xf32>
    %220 = vector.extract_strided_slice %133 {offsets = [6, 0], sizes = [24, 32], strides = [1, 1]} : vector<30x32xf32> to vector<24x32xf32>
    %c6 = arith.constant 6 : index
    %c0_110 = arith.constant 0 : index
    %c0_111 = arith.constant 0 : index
    %221 = vector.load %arg10[%c6, %c0_110, %c0_111] : memref<14x32x32xf32, #tpu.memory_space<vmem>>, vector<1x32x32xf32>
    %222 = vector.shape_cast %221 : vector<1x32x32xf32> to vector<32x32xf32>
    %223 = arith.truncf %220 : vector<24x32xf32> to vector<24x32xbf16>
    %224 = arith.truncf %222 : vector<32x32xf32> to vector<32x32xbf16>
    %cst_112 = arith.constant dense<0.000000e+00> : vector<24x32xf32>
    %225 = tpu.matmul %223, %224, %cst_112 {dimension_numbers = #tpu.dot_dimension_numbers<[1], [0], [0], [1], [0, 0, 1, 1], [], []>} : vector<24x32xbf16>, vector<32x32xbf16>, vector<24x32xf32> -> vector<24x32xf32>
    %226 = vector.extract_strided_slice %136 {offsets = [6, 0], sizes = [24, 32], strides = [1, 1]} : vector<30x32xf32> to vector<24x32xf32>
    %c13 = arith.constant 13 : index
    %c0_113 = arith.constant 0 : index
    %c0_114 = arith.constant 0 : index
    %227 = vector.load %arg10[%c13, %c0_113, %c0_114] : memref<14x32x32xf32, #tpu.memory_space<vmem>>, vector<1x32x32xf32>
    %228 = vector.shape_cast %227 : vector<1x32x32xf32> to vector<32x32xf32>
    %229 = arith.truncf %226 : vector<24x32xf32> to vector<24x32xbf16>
    %230 = arith.truncf %228 : vector<32x32xf32> to vector<32x32xbf16>
    %cst_115 = arith.constant dense<0.000000e+00> : vector<24x32xf32>
    %231 = tpu.matmul %229, %230, %cst_115 {dimension_numbers = #tpu.dot_dimension_numbers<[1], [0], [0], [1], [0, 0, 1, 1], [], []>} : vector<24x32xbf16>, vector<32x32xbf16>, vector<24x32xf32> -> vector<24x32xf32>
    %232 = arith.addf %225, %231 : vector<24x32xf32>
    %233 = arith.addf %219, %232 : vector<24x32xf32>
    %cst_116 = arith.constant 0.999994993 : f32
    %234 = vector.broadcast %cst_116 : f32 to vector<24x32xf32>
    %235 = arith.mulf %233, %234 : vector<24x32xf32>
    %236 = arith.negf %235 : vector<24x32xf32>
    %237 = math.exp %236 : vector<24x32xf32>
    %cst_117 = arith.constant 1.000000e+00 : f32
    %238 = vector.broadcast %cst_117 : f32 to vector<24x32xf32>
    %239 = arith.addf %238, %237 : vector<24x32xf32>
    %240 = arith.divf %238, %239 : vector<24x32xf32>
    %241 = arith.mulf %118, %240 : vector<24x32xf32>
    %c0_118 = arith.constant 0 : index
    %c0_119 = arith.constant 0 : index
    %c0_120 = arith.constant 0 : index
    %242 = vector.load %arg12[%c0_118, %c0_119, %c0_120] : memref<2x32x8xf32, #tpu.memory_space<vmem>>, vector<1x32x8xf32>
    %243 = vector.shape_cast %242 : vector<1x32x8xf32> to vector<32x8xf32>
    %244 = arith.truncf %241 : vector<24x32xf32> to vector<24x32xbf16>
    %245 = arith.truncf %243 : vector<32x8xf32> to vector<32x8xbf16>
    %cst_121 = arith.constant dense<0.000000e+00> : vector<24x8xf32>
    %246 = tpu.matmul %244, %245, %cst_121 {dimension_numbers = #tpu.dot_dimension_numbers<[1], [0], [0], [1], [0, 0, 1, 1], [], []>} : vector<24x32xbf16>, vector<32x8xbf16>, vector<24x8xf32> -> vector<24x8xf32>
    %247 = arith.mulf %125, %240 : vector<24x32xf32>
    %c1_122 = arith.constant 1 : index
    %c0_123 = arith.constant 0 : index
    %c0_124 = arith.constant 0 : index
    %248 = vector.load %arg12[%c1_122, %c0_123, %c0_124] : memref<2x32x8xf32, #tpu.memory_space<vmem>>, vector<1x32x8xf32>
    %249 = vector.shape_cast %248 : vector<1x32x8xf32> to vector<32x8xf32>
    %250 = arith.truncf %247 : vector<24x32xf32> to vector<24x32xbf16>
    %251 = arith.truncf %249 : vector<32x8xf32> to vector<32x8xbf16>
    %cst_125 = arith.constant dense<0.000000e+00> : vector<24x8xf32>
    %252 = tpu.matmul %250, %251, %cst_125 {dimension_numbers = #tpu.dot_dimension_numbers<[1], [0], [0], [1], [0, 0, 1, 1], [], []>} : vector<24x32xbf16>, vector<32x8xbf16>, vector<24x8xf32> -> vector<24x8xf32>
    %253 = arith.addf %246, %252 : vector<24x8xf32>
    %c0_126 = arith.constant 0 : index
    %c0_127 = arith.constant 0 : index
    %254 = vector.load %arg13[%c0_126, %c0_127] : memref<1x8xf32, #tpu.memory_space<vmem>>, vector<1x8xf32>
    %255 = vector.broadcast %254 : vector<1x8xf32> to vector<24x8xf32>
    %256 = arith.addf %253, %255 : vector<24x8xf32>
    %257 = vector.shape_cast %51 : vector<16x16xf32> to vector<1x16x16xf32>
    %cst_128 = arith.constant dense<0.000000e+00> : vector<1xf32>
    %258 = vector.multi_reduction <add>, %257, %cst_128 [1, 2] : vector<1x16x16xf32> to vector<1xf32>
    %259 = vector.shape_cast %258 : vector<1xf32> to vector<1x1x1xf32>
    %260 = vector.extract %259[0, 0, 0] : f32 from vector<1x1x1xf32>
    %cst_129 = arith.constant 2.560000e+02 : f32
    %261 = arith.divf %260, %cst_129 : f32
    %262 = vector.shape_cast %61 : vector<16x16xf32> to vector<1x16x16xf32>
    %cst_130 = arith.constant dense<0.000000e+00> : vector<1xf32>
    %263 = vector.multi_reduction <add>, %262, %cst_130 [1, 2] : vector<1x16x16xf32> to vector<1xf32>
    %264 = vector.shape_cast %263 : vector<1xf32> to vector<1x1x1xf32>
    %265 = vector.extract %264[0, 0, 0] : f32 from vector<1x1x1xf32>
    %cst_131 = arith.constant 2.560000e+02 : f32
    %266 = arith.divf %265, %cst_131 : f32
    %267 = vector.shape_cast %51 : vector<16x16xf32> to vector<1x16x16xf32>
    %cst_132 = arith.constant dense<0xFF800000> : vector<1xf32>
    %268 = vector.multi_reduction <maximumf>, %267, %cst_132 [1, 2] : vector<1x16x16xf32> to vector<1xf32>
    %269 = vector.shape_cast %268 : vector<1xf32> to vector<1x1x1xf32>
    %270 = vector.extract %269[0, 0, 0] : f32 from vector<1x1x1xf32>
    %271 = vector.shape_cast %61 : vector<16x16xf32> to vector<1x16x16xf32>
    %cst_133 = arith.constant dense<0xFF800000> : vector<1xf32>
    %272 = vector.multi_reduction <maximumf>, %271, %cst_133 [1, 2] : vector<1x16x16xf32> to vector<1xf32>
    %273 = vector.shape_cast %272 : vector<1xf32> to vector<1x1x1xf32>
    %274 = vector.extract %273[0, 0, 0] : f32 from vector<1x1x1xf32>
    %c0_134 = arith.constant 0 : index
    %275 = memref.load %arg21[%c0_134] : memref<1xf32, #tpu.memory_space<smem>>
    %c0_135 = arith.constant 0 : index
    %276 = memref.load %arg20[%c0_135] : memref<2xf32, #tpu.memory_space<smem>>
    %277 = arith.mulf %261, %276 : f32
    %278 = arith.addf %275, %277 : f32
    %c1_136 = arith.constant 1 : index
    %279 = memref.load %arg20[%c1_136] : memref<2xf32, #tpu.memory_space<smem>>
    %280 = arith.mulf %266, %279 : f32
    %281 = arith.addf %278, %280 : f32
    %cst_137 = arith.constant 0.000000e+00 : f32
    %282 = arith.maximumf %281, %cst_137 : f32
    %c0_138 = arith.constant 0 : index
    %283 = memref.load %arg23[%c0_138] : memref<2xf32, #tpu.memory_space<smem>>
    %c0_139 = arith.constant 0 : index
    %284 = memref.load %arg22[%c0_139] : memref<2xf32, #tpu.memory_space<smem>>
    %285 = arith.mulf %282, %284 : f32
    %286 = arith.addf %283, %285 : f32
    %c1_140 = arith.constant 1 : index
    %287 = memref.load %arg23[%c1_140] : memref<2xf32, #tpu.memory_space<smem>>
    %c1_141 = arith.constant 1 : index
    %288 = memref.load %arg22[%c1_141] : memref<2xf32, #tpu.memory_space<smem>>
    %289 = arith.mulf %282, %288 : f32
    %290 = arith.addf %287, %289 : f32
    %c0_142 = arith.constant 0 : index
    %291 = memref.load %arg21[%c0_142] : memref<1xf32, #tpu.memory_space<smem>>
    %c0_143 = arith.constant 0 : index
    %292 = memref.load %arg20[%c0_143] : memref<2xf32, #tpu.memory_space<smem>>
    %293 = arith.mulf %270, %292 : f32
    %294 = arith.addf %291, %293 : f32
    %c1_144 = arith.constant 1 : index
    %295 = memref.load %arg20[%c1_144] : memref<2xf32, #tpu.memory_space<smem>>
    %296 = arith.mulf %274, %295 : f32
    %297 = arith.addf %294, %296 : f32
    %cst_145 = arith.constant 0.000000e+00 : f32
    %298 = arith.maximumf %297, %cst_145 : f32
    %c0_146 = arith.constant 0 : index
    %299 = memref.load %arg23[%c0_146] : memref<2xf32, #tpu.memory_space<smem>>
    %c0_147 = arith.constant 0 : index
    %300 = memref.load %arg22[%c0_147] : memref<2xf32, #tpu.memory_space<smem>>
    %301 = arith.mulf %298, %300 : f32
    %302 = arith.addf %299, %301 : f32
    %c1_148 = arith.constant 1 : index
    %303 = memref.load %arg23[%c1_148] : memref<2xf32, #tpu.memory_space<smem>>
    %c1_149 = arith.constant 1 : index
    %304 = memref.load %arg22[%c1_149] : memref<2xf32, #tpu.memory_space<smem>>
    %305 = arith.mulf %298, %304 : f32
    %306 = arith.addf %303, %305 : f32
    %307 = arith.addf %286, %302 : f32
    %308 = arith.negf %307 : f32
    %309 = math.exp %308 : f32
    %cst_150 = arith.constant 1.000000e+00 : f32
    %310 = arith.addf %cst_150, %309 : f32
    %311 = arith.divf %cst_150, %310 : f32
    %312 = vector.broadcast %311 : f32 to vector<16x16xf32>
    %313 = arith.mulf %51, %312 : vector<16x16xf32>
    %314 = arith.addf %290, %306 : f32
    %315 = arith.negf %314 : f32
    %316 = math.exp %315 : f32
    %cst_151 = arith.constant 1.000000e+00 : f32
    %317 = arith.addf %cst_151, %316 : f32
    %318 = arith.divf %cst_151, %317 : f32
    %319 = vector.broadcast %318 : f32 to vector<16x16xf32>
    %320 = arith.mulf %61, %319 : vector<16x16xf32>
    %321 = arith.maximumf %313, %320 : vector<16x16xf32>
    %322 = arith.addf %313, %320 : vector<16x16xf32>
    %cst_152 = arith.constant 5.000000e-01 : f32
    %323 = vector.broadcast %cst_152 : f32 to vector<16x16xf32>
    %324 = arith.mulf %322, %323 : vector<16x16xf32>
    %c0_153 = arith.constant 0 : index
    %c0_154 = arith.constant 0 : index
    %325 = vector.load %arg9[%c0_153, %c0_154] : memref<22x16xf32, #tpu.memory_space<vmem>>, vector<22x16xf32>
    %326 = arith.truncf %325 : vector<22x16xf32> to vector<22x16xbf16>
    %327 = arith.truncf %321 : vector<16x16xf32> to vector<16x16xbf16>
    %cst_155 = arith.constant dense<0.000000e+00> : vector<22x16xf32>
    %328 = tpu.matmul %326, %327, %cst_155 {dimension_numbers = #tpu.dot_dimension_numbers<[1], [0], [0], [1], [0, 0, 1, 1], [], []>} : vector<22x16xbf16>, vector<16x16xbf16>, vector<22x16xf32> -> vector<22x16xf32>
    %329 = arith.truncf %325 : vector<22x16xf32> to vector<22x16xbf16>
    %330 = arith.truncf %324 : vector<16x16xf32> to vector<16x16xbf16>
    %cst_156 = arith.constant dense<0.000000e+00> : vector<22x16xf32>
    %331 = tpu.matmul %329, %330, %cst_156 {dimension_numbers = #tpu.dot_dimension_numbers<[1], [0], [0], [1], [0, 0, 1, 1], [], []>} : vector<22x16xbf16>, vector<16x16xbf16>, vector<22x16xf32> -> vector<22x16xf32>
    %332 = vector.extract_strided_slice %328 {offsets = [0, 0], sizes = [16, 16], strides = [1, 1]} : vector<22x16xf32> to vector<16x16xf32>
    %c0_157 = arith.constant 0 : index
    %c0_158 = arith.constant 0 : index
    %c0_159 = arith.constant 0 : index
    %333 = vector.load %arg11[%c0_157, %c0_158, %c0_159] : memref<14x16x16xf32, #tpu.memory_space<vmem>>, vector<1x16x16xf32>
    %334 = vector.shape_cast %333 : vector<1x16x16xf32> to vector<16x16xf32>
    %335 = arith.truncf %332 : vector<16x16xf32> to vector<16x16xbf16>
    %336 = arith.truncf %334 : vector<16x16xf32> to vector<16x16xbf16>
    %cst_160 = arith.constant dense<0.000000e+00> : vector<16x16xf32>
    %337 = tpu.matmul %335, %336, %cst_160 {dimension_numbers = #tpu.dot_dimension_numbers<[1], [0], [0], [1], [0, 0, 1, 1], [], []>} : vector<16x16xbf16>, vector<16x16xbf16>, vector<16x16xf32> -> vector<16x16xf32>
    %338 = vector.extract_strided_slice %331 {offsets = [0, 0], sizes = [16, 16], strides = [1, 1]} : vector<22x16xf32> to vector<16x16xf32>
    %c7_161 = arith.constant 7 : index
    %c0_162 = arith.constant 0 : index
    %c0_163 = arith.constant 0 : index
    %339 = vector.load %arg11[%c7_161, %c0_162, %c0_163] : memref<14x16x16xf32, #tpu.memory_space<vmem>>, vector<1x16x16xf32>
    %340 = vector.shape_cast %339 : vector<1x16x16xf32> to vector<16x16xf32>
    %341 = arith.truncf %338 : vector<16x16xf32> to vector<16x16xbf16>
    %342 = arith.truncf %340 : vector<16x16xf32> to vector<16x16xbf16>
    %cst_164 = arith.constant dense<0.000000e+00> : vector<16x16xf32>
    %343 = tpu.matmul %341, %342, %cst_164 {dimension_numbers = #tpu.dot_dimension_numbers<[1], [0], [0], [1], [0, 0, 1, 1], [], []>} : vector<16x16xbf16>, vector<16x16xbf16>, vector<16x16xf32> -> vector<16x16xf32>
    %344 = arith.addf %337, %343 : vector<16x16xf32>
    %345 = vector.extract_strided_slice %328 {offsets = [1, 0], sizes = [16, 16], strides = [1, 1]} : vector<22x16xf32> to vector<16x16xf32>
    %c1_165 = arith.constant 1 : index
    %c0_166 = arith.constant 0 : index
    %c0_167 = arith.constant 0 : index
    %346 = vector.load %arg11[%c1_165, %c0_166, %c0_167] : memref<14x16x16xf32, #tpu.memory_space<vmem>>, vector<1x16x16xf32>
    %347 = vector.shape_cast %346 : vector<1x16x16xf32> to vector<16x16xf32>
    %348 = arith.truncf %345 : vector<16x16xf32> to vector<16x16xbf16>
    %349 = arith.truncf %347 : vector<16x16xf32> to vector<16x16xbf16>
    %cst_168 = arith.constant dense<0.000000e+00> : vector<16x16xf32>
    %350 = tpu.matmul %348, %349, %cst_168 {dimension_numbers = #tpu.dot_dimension_numbers<[1], [0], [0], [1], [0, 0, 1, 1], [], []>} : vector<16x16xbf16>, vector<16x16xbf16>, vector<16x16xf32> -> vector<16x16xf32>
    %351 = vector.extract_strided_slice %331 {offsets = [1, 0], sizes = [16, 16], strides = [1, 1]} : vector<22x16xf32> to vector<16x16xf32>
    %c8_169 = arith.constant 8 : index
    %c0_170 = arith.constant 0 : index
    %c0_171 = arith.constant 0 : index
    %352 = vector.load %arg11[%c8_169, %c0_170, %c0_171] : memref<14x16x16xf32, #tpu.memory_space<vmem>>, vector<1x16x16xf32>
    %353 = vector.shape_cast %352 : vector<1x16x16xf32> to vector<16x16xf32>
    %354 = arith.truncf %351 : vector<16x16xf32> to vector<16x16xbf16>
    %355 = arith.truncf %353 : vector<16x16xf32> to vector<16x16xbf16>
    %cst_172 = arith.constant dense<0.000000e+00> : vector<16x16xf32>
    %356 = tpu.matmul %354, %355, %cst_172 {dimension_numbers = #tpu.dot_dimension_numbers<[1], [0], [0], [1], [0, 0, 1, 1], [], []>} : vector<16x16xbf16>, vector<16x16xbf16>, vector<16x16xf32> -> vector<16x16xf32>
    %357 = arith.addf %350, %356 : vector<16x16xf32>
    %358 = arith.addf %344, %357 : vector<16x16xf32>
    %359 = vector.extract_strided_slice %328 {offsets = [2, 0], sizes = [16, 16], strides = [1, 1]} : vector<22x16xf32> to vector<16x16xf32>
    %c2_173 = arith.constant 2 : index
    %c0_174 = arith.constant 0 : index
    %c0_175 = arith.constant 0 : index
    %360 = vector.load %arg11[%c2_173, %c0_174, %c0_175] : memref<14x16x16xf32, #tpu.memory_space<vmem>>, vector<1x16x16xf32>
    %361 = vector.shape_cast %360 : vector<1x16x16xf32> to vector<16x16xf32>
    %362 = arith.truncf %359 : vector<16x16xf32> to vector<16x16xbf16>
    %363 = arith.truncf %361 : vector<16x16xf32> to vector<16x16xbf16>
    %cst_176 = arith.constant dense<0.000000e+00> : vector<16x16xf32>
    %364 = tpu.matmul %362, %363, %cst_176 {dimension_numbers = #tpu.dot_dimension_numbers<[1], [0], [0], [1], [0, 0, 1, 1], [], []>} : vector<16x16xbf16>, vector<16x16xbf16>, vector<16x16xf32> -> vector<16x16xf32>
    %365 = vector.extract_strided_slice %331 {offsets = [2, 0], sizes = [16, 16], strides = [1, 1]} : vector<22x16xf32> to vector<16x16xf32>
    %c9_177 = arith.constant 9 : index
    %c0_178 = arith.constant 0 : index
    %c0_179 = arith.constant 0 : index
    %366 = vector.load %arg11[%c9_177, %c0_178, %c0_179] : memref<14x16x16xf32, #tpu.memory_space<vmem>>, vector<1x16x16xf32>
    %367 = vector.shape_cast %366 : vector<1x16x16xf32> to vector<16x16xf32>
    %368 = arith.truncf %365 : vector<16x16xf32> to vector<16x16xbf16>
    %369 = arith.truncf %367 : vector<16x16xf32> to vector<16x16xbf16>
    %cst_180 = arith.constant dense<0.000000e+00> : vector<16x16xf32>
    %370 = tpu.matmul %368, %369, %cst_180 {dimension_numbers = #tpu.dot_dimension_numbers<[1], [0], [0], [1], [0, 0, 1, 1], [], []>} : vector<16x16xbf16>, vector<16x16xbf16>, vector<16x16xf32> -> vector<16x16xf32>
    %371 = arith.addf %364, %370 : vector<16x16xf32>
    %372 = arith.addf %358, %371 : vector<16x16xf32>
    %373 = vector.extract_strided_slice %328 {offsets = [3, 0], sizes = [16, 16], strides = [1, 1]} : vector<22x16xf32> to vector<16x16xf32>
    %c3_181 = arith.constant 3 : index
    %c0_182 = arith.constant 0 : index
    %c0_183 = arith.constant 0 : index
    %374 = vector.load %arg11[%c3_181, %c0_182, %c0_183] : memref<14x16x16xf32, #tpu.memory_space<vmem>>, vector<1x16x16xf32>
    %375 = vector.shape_cast %374 : vector<1x16x16xf32> to vector<16x16xf32>
    %376 = arith.truncf %373 : vector<16x16xf32> to vector<16x16xbf16>
    %377 = arith.truncf %375 : vector<16x16xf32> to vector<16x16xbf16>
    %cst_184 = arith.constant dense<0.000000e+00> : vector<16x16xf32>
    %378 = tpu.matmul %376, %377, %cst_184 {dimension_numbers = #tpu.dot_dimension_numbers<[1], [0], [0], [1], [0, 0, 1, 1], [], []>} : vector<16x16xbf16>, vector<16x16xbf16>, vector<16x16xf32> -> vector<16x16xf32>
    %379 = vector.extract_strided_slice %331 {offsets = [3, 0], sizes = [16, 16], strides = [1, 1]} : vector<22x16xf32> to vector<16x16xf32>
    %c10_185 = arith.constant 10 : index
    %c0_186 = arith.constant 0 : index
    %c0_187 = arith.constant 0 : index
    %380 = vector.load %arg11[%c10_185, %c0_186, %c0_187] : memref<14x16x16xf32, #tpu.memory_space<vmem>>, vector<1x16x16xf32>
    %381 = vector.shape_cast %380 : vector<1x16x16xf32> to vector<16x16xf32>
    %382 = arith.truncf %379 : vector<16x16xf32> to vector<16x16xbf16>
    %383 = arith.truncf %381 : vector<16x16xf32> to vector<16x16xbf16>
    %cst_188 = arith.constant dense<0.000000e+00> : vector<16x16xf32>
    %384 = tpu.matmul %382, %383, %cst_188 {dimension_numbers = #tpu.dot_dimension_numbers<[1], [0], [0], [1], [0, 0, 1, 1], [], []>} : vector<16x16xbf16>, vector<16x16xbf16>, vector<16x16xf32> -> vector<16x16xf32>
    %385 = arith.addf %378, %384 : vector<16x16xf32>
    %386 = arith.addf %372, %385 : vector<16x16xf32>
    %387 = vector.extract_strided_slice %328 {offsets = [4, 0], sizes = [16, 16], strides = [1, 1]} : vector<22x16xf32> to vector<16x16xf32>
    %c4_189 = arith.constant 4 : index
    %c0_190 = arith.constant 0 : index
    %c0_191 = arith.constant 0 : index
    %388 = vector.load %arg11[%c4_189, %c0_190, %c0_191] : memref<14x16x16xf32, #tpu.memory_space<vmem>>, vector<1x16x16xf32>
    %389 = vector.shape_cast %388 : vector<1x16x16xf32> to vector<16x16xf32>
    %390 = arith.truncf %387 : vector<16x16xf32> to vector<16x16xbf16>
    %391 = arith.truncf %389 : vector<16x16xf32> to vector<16x16xbf16>
    %cst_192 = arith.constant dense<0.000000e+00> : vector<16x16xf32>
    %392 = tpu.matmul %390, %391, %cst_192 {dimension_numbers = #tpu.dot_dimension_numbers<[1], [0], [0], [1], [0, 0, 1, 1], [], []>} : vector<16x16xbf16>, vector<16x16xbf16>, vector<16x16xf32> -> vector<16x16xf32>
    %393 = vector.extract_strided_slice %331 {offsets = [4, 0], sizes = [16, 16], strides = [1, 1]} : vector<22x16xf32> to vector<16x16xf32>
    %c11_193 = arith.constant 11 : index
    %c0_194 = arith.constant 0 : index
    %c0_195 = arith.constant 0 : index
    %394 = vector.load %arg11[%c11_193, %c0_194, %c0_195] : memref<14x16x16xf32, #tpu.memory_space<vmem>>, vector<1x16x16xf32>
    %395 = vector.shape_cast %394 : vector<1x16x16xf32> to vector<16x16xf32>
    %396 = arith.truncf %393 : vector<16x16xf32> to vector<16x16xbf16>
    %397 = arith.truncf %395 : vector<16x16xf32> to vector<16x16xbf16>
    %cst_196 = arith.constant dense<0.000000e+00> : vector<16x16xf32>
    %398 = tpu.matmul %396, %397, %cst_196 {dimension_numbers = #tpu.dot_dimension_numbers<[1], [0], [0], [1], [0, 0, 1, 1], [], []>} : vector<16x16xbf16>, vector<16x16xbf16>, vector<16x16xf32> -> vector<16x16xf32>
    %399 = arith.addf %392, %398 : vector<16x16xf32>
    %400 = arith.addf %386, %399 : vector<16x16xf32>
    %401 = vector.extract_strided_slice %328 {offsets = [5, 0], sizes = [16, 16], strides = [1, 1]} : vector<22x16xf32> to vector<16x16xf32>
    %c5_197 = arith.constant 5 : index
    %c0_198 = arith.constant 0 : index
    %c0_199 = arith.constant 0 : index
    %402 = vector.load %arg11[%c5_197, %c0_198, %c0_199] : memref<14x16x16xf32, #tpu.memory_space<vmem>>, vector<1x16x16xf32>
    %403 = vector.shape_cast %402 : vector<1x16x16xf32> to vector<16x16xf32>
    %404 = arith.truncf %401 : vector<16x16xf32> to vector<16x16xbf16>
    %405 = arith.truncf %403 : vector<16x16xf32> to vector<16x16xbf16>
    %cst_200 = arith.constant dense<0.000000e+00> : vector<16x16xf32>
    %406 = tpu.matmul %404, %405, %cst_200 {dimension_numbers = #tpu.dot_dimension_numbers<[1], [0], [0], [1], [0, 0, 1, 1], [], []>} : vector<16x16xbf16>, vector<16x16xbf16>, vector<16x16xf32> -> vector<16x16xf32>
    %407 = vector.extract_strided_slice %331 {offsets = [5, 0], sizes = [16, 16], strides = [1, 1]} : vector<22x16xf32> to vector<16x16xf32>
    %c12_201 = arith.constant 12 : index
    %c0_202 = arith.constant 0 : index
    %c0_203 = arith.constant 0 : index
    %408 = vector.load %arg11[%c12_201, %c0_202, %c0_203] : memref<14x16x16xf32, #tpu.memory_space<vmem>>, vector<1x16x16xf32>
    %409 = vector.shape_cast %408 : vector<1x16x16xf32> to vector<16x16xf32>
    %410 = arith.truncf %407 : vector<16x16xf32> to vector<16x16xbf16>
    %411 = arith.truncf %409 : vector<16x16xf32> to vector<16x16xbf16>
    %cst_204 = arith.constant dense<0.000000e+00> : vector<16x16xf32>
    %412 = tpu.matmul %410, %411, %cst_204 {dimension_numbers = #tpu.dot_dimension_numbers<[1], [0], [0], [1], [0, 0, 1, 1], [], []>} : vector<16x16xbf16>, vector<16x16xbf16>, vector<16x16xf32> -> vector<16x16xf32>
    %413 = arith.addf %406, %412 : vector<16x16xf32>
    %414 = arith.addf %400, %413 : vector<16x16xf32>
    %415 = vector.extract_strided_slice %328 {offsets = [6, 0], sizes = [16, 16], strides = [1, 1]} : vector<22x16xf32> to vector<16x16xf32>
    %c6_205 = arith.constant 6 : index
    %c0_206 = arith.constant 0 : index
    %c0_207 = arith.constant 0 : index
    %416 = vector.load %arg11[%c6_205, %c0_206, %c0_207] : memref<14x16x16xf32, #tpu.memory_space<vmem>>, vector<1x16x16xf32>
    %417 = vector.shape_cast %416 : vector<1x16x16xf32> to vector<16x16xf32>
    %418 = arith.truncf %415 : vector<16x16xf32> to vector<16x16xbf16>
    %419 = arith.truncf %417 : vector<16x16xf32> to vector<16x16xbf16>
    %cst_208 = arith.constant dense<0.000000e+00> : vector<16x16xf32>
    %420 = tpu.matmul %418, %419, %cst_208 {dimension_numbers = #tpu.dot_dimension_numbers<[1], [0], [0], [1], [0, 0, 1, 1], [], []>} : vector<16x16xbf16>, vector<16x16xbf16>, vector<16x16xf32> -> vector<16x16xf32>
    %421 = vector.extract_strided_slice %331 {offsets = [6, 0], sizes = [16, 16], strides = [1, 1]} : vector<22x16xf32> to vector<16x16xf32>
    %c13_209 = arith.constant 13 : index
    %c0_210 = arith.constant 0 : index
    %c0_211 = arith.constant 0 : index
    %422 = vector.load %arg11[%c13_209, %c0_210, %c0_211] : memref<14x16x16xf32, #tpu.memory_space<vmem>>, vector<1x16x16xf32>
    %423 = vector.shape_cast %422 : vector<1x16x16xf32> to vector<16x16xf32>
    %424 = arith.truncf %421 : vector<16x16xf32> to vector<16x16xbf16>
    %425 = arith.truncf %423 : vector<16x16xf32> to vector<16x16xbf16>
    %cst_212 = arith.constant dense<0.000000e+00> : vector<16x16xf32>
    %426 = tpu.matmul %424, %425, %cst_212 {dimension_numbers = #tpu.dot_dimension_numbers<[1], [0], [0], [1], [0, 0, 1, 1], [], []>} : vector<16x16xbf16>, vector<16x16xbf16>, vector<16x16xf32> -> vector<16x16xf32>
    %427 = arith.addf %420, %426 : vector<16x16xf32>
    %428 = arith.addf %414, %427 : vector<16x16xf32>
    %cst_213 = arith.constant 0.999994993 : f32
    %429 = vector.broadcast %cst_213 : f32 to vector<16x16xf32>
    %430 = arith.mulf %428, %429 : vector<16x16xf32>
    %431 = arith.negf %430 : vector<16x16xf32>
    %432 = math.exp %431 : vector<16x16xf32>
    %cst_214 = arith.constant 1.000000e+00 : f32
    %433 = vector.broadcast %cst_214 : f32 to vector<16x16xf32>
    %434 = arith.addf %433, %432 : vector<16x16xf32>
    %435 = arith.divf %433, %434 : vector<16x16xf32>
    %436 = arith.mulf %313, %435 : vector<16x16xf32>
    %c0_215 = arith.constant 0 : index
    %c0_216 = arith.constant 0 : index
    %c0_217 = arith.constant 0 : index
    %437 = vector.load %arg14[%c0_215, %c0_216, %c0_217] : memref<2x16x8xf32, #tpu.memory_space<vmem>>, vector<1x16x8xf32>
    %438 = vector.shape_cast %437 : vector<1x16x8xf32> to vector<16x8xf32>
    %439 = arith.truncf %436 : vector<16x16xf32> to vector<16x16xbf16>
    %440 = arith.truncf %438 : vector<16x8xf32> to vector<16x8xbf16>
    %cst_218 = arith.constant dense<0.000000e+00> : vector<16x8xf32>
    %441 = tpu.matmul %439, %440, %cst_218 {dimension_numbers = #tpu.dot_dimension_numbers<[1], [0], [0], [1], [0, 0, 1, 1], [], []>} : vector<16x16xbf16>, vector<16x8xbf16>, vector<16x8xf32> -> vector<16x8xf32>
    %442 = arith.mulf %320, %435 : vector<16x16xf32>
    %c1_219 = arith.constant 1 : index
    %c0_220 = arith.constant 0 : index
    %c0_221 = arith.constant 0 : index
    %443 = vector.load %arg14[%c1_219, %c0_220, %c0_221] : memref<2x16x8xf32, #tpu.memory_space<vmem>>, vector<1x16x8xf32>
    %444 = vector.shape_cast %443 : vector<1x16x8xf32> to vector<16x8xf32>
    %445 = arith.truncf %442 : vector<16x16xf32> to vector<16x16xbf16>
    %446 = arith.truncf %444 : vector<16x8xf32> to vector<16x8xbf16>
    %cst_222 = arith.constant dense<0.000000e+00> : vector<16x8xf32>
    %447 = tpu.matmul %445, %446, %cst_222 {dimension_numbers = #tpu.dot_dimension_numbers<[1], [0], [0], [1], [0, 0, 1, 1], [], []>} : vector<16x16xbf16>, vector<16x8xbf16>, vector<16x8xf32> -> vector<16x8xf32>
    %448 = arith.addf %441, %447 : vector<16x8xf32>
    %c0_223 = arith.constant 0 : index
    %c0_224 = arith.constant 0 : index
    %449 = vector.load %arg15[%c0_223, %c0_224] : memref<1x8xf32, #tpu.memory_space<vmem>>, vector<1x8xf32>
    %450 = vector.broadcast %449 : vector<1x8xf32> to vector<16x8xf32>
    %451 = arith.addf %448, %450 : vector<16x8xf32>
    %c0_225 = arith.constant 0 : index
    %c0_226 = arith.constant 0 : index
    %452 = vector.load %arg25[%c0_225, %c0_226] : memref<24x8xf32, #tpu.memory_space<vmem>>, vector<24x8xf32>
    tpu.vector_store %arg25[%c0_225, %c0_226], %256 {strides = array<i32>} : memref<24x8xf32, #tpu.memory_space<vmem>>, vector<24x8xf32>,
    %c0_227 = arith.constant 0 : index
    %c0_228 = arith.constant 0 : index
    %453 = vector.load %arg26[%c0_227, %c0_228] : memref<16x8xf32, #tpu.memory_space<vmem>>, vector<16x8xf32>
    tpu.vector_store %arg26[%c0_227, %c0_228], %451 {strides = array<i32>} : memref<16x8xf32, #tpu.memory_space<vmem>>, vector<16x8xf32>,
    %454 = arith.truncf %256 : vector<24x8xf32> to vector<24x8xbf16>
    %455 = arith.truncf %451 : vector<16x8xf32> to vector<16x8xbf16>
    %cst_229 = arith.constant dense<0.000000e+00> : vector<24x16xf32>
    %456 = tpu.matmul %454, %455, %cst_229 {dimension_numbers = #tpu.dot_dimension_numbers<[1], [1], [0], [0], [0, 0, 1, 0], [], []>} : vector<24x8xbf16>, vector<16x8xbf16>, vector<24x16xf32> -> vector<24x16xf32>
    %c0_230 = arith.constant 0 : index
    %c0_231 = arith.constant 0 : index
    %457 = vector.load %arg24[%c0_230, %c0_231] : memref<24x16xf32, #tpu.memory_space<vmem>>, vector<24x16xf32>
    tpu.vector_store %arg24[%c0_230, %c0_231], %456 {strides = array<i32>} : memref<24x16xf32, #tpu.memory_space<vmem>>, vector<24x16xf32>,
    return
  }
}

</mosaic_0001>

<bundles_post_ra>
// kernel: tpu_custom_call.1
= control target key start
LH: loop header
LB: loop body
LE: loop exit
PB: predicated region body
PF: predicated region fallthrough
CT: control target
= control target key end

     0   :  { %s3281_s0 = inlined_call_operand.vmem [shape: f32[24,32], index: 0, kind: input, shape index: {}]   ;;  %s3282_s1 = inlined_call_operand.hbm [shape: f32[16,16], index: 1, kind: input, shape index: {}]   ;;  %s3283_s2 = inlined_call_operand.vmem [shape: f32[2,24,24], index: 2, kind: input, shape index: {}]   ;;  %s3284_s3 = inlined_call_operand.vmem [shape: f32[2,16,16], index: 3, kind: input, shape index: {}]   ;;  %s3285_s4 = inlined_call_operand.hbm [shape: f32[4,32,32], index: 4, kind: input, shape index: {}]   ;;  %s3286_s5 = inlined_call_operand.vmem [shape: f32[4,1,32], index: 5, kind: input, shape index: {}]   ;;  %s3287_s6 = inlined_call_operand.vmem [shape: f32[4,16,16], index: 6, kind: input, shape index: {}]   ;;  %s3288_s7 = inlined_call_operand.vmem [shape: f32[4,1,16], index: 7, kind: input, shape index: {}]   ;;  %s3289_s8 = inlined_call_operand.vmem [shape: f32[30,24], index: 8, kind: input, shape index: {}]   ;;  %s3290_s9 = inlined_call_operand.vmem [shape: f32[22,16], index: 9, kind: input, shape index: {}]   ;;  %s3291_s10 = inlined_call_operand.hbm [shape: f32[14,32,32], index: 10, kind: input, shape index: {}]   ;;  %s3292_s11 = inlined_call_operand.hbm [shape: f32[14,16,16], index: 11, kind: input, shape index: {}]   ;;  %s3293_s12 = inlined_call_operand.vmem [shape: f32[2,32,8], index: 12, kind: input, shape index: {}]   ;;  %s3294_s13 = inlined_call_operand.vmem [shape: f32[1,8], index: 13, kind: input, shape index: {}]   ;;  %s3295_s14 = inlined_call_operand.vmem [shape: f32[2,16,8], index: 14, kind: input, shape index: {}]   ;;  %s3296_s15 = inlined_call_operand.vmem [shape: f32[1,8], index: 15, kind: input, shape index: {}]   ;;  %s3297_s16 = inlined_call_operand.vmem [shape: f32[2], index: 16, kind: input, shape index: {}]   ;;  %s3298_s17 = inlined_call_operand.<no memory space> [shape: f32[1], index: 17, kind: input, shape index: {}]   ;;  %s3299_s18 = inlined_call_operand.vmem [shape: f32[2], index: 18, kind: input, shape index: {}]   ;;  %s3300_s19 = inlined_call_operand.vmem [shape: f32[2], index: 19, kind: input, shape index: {}]   ;;  %s3301_s20 = inlined_call_operand.vmem [shape: f32[2], index: 20, kind: input, shape index: {}]   ;;  %s3302_s21 = inlined_call_operand.<no memory space> [shape: f32[1], index: 21, kind: input, shape index: {}]   ;;  %s3303_s22 = inlined_call_operand.vmem [shape: f32[2], index: 22, kind: input, shape index: {}]   ;;  %s3304_s23 = inlined_call_operand.vmem [shape: f32[2], index: 23, kind: input, shape index: {}]   ;;  %s3305_s24 = inlined_call_operand.vmem [shape: f32[24,16], index: 24, kind: output, shape index: {0}]   ;;  %s3306_s25 = inlined_call_operand.vmem [shape: f32[24,8], index: 25, kind: output, shape index: {1}]   ;;  %s3307_s26 = inlined_call_operand.vmem [shape: f32[16,8], index: 26, kind: output, shape index: {2}]  }
   0x1   :  { %3320 = sst [smem:[#allocation28_spill]] %s3281_s0 }
   0x2   :  { %3321 = sst [smem:[#allocation29_spill]] %s3282_s1 }
   0x3   :  { %3322 = sst [smem:[#allocation30_spill]] %s3283_s2 }
   0x4   :  { %3323 = sst [smem:[#allocation31_spill]] %s3284_s3 }
   0x5   :  { %3324 = sst [smem:[#allocation32_spill]] %s3285_s4 }
   0x6   :  { %3325 = sst [smem:[#allocation33_spill]] %s3286_s5 }
   0x7   :  { %3326 = sst [smem:[#allocation34_spill]] %s3287_s6 }
   0x8   :  { %3327 = sst [smem:[#allocation35_spill]] %s3288_s7 }
   0x9   :  { %3328 = sst [smem:[#allocation36_spill]] %s3289_s8 }
   0xa   :  { %3329 = sst [smem:[#allocation37_spill]] %s3290_s9 }
   0xb   :  { %3330 = sst [smem:[#allocation38_spill]] %s3291_s10 }
   0xc   :  { %3331 = sst [smem:[#allocation39_spill]] %s3294_s13 }
   0xd   :  { %3332 = sst [smem:[#allocation40_spill]] %s3295_s14 }
   0xe   :  { %3333 = sst [smem:[#allocation41_spill]] %s3296_s15 }
   0xf   :  { %3334 = sst [smem:[#allocation42_spill]] %s3305_s24 }
  0x10   :  { %3335 = sst [smem:[#allocation43_spill]] %s3306_s25 }
  0x11   :  { %3336 = sst [smem:[#allocation44_spill]] %s3307_s26 }
  0x12   :  { %34 = vsyncpa [#allocation5], 0 }
  0x13   :  { %35 = vsyncpa [#allocation8], 0 }
  0x14   :  { %36 = vsyncpa [#allocation11], 0 }
  0x15   :  { %37 = vsyncpa [#allocation6], 0 }
  0x16   :  { %38 = vsyncpa [#allocation14], 0 }
  0x17   :  { %39 = vsyncpa [#allocation17], 0 }
  0x18   :  { %40 = vsyncpa [#allocation20], 0  ;;  %s3337_s7 = sld [smem:[#allocation32_spill]]  ;;  %s2462_s8 = smov [#allocation7]  }
  0x19   :  { %s66_s4 = sshll.u32 %s2462_s8, 4  ;;  %s133_s9 = sshll.u32 %s3299_s18, 4  ;;  %s67_s4 = int_to_ptr.vmem [resolvable:$true] %s66_s4  ;;  %s134_s9 = int_to_ptr.vmem [resolvable:$true] %s133_s9 }
  0x1a   :  { %s2463_s30 = smov 128   ;;  %s2464_s2 = smov 8  }
  0x1b   :  { %s2465_s5 = smov [#allocation13]   ;;  %s151_s1 = sshll.u32 %s3301_s20, 4  ;;  %s152_s1 = int_to_ptr.vmem [resolvable:$true] %s151_s1 }
  0x1c   :  { %136 = dma.vmem_to_smem %s134_s9, 16, %s2465_s5, [#allocation14]  }
  0x1d   :  { %s2466_s29 = smov [#allocation16]   ;;  %s2467_s18 = smov [#allocation4]  }
  0x1e   :  { %s64_s28 = sshll.u32 %s3337_s7, 4  ;;  %s3338_s7 = sld [smem:[#allocation29_spill]]  ;;  %s65_s28 = int_to_ptr.hbm [resolvable:$true] %s64_s28 }
  0x1f   :  { %72 = dma.hbm_to_vmem [thread:$0]  %s65_s28, 2048, %s67_s4, [#allocation8], %s2463_s30, %s2463_s30, %s2464_s2  }
  0x20   :  { %154 = dma.vmem_to_smem %s152_s1, 16, %s2466_s29, [#allocation17]  }
  0x21   :  { %s49_s0 = sshll.u32 %s2467_s18, 4  ;;  %s3339_s28 = sld [smem:[#allocation38_spill]]  ;;  %s50_s0 = int_to_ptr.vmem [resolvable:$true] %s49_s0 }
  0x22   :  { %s100_s5 = sshll.u32 %s3292_s11, 4  ;;  %s2468_s10 = smov [#allocation9]   ;;  %s101_s5 = int_to_ptr.hbm [resolvable:$true] %s100_s5 }
  0x23   :  { %s89_s6 = sshll.u32 %s2468_s10, 4  ;;  %s2469_s24 = smov [#allocation10]   ;;  %s90_s6 = int_to_ptr.vmem [resolvable:$true] %s89_s6 }
  0x24   :  { %s47_s8 = sshll.u32 %s3338_s7, 4  ;;  %s102_s26 = sshll.u32 %s2469_s24, 4  ;;  %s48_s8 = int_to_ptr.hbm [resolvable:$true] %s47_s8  ;;  %s103_s26 = int_to_ptr.vmem [resolvable:$true] %s102_s26 }
  0x25   :  { %55 = dma.hbm_to_vmem [thread:$0]  %s48_s8, 256, %s50_s0, [#allocation5], %s2463_s30, %s2463_s30, %s2464_s2  }
  0x26   :  { %s122_s3 = sshll.u32 %s3297_s16, 4  ;;  %s142_s8 = sshll.u32 %s3300_s19, 4  ;;  %s123_s3 = int_to_ptr.vmem [resolvable:$true] %s122_s3  ;;  %s143_s8 = int_to_ptr.vmem [resolvable:$true] %s142_s8 }
  0x27   :  { %s87_s4 = sshll.u32 %s3339_s28, 4  ;;  %s2470_s29 = smov [#allocation12]   ;;  %s88_s4 = int_to_ptr.hbm [resolvable:$true] %s87_s4 }
  0x28   :  { %95 = dma.hbm_to_vmem [thread:$0]  %s88_s4, 7168, %s90_s6, [#allocation8], %s2463_s30, %s2463_s30, %s2464_s2  }
  0x29   :  { %108 = dma.hbm_to_vmem [thread:$0]  %s101_s5, 3584, %s103_s26, [#allocation11], %s2463_s30, %s2463_s30, %s2464_s2  }
  0x2a   :  { %125 = dma.vmem_to_smem %s123_s3, 16, %s2470_s29, [#allocation6]  }
  0x2b   :  { %s2471_s18 = smov [#allocation15]   ;;  %s162_s4 = sshll.u32 %s3303_s22, 4  ;;  %s163_s4 = int_to_ptr.vmem [resolvable:$true] %s162_s4 }
  0x2c   :  { %145 = dma.vmem_to_smem %s143_s8, 16, %s2471_s18, [#allocation14]  }
  0x2d   :  { %s171_s9 = sshll.u32 %s3304_s23, 4  ;;  %s2472_s10 = smov [#allocation18]   ;;  %s172_s9 = int_to_ptr.vmem [resolvable:$true] %s171_s9 }
  0x2e   :  { %165 = dma.vmem_to_smem %s163_s4, 16, %s2472_s10, [#allocation17]  }
  0x2f   :  { %s2473_s30 = smov [#allocation19]  }
  0x30   :  { %174 = dma.vmem_to_smem %s172_s9, 16, %s2473_s30, [#allocation20]  }
  0x31   :  { %2448 = dma.done.wait [#allocation5], 256  }
  0x32   :  { %2449 = vsyncadd [#allocation5], 4294967040 }
  0x33   :  { %2450 = dma.done.wait [#allocation8], 9216  }
  0x34   :  { %2451 = vsyncadd [#allocation8], 4294958080 }
  0x35   :  { %2452 = dma.done.wait [#allocation11], 3584  }
  0x36   :  { %2453 = vsyncadd [#allocation11], 4294963712 }
  0x37   :  { %2454 = dma.done.wait [#allocation6], 16  }
  0x38   :  { %2455 = vsyncadd [#allocation6], 4294967280 }
  0x39   :  { %2456 = dma.done.wait [#allocation14], 32  }
  0x3a   :  { %2457 = vsyncadd [#allocation14], 4294967264 }
  0x3b   :  { %2458 = dma.done.wait [#allocation17], 32  }
  0x3c   :  { %2459 = vsyncadd [#allocation17], 4294967264 }
  0x3d   :  { %2460 = dma.done.wait [#allocation20], 16  }
  0x3e   :  { %2461 = vsyncadd [#allocation20], 4294967280 }
  0x3f   :  { %215 = sfence }
  0x40   :  { %v227_v0 = vld [vmem:[#allocation7 + $0x10] sm:$0xff]  ;;  %v228_v1 = vld [vmem:[#allocation7 + $0x18] sm:$0xff]  ;;  %v225_v2 = vld [vmem:[#allocation7] sm:$0xff]  ;;  %s3340_s23 = sld [smem:[#allocation28_spill]]  ;;  %vm241_vm0 = vcmask 261120   ;;  %vm280_vm1 = vcmask 1043456  }
  0x41   :  { %v240_v3 = vpack.c.bf16 %v228_v1, %v227_v0  ;;  %v226_v4 = vld [vmem:[#allocation7 + $0x8] sm:$0xff]  ;;  %s3341_s27 = sld [smem:[#allocation34_spill]]  ;;  %v220_v13 = vld [vmem:[#allocation4] sm:$0xff]  ;;  %v221_v15 = vld [vmem:[#allocation4 + $0x8] sm:$0xff]  ;;  %vm374_vm2 = vcmask 130048   ;;  %vm273_vm3 = vcmask 195584  }
  0x42   :  { %v239_v8 = vpack.c.bf16 %v226_v4, %v225_v2  ;;  %v372_v18 = vpack.c.bf16 %v221_v15, %v220_v13  ;;  %s3342_s29 = sld [smem:[#allocation30_spill]]  ;;  %v233_v29 = vld [vmem:[#allocation7 + $0x30] sm:$0xff]  ;;  %v234_v30 = vld [vmem:[#allocation7 + $0x38] sm:$0xff]  ;;  %v231_v32 = vld [vmem:[#allocation7 + $0x20] sm:$0xff]  ;;  %v2474_v0 = vmov 768.0   ;;  %s2475_s0 = smov 0.0  }
  0x43   :  { %254 = vmatpush.bf16.msra.mxu0 %v240_v3  ;;  %2181 = vmatpush.bf16.msra.mxu1 %v240_v3  ;;  %v308_v31 = vpack.c.bf16 %v234_v30, %v233_v29  ;;  %v232_v33 = vld [vmem:[#allocation7 + $0x28] sm:$0xff]  ;;  %s3343_s9 = sld [smem:[#allocation33_spill]]  ;;  %2240 = vrcp.f32 %v2474_v0 }
  0x44   :  { %v307_v34 = vpack.c.bf16 %v232_v33, %v231_v32  ;;  %s3344_s19 = sld [smem:[#allocation31_spill]] }
  0x45   :  { %321 = vmatpush.bf16.msra.mxu2 %v308_v31  ;;  %s3345_s3 = sld [smem:[#allocation35_spill]] }
  0x46   :  { %v217_v5 = vld [vmem:[%s3340_s23] sm:$0xff]  ;;  %v218_v6 = vld [vmem:[%s3340_s23 + $0x8] sm:$0xff]  ;;  %v219_v7 = vld [vmem:[%s3340_s23 + $0x10] sm:$0xff]  ;;  %s2779_s8 = sld [smem:[#allocation12]] }
  0x47   :  { %v237_v9 = vpack.c.bf16 %v218_v6, %v217_v5  ;;  %v238_v10 = vpack.c.bf16 %v219_v7, %v219_v7  ;;  %255 = vmatpush.bf16.msra.mxu0 %v239_v8  ;;  %2182 = vmatpush.bf16.msra.mxu1 %v239_v8  ;;  %v364_v11 = vld [vmem:[%s3341_s27] sm:$0xff]  ;;  %v365_v12 = vld [vmem:[%s3341_s27 + $0x8] sm:$0xff]  ;;  %s2106_s16 = sld [smem:[#allocation12 + $0x1]] }
  0x48   :  { %v373_v14 = vpack.c.bf16 %v365_v12, %v364_v11  ;;  %v222_v21 = vld [vmem:[%s3342_s29] sm:$0xff]  ;;  %v223_v22 = vld [vmem:[%s3342_s29 + $0x8] sm:$0xff]  ;;  %v224_v27 = vld [vmem:[%s3342_s29 + $0x10] sm:$0xff]  ;;  %s2790_s30 = sld [smem:[#allocation13]] }
  0x49   :  { %v2679_v26 = vpack.c.bf16 %v223_v22, %v222_v21  ;;  %v2686_v28 = vpack.c.bf16 %v224_v27, %v224_v27  ;;  %322 = vmatpush.bf16.msra.mxu2 %v307_v34  ;;  %v2234_v37 = vld [vmem:[%s3343_s9] ss:$0 sm:$0xff]  ;;  %v2241_v1 = vpop.eup %2240  ;;  %v2099_v22 = vld [vmem:[%s3341_s27 + $0x10] sm:$0xff]  ;;  %s537_s23 = sld [smem:[#allocation15]] }
  0x4a   :  { %2091 = vmatmul.msk.bf16.vlgmr.msra.gmra.mxu0 %vm241_vm0, %v237_v9  ;;  %2092 = vmatmul.msk.bf16.vlgmr.msra.gmra.mxu1 %vm241_vm0, %v238_v10  ;;  %v362_v38 = vld [vmem:[%s3344_s19] sm:$0xff]  ;;  %v363_v39 = vld [vmem:[%s3344_s19 + $0x8] sm:$0xff]  ;;  %v470_v2 = vmul.f32 768.0, %v2241_v1  ;;  %vm474_vm4 = vweird.f32 %v2241_v1  ;;  %s2798_s19 = sld [smem:[#allocation13 + $0x1]] }
  0x4b   :  { %385 = vmatpush.bf16.msrb.mxu0 %v373_v14  ;;  %v2699_v45 = vpack.c.bf16 %v363_v39, %v362_v38  ;;  %s2107_s1 = sld [smem:[#allocation15 + $0x1]] }
  0x4c   :  { %v471_v3 = vsub.f32 1.0, %v470_v2 }
  0x4e   :  { %v472_v7 = vmul.f32 %v2241_v1, %v471_v3 }
  0x50   :  { %v473_v11 = vadd.f32 %v2241_v1, %v472_v7 }
  0x52   :  { %v475_v14 = vsel %vm474_vm4, %v2241_v1, %v473_v11 }
  0x5a   :  { %2102 = vmatmul.msk.bf16.vlgmr.msrb.gmra.mxu0 %vm374_vm2, %v372_v18 }
  0xc7   :  { %v257_v16 = vpop.f32.mrf.mxu0  ;;  %v262_v17 = vpop.f32.mrf.mxu1 }
  0xc8   :  { %v269_v19 = vpack.c.bf16 %v262_v17, %v262_v17 }
  0xca   :  { %v282_v20 = vsel %vm280_vm1, %v269_v19, 0 }
  0xcb   :  { %290 = vmatpush.bf16.msrb.mxu1 %v282_v20 }
  0xcf   :  { %v259_v23 = vpop.f32.mrf.mxu0  ;;  %v264_v24 = vpop.f32.mrf.mxu1 }
  0xd0   :  { %v268_v25 = vpack.c.bf16 %v259_v23, %v257_v16  ;;  %v2100_v23 = vld [vmem:[%s3341_s27 + $0x18] sm:$0xff]  ;;  %v2235_v24 = vld [vmem:[%s3345_s3] ss:$0 sm:$0xff] }
  0xd2   :  { %291 = vmatpush.bf16.msrb.mxu1 %v268_v25  ;;  %v417_v25 = vpack.c.bf16 %v2100_v23, %v2099_v22  ;;  %v2237_v23 = vld [vmem:[%s3345_s3 + $0x1] ss:$0 sm:$0xff] }
  0xd4   :  { %428 = vmatpush.bf16.msrb.mxu2 %v417_v25 }
  0xd5   :  { %2093 = vmatmul.msk.bf16.vlgmr.msrb.gmra.mxu1 %vm273_vm3, %v2679_v26 }
  0xd7   :  { %v387_v35 = vpop.f32.mrf.mxu0 }
  0xdf   :  { %v389_v41 = vpop.f32.mrf.mxu0 }
  0xe0   :  { %v393_v43 = vpack.c.bf16 %v389_v41, %v387_v35 }
  0xe2   :  { %407 = vmatpush.bf16.msra.mxu1 %v393_v43 }
  0xe5   :  { %2094 = vmatmul.msk.bf16.gmra.mxu1 %vm273_vm3, %v2686_v28 }
  0xf5   :  { %2103 = vmatmul.msk.bf16.vlgmr.msra.gmra.mxu1 %vm374_vm2, %v2699_v45 }
 0x152   :  { %v293_v36 = vpop.f32.mrf.mxu1 }
 0x153   :  { %v294_v40 = vadd.f32 %v2234_v37, %v293_v36 }
 0x155   :  { %v2701_v46 = vmax.f32 %v294_v40, 0.0 }
 0x157   :  { %v501_v54 = vsel %vm241_vm0, %v2701_v46, -inf  ;;  %v455_v55 = vsel %vm241_vm0, %v2701_v46, 0.0 }
 0x15a   :  { %v295_v42 = vpop.f32.mrf.mxu1 }
 0x15b   :  { %v296_v44 = vadd.f32 %v2234_v37, %v295_v42 }
 0x15d   :  { %v2703_v47 = vmax.f32 %v296_v44, 0.0 }
 0x15f   :  { %v305_v48 = vpack.c.bf16 %v2703_v47, %v2701_v46  ;;  %v502_v51 = vsel %vm241_vm0, %v2703_v47, -inf  ;;  %v456_v52 = vsel %vm241_vm0, %v2703_v47, 0.0 }
 0x160   :  { %v504_v56 = vmax.f32 %v501_v54, %v502_v51  ;;  %v457_v57 = vadd.f32 %v456_v52, %v455_v55 }
 0x161   :  { %2095 = vmatmul.msk.bf16.vlgmr.msra.gmra.mxu2 %vm241_vm0, %v305_v48 }
 0x162   :  { %v298_v49 = vpop.f32.mrf.mxu1 }
 0x163   :  { %v299_v50 = vadd.f32 %v2234_v37, %v298_v49  ;;  %v2236_v37 = vld [vmem:[%s3343_s9 + $0x1] ss:$0 sm:$0xff] }
 0x165   :  { %v2714_v53 = vmax.f32 %v299_v50, 0.0 }
 0x167   :  { %v503_v58 = vsel %vm241_vm0, %v2714_v53, -inf  ;;  %v458_v59 = vsel %vm241_vm0, %v2714_v53, 0.0  ;;  %v306_v63 = vpack.c.bf16 %v2714_v53, %v2714_v53 }
 0x168   :  { %v505_v60 = vmax.f32 %v504_v56, %v503_v58  ;;  %v459_v61 = vadd.f32 %v458_v59, %v457_v57 }
 0x16a   :  { %v300_v62 = vpop.f32.mrf.mxu1  ;;  %506 = vmax.xlane.f32.xlu1 %v505_v60  ;;  %460 = vadd.xlane.f32.xlu0 %v459_v61 }
 0x171   :  { %2096 = vmatmul.msk.bf16.gmra.mxu2 %vm241_vm0, %v306_v63 }
 0x172   :  { %v409_v21 = vpop.f32.mrf.mxu1 }
 0x173   :  { %v410_v27 = vadd.f32 %v2235_v24, %v409_v21 }
 0x175   :  { %v2739_v30 = vmax.f32 %v410_v27, 0.0 }
 0x177   :  { %v1356_v32 = vsel %vm374_vm2, %v2739_v30, 0.0  ;;  %v1398_v63 = vsel %vm374_vm2, %v2739_v30, -inf }
 0x17a   :  { %v411_v29 = vpop.f32.mrf.mxu1 }
 0x1dd   :  { %v461_v4 = vpop.xlane.xlu0 %460  ;;  %v507_v2 = vpop.xlane.xlu1 %506 }
 0x1de   :  { %v462_v5 = vrot.slane %v461_v4, 4  ;;  %v508_v3 = vrot.slane %v507_v2, 4 }
 0x1e0   :  { %v463_v6 = vadd.f32 %v462_v5, %v461_v4  ;;  %v509_v4 = vmax.f32 %v507_v2, %v508_v3 }
 0x1e2   :  { %v464_v8 = vrot.slane %v463_v6, 2  ;;  %v510_v5 = vrot.slane %v509_v4, 2 }
 0x1e4   :  { %v324_v9 = vpop.f32.mrf.mxu2  ;;  %v465_v10 = vadd.f32 %v464_v8, %v463_v6 }
 0x1e6   :  { %v466_v12 = vrot.slane %v465_v10, 1 }
 0x1e8   :  { %v467_v13 = vadd.f32 %v466_v12, %v465_v10  ;;  %v511_v12 = vmax.f32 %v509_v4, %v510_v5 }
 0x1ea   :  { %2183 = vpush %v467_v13 }
 0x1eb   :  { %2185 = vpush %v475_v14 }
 0x1ec   :  { %v326_v15 = vpop.f32.mrf.mxu2 }
 0x1ed   :  { %v333_v19 = vpack.c.bf16 %v326_v15, %v324_v9 }
 0x1f4   :  { %v329_v16 = vpop.f32.mrf.mxu2 }
 0x1f5   :  { %v334_v17 = vpack.c.bf16 %v329_v16, %v329_v16 }
 0x1f7   :  { %v339_v18 = vsel %vm280_vm1, %v334_v17, 0  ;;  %v512_v17 = vrot.slane %v511_v12, 1 }
 0x1f8   :  { %347 = vmatpush.bf16.msra.mxu3 %v339_v18 }
 0x1f9   :  { %v513_v21 = vmax.f32 %v511_v12, %v512_v17 }
 0x1fc   :  { %v331_v20 = vpop.f32.mrf.mxu2  ;;  %348 = vmatpush.bf16.msra.mxu3 %v333_v19 }
 0x1ff   :  { %2097 = vmatmul.msk.bf16.vlgmr.msra.gmra.mxu3 %vm273_vm3, %v2679_v26  ;;  %v412_v26 = vadd.f32 %v2235_v24, %v411_v29 }
 0x201   :  { %v2741_v31 = vmax.f32 %v412_v26, 0.0 }
 0x203   :  { %v416_v33 = vpack.c.bf16 %v2741_v31, %v2739_v30  ;;  %v1357_v34 = vsel %vm374_vm2, %v2741_v31, 0.0  ;;  %v1399_v0 = vsel %vm374_vm2, %v2741_v31, -inf }
 0x204   :  { %v1358_v35 = vadd.f32 %v1357_v34, %v1356_v32  ;;  %v1400_v1 = vmax.f32 %v1398_v63, %v1399_v0 }
 0x205   :  { %2104 = vmatmul.msk.bf16.vlgmr.msrb.gmra.mxu2 %vm374_vm2, %v416_v33 }
 0x206   :  { %1359 = vadd.xlane.f32.xlu2 %v1358_v35 }
 0x20f   :  { %2098 = vmatmul.msk.bf16.gmra.mxu3 %vm273_vm3, %v2686_v28 }
 0x21b   :  { %s2184_s7 = spop %2183 }
 0x21c   :  { %s2186_s29 = spop %2185 }
 0x21d   :  { %s477_s28 = smul.f32 %s2186_s29, %s2184_s7 }
 0x21f   :  { %s531_s4 = smul.f32 %s2779_s8, %s477_s28 }
 0x221   :  { %s532_s10 = sadd.f32 %s531_s4, %s3298_s17 }
 0x282   :  { %v350_v36 = vpop.f32.mrf.mxu3 }
 0x283   :  { %v351_v40 = vadd.f32 %v2236_v37, %v350_v36 }
 0x285   :  { %v2757_v42 = vmax.f32 %v351_v40, 0.0 }
 0x287   :  { %v515_v51 = vsel %vm241_vm0, %v2757_v42, -inf  ;;  %v478_v52 = vsel %vm241_vm0, %v2757_v42, 0.0 }
 0x288   :  { %v430_v49 = vpop.f32.mrf.mxu2 }
 0x28a   :  { %v352_v38 = vpop.f32.mrf.mxu3 }
 0x28b   :  { %v353_v39 = vadd.f32 %v2236_v37, %v352_v38 }
 0x28d   :  { %v2755_v41 = vmax.f32 %v353_v39, 0.0 }
 0x28f   :  { %v516_v28 = vsel %vm241_vm0, %v2755_v41, -inf  ;;  %v479_v48 = vsel %vm241_vm0, %v2755_v41, 0.0 }
 0x290   :  { %v518_v54 = vmax.f32 %v515_v51, %v516_v28  ;;  %v480_v55 = vadd.f32 %v479_v48, %v478_v52  ;;  %v432_v61 = vpop.f32.mrf.mxu2 }
 0x291   :  { %v435_v62 = vpack.c.bf16 %v432_v61, %v430_v49  ;;  %v1360_v61 = vpop.xlane.xlu2 %1359 }
 0x292   :  { %v355_v43 = vpop.f32.mrf.mxu3 }
 0x293   :  { %v356_v44 = vadd.f32 %v2236_v37, %v355_v43  ;;  %446 = vmatpush.bf16.msrb.mxu3 %v435_v62  ;;  %v2476_v62 = vmov 256.0  }
 0x295   :  { %v2763_v50 = vmax.f32 %v356_v44, 0.0 }
 0x296   :  { %2105 = vmatmul.msk.bf16.vlgmr.msrb.gmra.mxu3 %vm374_vm2, %v2699_v45 }
 0x297   :  { %v517_v56 = vsel %vm241_vm0, %v2763_v50, -inf  ;;  %v481_v57 = vsel %vm241_vm0, %v2763_v50, 0.0 }
 0x298   :  { %v519_v58 = vmax.f32 %v518_v54, %v517_v56  ;;  %v482_v59 = vadd.f32 %v481_v57, %v480_v55 }
 0x29a   :  { %v357_v60 = vpop.f32.mrf.mxu3  ;;  %520 = vmax.xlane.f32.xlu1 %v519_v58  ;;  %483 = vadd.xlane.f32.xlu0 %v482_v59 }
 0x2a2   :  { %1401 = vmax.xlane.f32.xlu0 %v1400_v1  ;;  %v1361_v1 = vrot.slane %v1360_v61, 4 }
 0x30d   :  { %v521_v6 = vpop.xlane.xlu1 %520  ;;  %v484_v7 = vpop.xlane.xlu0 %483 }
 0x30e   :  { %v522_v8 = vrot.slane %v521_v6, 4  ;;  %v485_v9 = vrot.slane %v484_v7, 4 }
 0x310   :  { %v523_v10 = vmax.f32 %v521_v6, %v522_v8  ;;  %v486_v11 = vadd.f32 %v485_v9, %v484_v7  ;;  %v1362_v8 = vadd.f32 %v1361_v1, %v1360_v61 }
 0x312   :  { %v524_v13 = vrot.slane %v523_v10, 2  ;;  %v487_v14 = vrot.slane %v486_v11, 2 }
 0x314   :  { %v488_v15 = vadd.f32 %v487_v14, %v486_v11  ;;  %v525_v16 = vmax.f32 %v523_v10, %v524_v13  ;;  %v1363_v13 = vrot.slane %v1362_v8, 2 }
 0x315   :  { %v1402_v2 = vpop.xlane.xlu0 %1401 }
 0x316   :  { %v489_v18 = vrot.slane %v488_v15, 1  ;;  %v526_v19 = vrot.slane %v525_v16, 1  ;;  %v1403_v6 = vrot.slane %v1402_v2, 4 }
 0x318   :  { %v490_v45 = vadd.f32 %v489_v18, %v488_v15  ;;  %v527_v20 = vmax.f32 %v525_v16, %v526_v19  ;;  %v1404_v12 = vmax.f32 %v1402_v2, %v1403_v6 }
 0x319   :  { %v448_v22 = vpop.f32.mrf.mxu3 }
 0x31a   :  { %2187 = vpush %v490_v45  ;;  %v449_v24 = vadd.f32 %v2237_v23, %v448_v22  ;;  %v1405_v18 = vrot.slane %v1404_v12, 2 }
 0x31b   :  { %2189 = vpush %v513_v21 }
 0x31c   :  { %2191 = vpush %v527_v20  ;;  %v2785_v25 = vmax.f32 %v449_v24, 0.0  ;;  %v1364_v20 = vadd.f32 %v1363_v13, %v1362_v8 }
 0x31e   :  { %v1377_v32 = vsel %vm374_vm2, %v2785_v25, 0.0  ;;  %v1410_v33 = vsel %vm374_vm2, %v2785_v25, -inf }
 0x321   :  { %v450_v27 = vpop.f32.mrf.mxu3 }
 0x322   :  { %v451_v29 = vadd.f32 %v2237_v23, %v450_v27  ;;  %v1406_v27 = vmax.f32 %v1404_v12, %v1405_v18 }
 0x324   :  { %v2792_v26 = vmax.f32 %v451_v29, 0.0 }
 0x326   :  { %v1378_v34 = vsel %vm374_vm2, %v2792_v26, 0.0  ;;  %v1411_v35 = vsel %vm374_vm2, %v2792_v26, -inf }
 0x327   :  { %v1379_v36 = vadd.f32 %v1378_v34, %v1377_v32  ;;  %v1412_v37 = vmax.f32 %v1410_v33, %v1411_v35  ;;  %v1365_v33 = vrot.slane %v1364_v20, 1 }
 0x329   :  { %1380 = vadd.xlane.f32.xlu2 %v1379_v36  ;;  %1413 = vmax.xlane.f32.xlu1 %v1412_v37 }
 0x34b   :  { %s2188_s22 = spop %2187 }
 0x34c   :  { %s500_s2 = smul.f32 %s2188_s22, %s2186_s29  ;;  %s2190_s5 = spop %2189 }
 0x34d   :  { %s545_s6 = smul.f32 %s2190_s5, %s2779_s8  ;;  %s2192_s24 = spop %2191 }
 0x34e   :  { %s534_s26 = smul.f32 %s2106_s16, %s500_s2 }
 0x34f   :  { %s546_s11 = sadd.f32 %s545_s6, %s3298_s17  ;;  %s547_s7 = smul.f32 %s2192_s24, %s2106_s16 }
 0x350   :  { %s535_s18 = sadd.f32 %s534_s26, %s532_s10 }
 0x351   :  { %s548_s29 = sadd.f32 %s547_s7, %s546_s11 }
 0x352   :  { %s536_s28 = smax.f32 %s2475_s0, %s535_s18  ;;  %s2821_s6 = sld [smem:[#allocation18]] }
 0x353   :  { %s539_s4 = smul.f32 %s2790_s30, %s536_s28  ;;  %s549_s8 = smax.f32 %s2475_s0, %s548_s29 }
 0x354   :  { %s543_s20 = smul.f32 %s2798_s19, %s536_s28  ;;  %s2835_s26 = sld [smem:[#allocation18 + $0x1]] }
 0x355   :  { %s540_s9 = sadd.f32 %s539_s4, %s537_s23  ;;  %s550_s22 = smul.f32 %s549_s8, %s2790_s30 }
 0x356   :  { %s544_s2 = sadd.f32 %s2107_s1, %s543_s20  ;;  %s552_s5 = smul.f32 %s2798_s19, %s549_s8 }
 0x357   :  { %s551_s15 = sadd.f32 %s550_s22, %s537_s23 }
 0x358   :  { %s553_s14 = sadd.f32 %s2107_s1, %s552_s5 }
 0x359   :  { %s554_s25 = sadd.f32 %s551_s15, %s540_s9 }
 0x35a   :  { %s581_s13 = sadd.f32 %s553_s14, %s544_s2 }
 0x35b   :  { %s555_s3 = sxor.u32 2147483648, %s554_s25  ;;  %s2817_s25 = sld [smem:[#allocation16]] }
 0x35c   :  { %v556_v38 = vstv %s555_s3  ;;  %s582_s10 = sxor.u32 2147483648, %s581_s13  ;;  %s2819_s19 = sld [smem:[#allocation16 + $0x1]] }
 0x35d   :  { %v557_v39 = vmul.f32 1.442695, %v556_v38  ;;  %v583_v44 = vstv %s582_s10  ;;  %s2853_s4 = sld [smem:[#allocation19]] }
 0x35e   :  { %v584_v49 = vmul.f32 1.442695, %v583_v44  ;;  %v1366_v44 = vadd.f32 %v1365_v33, %v1364_v20  ;;  %s2863_s2 = sld [smem:[#allocation19 + $0x1]]  ;;  %v679_v33 = vld [vmem:[#allocation9 + $0x10] sm:$0xff] }
 0x35f   :  { %2242 = vpow2.f32 %v557_v39  ;;  %s3346_s10 = sld [smem:[#allocation36_spill]] }
 0x365   :  { %v2243_v40 = vpop.eup %2242  ;;  %v620_v12 = vld [vmem:[%s3346_s10 + $0x18] sm:$0x3f] }
 0x366   :  { %2193 = vpush %v2243_v40  ;;  %v1407_v40 = vrot.slane %v1406_v27, 1 }
 0x397   :  { %s2194_s17 = spop %2193 }
 0x398   :  { %s560_s16 = sadd.f32 1.0, %s2194_s17 }
 0x39a   :  { %v561_v43 = vstv %s560_s16 }
 0x39b   :  { %2244 = vrcp.f32 %v561_v43  ;;  %v573_v52 = vand.u32 2147483648, %v561_v43  ;;  %v571_v55 = vand.u32 2147483647, %v561_v43  ;;  %vm567_vm6 = vweird.f32 %v561_v43 }
 0x39c   :  { %2246 = vpow2.f32 %v584_v49  ;;  %v1381_v63 = vpop.xlane.xlu2 %1380  ;;  %v1414_v0 = vpop.xlane.xlu1 %1413 }
 0x39d   :  { %v574_v57 = vor.u32 1.1754944e-38, %v573_v52  ;;  %vm572_vm8 = vcmp.eq.f32.partialorder %v571_v55, 8.507059e+37  ;;  %2248 = vrcp.f32 %v2476_v62  ;;  %v1382_v3 = vrot.slane %v1381_v63, 4 }
 0x39e   :  { %v1415_v5 = vrot.slane %v1414_v0, 4 }
 0x39f   :  { %v1383_v9 = vadd.f32 %v1382_v3, %v1381_v63  ;;  %v617_v3 = vld [vmem:[%s3346_s10] sm:$0xff] }
 0x3a0   :  { %v1416_v11 = vmax.f32 %v1414_v0, %v1415_v5 }
 0x3a1   :  { %v2245_v28 = vpop.eup %2244  ;;  %v1384_v14 = vrot.slane %v1383_v9, 2 }
 0x3a2   :  { %v563_v48 = vmul.f32 %v2245_v28, %v561_v43  ;;  %vm568_vm5 = vweird.f32 %v2245_v28  ;;  %v2247_v60 = vpop.eup %2246  ;;  %v1417_v17 = vrot.slane %v1416_v11, 2 }
 0x3a3   :  { %vm569_vm7 = vmor %vm567_vm6, %vm568_vm5  ;;  %v2249_v4 = vpop.eup %2248  ;;  %v1385_v45 = vadd.f32 %v1384_v14, %v1383_v9 }
 0x3a4   :  { %v564_v51 = vsub.f32 1.0, %v563_v48  ;;  %v1369_v10 = vmul.f32 256.0, %v2249_v4  ;;  %v1418_v23 = vmax.f32 %v1416_v11, %v1417_v17  ;;  %vm1373_vm11 = vweird.f32 %v2249_v4  ;;  %v619_v11 = vld [vmem:[%s3346_s10 + $0x10] sm:$0xff] }
 0x3a5   :  { %v1386_v35 = vrot.slane %v1385_v45, 1  ;;  %v622_v13 = vpack.c.bf16 %v620_v12, %v619_v11  ;;  %v840_v11 = vld [vmem:[#allocation9 + $0x48] sm:$0xff] }
 0x3a6   :  { %v565_v54 = vmul.f32 %v2245_v28, %v564_v51  ;;  %v1370_v15 = vsub.f32 1.0, %v1369_v10  ;;  %v1419_v38 = vrot.slane %v1418_v23, 1  ;;  %v1408_v51 = vmax.f32 %v1406_v27, %v1407_v40  ;;  %v678_v40 = vld [vmem:[#allocation9 + $0x8] sm:$0xff] }
 0x3a7   :  { %v1387_v48 = vadd.f32 %v1386_v35, %v1385_v45 }
 0x3a8   :  { %v566_v56 = vadd.f32 %v2245_v28, %v565_v54  ;;  %v1371_v21 = vmul.f32 %v2249_v4, %v1370_v15  ;;  %v1420_v49 = vmax.f32 %v1418_v23, %v1419_v38 }
 0x3aa   :  { %v570_v58 = vsel %vm569_vm7, %v2245_v28, %v566_v56  ;;  %v1372_v34 = vadd.f32 %v2249_v4, %v1371_v21  ;;  %vm758_vm7 = vsmask.f32 7424 }
 0x3ab   :  { %v575_v59 = vsel %vm572_vm8, %v574_v57, %v570_v58 }
 0x3ac   :  { %2195 = vpush %v575_v59  ;;  %v1374_v28 = vsel %vm1373_vm11, %v2249_v4, %v1372_v34  ;;  %v618_v4 = vld [vmem:[%s3346_s10 + $0x8] sm:$0xff]  ;;  %vm928_vm11 = vsmask.f32 6400 }
 0x3ad   :  { %2197 = vpush %v2247_v60  ;;  %v680_v34 = vld [vmem:[#allocation9 + $0x18] sm:$0xff] }
 0x3ae   :  { %v684_v35 = vpack.c.bf16 %v680_v34, %v679_v33  ;;  %v924_v34 = vld [vmem:[#allocation9 + $0x150] sm:$0xff] }
 0x3b0   :  { %730 = vmatpush.bf16.msra.mxu3 %v684_v35  ;;  %v925_v35 = vld [vmem:[#allocation9 + $0x158] sm:$0xff] }
 0x3dd   :  { %s2814_s13 = spop %2195 }
 0x3de   :  { %s2198_s14 = spop %2197  ;;  %v577_v52 = vstv %s2814_s13 }
 0x3df   :  { %s587_s15 = sadd.f32 1.0, %s2198_s14  ;;  %v2824_v55 = vmul.f32 %v577_v52, %v2714_v53  ;;  %v2838_v59 = vmul.f32 %v577_v52, %v2701_v46  ;;  %v2841_v60 = vmul.f32 %v577_v52, %v2703_v47  ;;  %v841_v52 = vld [vmem:[#allocation9 + $0x50] sm:$0xff] }
 0x3e1   :  { %v588_v7 = vstv %s587_s15  ;;  %s3349_s15 = sld [smem:[#allocation37_spill]] }
 0x3e2   :  { %2250 = vrcp.f32 %v588_v7  ;;  %v600_v24 = vand.u32 2147483648, %v588_v7  ;;  %v598_v32 = vand.u32 2147483647, %v588_v7  ;;  %vm594_vm10 = vweird.f32 %v588_v7 }
 0x3e4   :  { %v601_v37 = vor.u32 1.1754944e-38, %v600_v24  ;;  %vm599_vm13 = vcmp.eq.f32.partialorder %v598_v32, 8.507059e+37 }
 0x3e8   :  { %v2251_v16 = vpop.eup %2250 }
 0x3e9   :  { %v590_v19 = vmul.f32 %v2251_v16, %v588_v7  ;;  %vm595_vm9 = vweird.f32 %v2251_v16  ;;  %v621_v7 = vpack.c.bf16 %v618_v4, %v617_v3  ;;  %v752_v4 = vld [vmem:[#allocation9 + $0x108] sm:$0xff] }
 0x3ea   :  { %vm596_vm12 = vmor %vm594_vm10, %vm595_vm9  ;;  %vm1160_vm9 = vcmask 1044480   ;;  %vm854_vm10 = vcmask 1046528  }
 0x3eb   :  { %v591_v22 = vsub.f32 1.0, %v590_v19 }
 0x3ed   :  { %v592_v29 = vmul.f32 %v2251_v16, %v591_v22 }
 0x3ef   :  { %v593_v36 = vadd.f32 %v2251_v16, %v592_v29 }
 0x3f1   :  { %v597_v39 = vsel %vm596_vm12, %v2251_v16, %v593_v36  ;;  %v688_v36 = vld [vmem:[#allocation9 + $0xf0] sm:$0xff]  ;;  %vm1008_vm12 = vcmask 1045504  }
 0x3f2   :  { %v602_v43 = vsel %vm599_vm13, %v601_v37, %v597_v39  ;;  %v689_v37 = vld [vmem:[#allocation9 + $0xf8] sm:$0xff]  ;;  %v677_v39 = vld [vmem:[#allocation9] sm:$0xff]  ;;  %vm1080_vm13 = vsmask.f32 5376 }
 0x3f3   :  { %2199 = vpush %v602_v43  ;;  %v693_v38 = vpack.c.bf16 %v689_v37, %v688_v36  ;;  %v683_v43 = vpack.c.bf16 %v678_v40, %v677_v39  ;;  %v927_v37 = vpack.c.bf16 %v925_v35, %v924_v34 }
 0x3f4   :  { %2201 = vpush %v1366_v44  ;;  %v686_v44 = vld [vmem:[#allocation9 + $0xe0] sm:$0xff] }
 0x3f5   :  { %2203 = vpush %v1374_v28  ;;  %706 = vmatpush.bf16.msra.mxu2 %v693_v38  ;;  %v687_v28 = vld [vmem:[#allocation9 + $0xe8] sm:$0xff]  ;;  %731 = vmatpush.bf16.msra.mxu3 %v683_v43 }
 0x3f6   :  { %2205 = vpush %v1387_v48  ;;  %v692_v48 = vpack.c.bf16 %v687_v28, %v686_v44 }
 0x3f7   :  { %2207 = vpush %v1408_v51  ;;  %v849_v51 = vld [vmem:[#allocation9 + $0x138] sm:$0xff] }
 0x3f8   :  { %2209 = vpush %v1420_v49  ;;  %v848_v49 = vld [vmem:[#allocation9 + $0x130] sm:$0xff] }
 0x3f9   :  { %707 = vmatpush.bf16.msra.mxu2 %v692_v48 }
 0x424   :  { %s2200_s30 = spop %2199 }
 0x425   :  { %v604_v54 = vstv %s2200_s30  ;;  %s2202_s23 = spop %2201 }
 0x426   :  { %v2827_v56 = vmul.f32 %v604_v54, %v2757_v42  ;;  %v2830_v57 = vmul.f32 %v604_v54, %v2755_v41  ;;  %v2833_v58 = vmul.f32 %v604_v54, %v2763_v50  ;;  %s2204_s24 = spop %2203  ;;  %v851_v54 = vpack.c.bf16 %v849_v51, %v848_v49 }
 0x427   :  { %s1376_s1 = smul.f32 %s2204_s24, %s2202_s23  ;;  %s2206_s27 = spop %2205 }
 0x428   :  { %s1397_s11 = smul.f32 %s2206_s27, %s2204_s24  ;;  %s2208_s7 = spop %2207  ;;  %v610_v53 = vmax.f32 %v2824_v55, %v2833_v58  ;;  %v613_v41 = vadd.f32 %v2833_v58, %v2824_v55  ;;  %v611_v46 = vadd.f32 %v2827_v56, %v2838_v59  ;;  %v612_v47 = vadd.f32 %v2830_v57, %v2841_v60  ;;  %870 = vmatpush.bf16.msrb.mxu2 %v851_v54 }
 0x429   :  { %s1424_s18 = smul.f32 %s2817_s25, %s1376_s1  ;;  %s2210_s29 = spop %2209  ;;  %v608_v61 = vmax.f32 %v2838_v59, %v2827_v56  ;;  %v609_v62 = vmax.f32 %v2841_v60, %v2830_v57 }
 0x42a   :  { %s1427_s28 = smul.f32 %s2819_s19, %s1397_s11  ;;  %v624_v42 = vpack.c.bf16 %v610_v53, %v610_v53  ;;  %v616_v50 = vmul.f32 0.5, %v613_v41  ;;  %v614_v1 = vmul.f32 0.5, %v611_v46  ;;  %v615_v2 = vmul.f32 0.5, %v612_v47  ;;  %v842_v53 = vld [vmem:[#allocation9 + $0x58] sm:$0xff]  ;;  %v745_v46 = vld [vmem:[#allocation9 + $0x30] sm:$0xff] }
 0x42b   :  { %s1425_s9 = sadd.f32 %s1424_s18, %s3302_s21  ;;  %s1438_s22 = smul.f32 %s2208_s7, %s2817_s25  ;;  %v623_v6 = vpack.c.bf16 %v609_v62, %v608_v61  ;;  %v844_v41 = vpack.c.bf16 %v842_v53, %v841_v52  ;;  %v746_v47 = vld [vmem:[#allocation9 + $0x38] sm:$0xff] }
 0x42c   :  { %s1440_s5 = smul.f32 %s2210_s29, %s2819_s19  ;;  %v632_v63 = vsel %vm280_vm1, %v624_v42, 0  ;;  %v654_v0 = vpack.c.bf16 %v616_v50, %v616_v50  ;;  %v653_v8 = vpack.c.bf16 %v615_v2, %v614_v1  ;;  %v749_v42 = vpack.c.bf16 %v746_v47, %v745_v46  ;;  %v753_v50 = vld [vmem:[#allocation9 + $0x110] sm:$0xff]  ;;  %v754_v61 = vld [vmem:[#allocation9 + $0x118] sm:$0xff]  ;;  %v744_v1 = vld [vmem:[#allocation9 + $0x28] sm:$0xff] }
 0x42d   :  { %s1428_s3 = sadd.f32 %s1427_s28, %s1425_s9  ;;  %640 = vmatpush.bf16.msra.mxu0 %v632_v63  ;;  %899 = vmatpush.bf16.msrb.mxu3 %v844_v41  ;;  %v757_v62 = vpack.c.bf16 %v754_v61, %v753_v50  ;;  %v751_v2 = vld [vmem:[#allocation9 + $0x100] sm:$0xff] }
 0x42e   :  { %s1439_s30 = sadd.f32 %s1438_s22, %s3302_s21  ;;  %v656_v5 = vsel %vm280_vm1, %v654_v0, 0  ;;  %v743_v0 = vld [vmem:[#allocation9 + $0x20] sm:$0xff] }
 0x42f   :  { %s1429_s19 = smax.f32 %s2475_s0, %s1428_s3  ;;  %664 = vmatpush.bf16.msrb.mxu1 %v656_v5  ;;  %v748_v3 = vpack.c.bf16 %v744_v1, %v743_v0 }
 0x430   :  { %s1432_s23 = smul.f32 %s2821_s6, %s1429_s19  ;;  %s1441_s24 = sadd.f32 %s1440_s5, %s1439_s30 }
 0x431   :  { %s1436_s1 = smul.f32 %s2835_s26, %s1429_s19  ;;  %641 = vmatpush.bf16.msra.mxu0 %v623_v6  ;;  %v756_v6 = vpack.c.bf16 %v752_v4, %v751_v2  ;;  %v916_v4 = vld [vmem:[#allocation9 + $0x68] sm:$0xff]  ;;  %s3354_s30 = sld [smem:[#allocation40_spill]] }
 0x432   :  { %s1442_s27 = smax.f32 %s2475_s0, %s1441_s24  ;;  %s1433_s11 = sadd.f32 %s1432_s23, %s2853_s4 }
 0x433   :  { %s1443_s7 = smul.f32 %s1442_s27, %s2821_s6  ;;  %665 = vmatpush.bf16.msrb.mxu1 %v653_v8  ;;  %s1437_s21 = sadd.f32 %s2863_s2, %s1436_s1  ;;  %v847_v8 = vld [vmem:[#allocation9 + $0x128] sm:$0xff] }
 0x434   :  { %s1445_s18 = smul.f32 %s2835_s26, %s1442_s27  ;;  %2109 = vmatmul.msk.bf16.vlgmr.msra.gmra.mxu0 %vm273_vm3, %v621_v7  ;;  %s3357_s0 = sld [smem:[#allocation42_spill]] }
 0x435   :  { %s1444_s29 = sadd.f32 %s1443_s7, %s2853_s4  ;;  %785 = vmatpush.bf16.msrb.mxu0 %v757_v62 }
 0x436   :  { %s1446_s28 = sadd.f32 %s2863_s2, %s1445_s18  ;;  %2111 = vmatmul.msk.bf16.vlgmr.msrb.gmra.mxu1 %vm273_vm3, %v621_v7  ;;  %v846_v7 = vld [vmem:[#allocation9 + $0x120] sm:$0xff] }
 0x437   :  { %s1447_s8 = sadd.f32 %s1444_s29, %s1433_s11  ;;  %823 = vmatpush.bf16.msra.mxu1 %v749_v42 }
 0x438   :  { %s1473_s20 = sadd.f32 %s1446_s28, %s1437_s21 }
 0x439   :  { %s1448_s9 = sxor.u32 2147483648, %s1447_s8  ;;  %786 = vmatpush.bf16.msrb.mxu0 %v756_v6  ;;  %s3355_s18 = sld [smem:[#allocation41_spill]] }
 0x43a   :  { %v1449_v9 = vstv %s1448_s9  ;;  %s1474_s2 = sxor.u32 2147483648, %s1473_s20  ;;  %s3356_s8 = sld [smem:[#allocation44_spill]] }
 0x43b   :  { %v1450_v10 = vmul.f32 1.442695, %v1449_v9  ;;  %v1475_v16 = vstv %s1474_s2  ;;  %v839_v9 = vld [vmem:[#allocation9 + $0x40] sm:$0xff]  ;;  %824 = vmatpush.bf16.msra.mxu1 %v748_v3 }
 0x43c   :  { %v1476_v19 = vmul.f32 1.442695, %v1475_v16  ;;  %v843_v12 = vpack.c.bf16 %v840_v11, %v839_v9  ;;  %v915_v3 = vld [vmem:[#allocation9 + $0x60] sm:$0xff] }
 0x43d   :  { %2252 = vpow2.f32 %v1450_v10  ;;  %v850_v10 = vpack.c.bf16 %v847_v8, %v846_v7  ;;  %948 = vmatpush.bf16.msra.mxu0 %v927_v37  ;;  %v919_v7 = vpack.c.bf16 %v916_v4, %v915_v3  ;;  %v923_v8 = vld [vmem:[#allocation9 + $0x148] sm:$0xff] }
 0x43e   :  { %900 = vmatpush.bf16.msrb.mxu3 %v843_v12 }
 0x43f   :  { %871 = vmatpush.bf16.msrb.mxu2 %v850_v10 }
 0x443   :  { %v2253_v14 = vpop.eup %2252 }
 0x444   :  { %2211 = vpush %v2253_v14  ;;  %2110 = vmatmul.msk.bf16.gmra.mxu0 %vm273_vm3, %v622_v13 }
 0x446   :  { %2112 = vmatmul.msk.bf16.gmra.mxu1 %vm273_vm3, %v622_v13 }
 0x475   :  { %s2212_s26 = spop %2211 }
 0x476   :  { %s1453_s4 = sadd.f32 1.0, %s2212_s26 }
 0x478   :  { %v1454_v15 = vstv %s1453_s4  ;;  %s3352_s4 = sld [smem:[#allocation39_spill]] }
 0x479   :  { %2254 = vrcp.f32 %v1454_v15  ;;  %v1466_v20 = vand.u32 2147483648, %v1454_v15  ;;  %v1464_v22 = vand.u32 2147483647, %v1454_v15  ;;  %vm1460_vm15 = vweird.f32 %v1454_v15 }
 0x47a   :  { %2256 = vpow2.f32 %v1476_v19 }
 0x47b   :  { %v1467_v24 = vor.u32 1.1754944e-38, %v1466_v20  ;;  %vm1465_vm3 = vcmp.eq.f32.partialorder %v1464_v22, 8.507059e+37  ;;  %v1005_v20 = vld [vmem:[#allocation9 + $0x178] sm:$0xff] }
 0x47f   :  { %v2255_v17 = vpop.eup %2254 }
 0x480   :  { %v1456_v18 = vmul.f32 %v2255_v17, %v1454_v15  ;;  %vm1461_vm14 = vweird.f32 %v2255_v17  ;;  %v2257_v32 = vpop.eup %2256 }
 0x481   :  { %vm1462_vm1 = vmor %vm1460_vm15, %vm1461_vm14 }
 0x482   :  { %v1457_v45 = vsub.f32 1.0, %v1456_v18 }
 0x484   :  { %v1458_v21 = vmul.f32 %v2255_v17, %v1457_v45  ;;  %v1004_v45 = vld [vmem:[#allocation9 + $0x170] sm:$0xff] }
 0x485   :  { %v1007_v22 = vpack.c.bf16 %v1005_v20, %v1004_v45  ;;  %v995_v45 = vld [vmem:[#allocation9 + $0x80] sm:$0xff] }
 0x486   :  { %v1459_v23 = vadd.f32 %v2255_v17, %v1458_v21  ;;  %v997_v21 = vld [vmem:[#allocation9 + $0x90] sm:$0xff] }
 0x488   :  { %v1463_v27 = vsel %vm1462_vm1, %v2255_v17, %v1459_v23  ;;  %v998_v23 = vld [vmem:[#allocation9 + $0x98] sm:$0xff] }
 0x489   :  { %v1468_v29 = vsel %vm1465_vm3, %v1467_v24, %v1463_v27  ;;  %v917_v24 = vld [vmem:[#allocation9 + $0x70] sm:$0xff]  ;;  %v918_v27 = vld [vmem:[#allocation9 + $0x78] sm:$0xff] }
 0x48a   :  { %2213 = vpush %v1468_v29  ;;  %v920_v33 = vpack.c.bf16 %v918_v27, %v917_v24 }
 0x48b   :  { %2215 = vpush %v2257_v32  ;;  %v1000_v32 = vpack.c.bf16 %v998_v23, %v997_v21  ;;  %v996_v21 = vld [vmem:[#allocation9 + $0x88] sm:$0xff] }
 0x48c   :  { %979 = vmatpush.bf16.msrb.mxu1 %v920_v33  ;;  %v999_v23 = vpack.c.bf16 %v996_v21, %v995_v45 }
 0x490   :  { %980 = vmatpush.bf16.msrb.mxu1 %v919_v7 }
 0x4b1   :  { %v643_v63 = vpop.f32.mrf.mxu0 }
 0x4b3   :  { %v667_v5 = vpop.f32.mrf.mxu1 }
 0x4b9   :  { %v645_v13 = vpop.f32.mrf.mxu0 }
 0x4ba   :  { %v2897_v14 = vpack.c.bf16 %v645_v13, %v643_v63 }
 0x4bb   :  { %s2899_s3 = spop %2213  ;;  %v669_v15 = vpop.f32.mrf.mxu1 }
 0x4bc   :  { %s2216_s17 = spop %2215  ;;  %v2901_v16 = vpack.c.bf16 %v669_v15, %v667_v5  ;;  %2115 = vmatmul.msk.bf16.vlgmr.msra.gmra.mxu3 %vm241_vm0, %v2897_v14  ;;  %v2908_v29 = vshll.u32 %v2897_v14, 16  ;;  %v2917_v41 = vshrl.u32 %v2897_v14, 16  ;;  %v922_v5 = vld [vmem:[#allocation9 + $0x140] sm:$0xff]  ;;  %v884_v35 = vrot.slane %v2897_v14, 1 }
 0x4bd   :  { %s1479_s16 = sadd.f32 1.0, %s2216_s17  ;;  %1051 = vmatpush.bf16.msra.mxu3 %v1000_v32  ;;  %v926_v13 = vpack.c.bf16 %v923_v8, %v922_v5  ;;  %v1147_v8 = vld [vmem:[#allocation9 + $0xc0] sm:$0xff] }
 0x4be   :  { %2113 = vmatmul.msk.bf16.vlgmr.msra.gmra.mxu2 %vm241_vm0, %v2901_v16  ;;  %v2911_v40 = vshll.u32 %v2901_v16, 16  ;;  %v801_v28 = vrot.slane %v2908_v29, 1  ;;  %v2931_v62 = vshrl.u32 %v2901_v16, 16  ;;  %v1161_v27 = vrot.slane %v2901_v16, 3  ;;  %s3353_s17 = sld [smem:[#allocation43_spill]] }
 0x4bf   :  { %v1480_v17 = vstv %s1479_s16  ;;  %1024 = vmatpush.bf16.msra.mxu2 %v1007_v22  ;;  %949 = vmatpush.bf16.msra.mxu0 %v926_v13  ;;  %v1188_v22 = vrot.slane %v2897_v14, 3  ;;  %v960_v4 = vrot.slane %v2917_v41, 1  ;;  %v961_v5 = vrot.slane %v2908_v29, 2 }
 0x4c0   :  { %2258 = vrcp.f32 %v1480_v17  ;;  %v1492_v51 = vand.u32 2147483648, %v1480_v17  ;;  %v1490_v53 = vand.u32 2147483647, %v1480_v17  ;;  %vm1486_vm5 = vweird.f32 %v1480_v17 }
 0x4c1   :  { %v648_v18 = vpop.f32.mrf.mxu0  ;;  %v763_v42 = vrot.slane %v2911_v40, 1  ;;  %v802_v1 = vor.u32 %v801_v28, %v2917_v41  ;;  %1052 = vmatpush.bf16.msra.mxu3 %v999_v23  ;;  %v930_v13 = vrot.slane %v2911_v40, 2  ;;  %v962_v21 = vor.u32 %v961_v5, %v960_v4 }
 0x4c2   :  { %v682_v39 = vpack.c.bf16 %v648_v18, %v648_v18  ;;  %v1493_v0 = vor.u32 1.1754944e-38, %v1492_v51  ;;  %vm1491_vm8 = vcmp.eq.f32.partialorder %v1490_v53, 8.507059e+37  ;;  %v1156_v51 = vld [vmem:[#allocation9 + $0x1b0] sm:$0xff] }
 0x4c3   :  { %v672_v19 = vpop.f32.mrf.mxu1  ;;  %v764_v11 = vor.u32 %v763_v42, %v2931_v62  ;;  %v1149_v53 = vld [vmem:[#allocation9 + $0xd0] sm:$0xff]  ;;  %v1150_v42 = vld [vmem:[#allocation9 + $0xd8] sm:$0xff] }
 0x4c4   :  { %v691_v48 = vpack.c.bf16 %v672_v19, %v672_v19 }
 0x4c6   :  { %v2259_v36 = vpop.eup %2258 }
 0x4c7   :  { %v1482_v38 = vmul.f32 %v2259_v36, %v1480_v17  ;;  %vm1487_vm4 = vweird.f32 %v2259_v36 }
 0x4c8   :  { %vm2926_vm6 = vmor %vm1486_vm5, %vm1487_vm4 }
 0x4c9   :  { %v1483_v43 = vsub.f32 1.0, %v1482_v38  ;;  %v650_v44 = vpop.f32.mrf.mxu0  ;;  %v855_v38 = vrot.slane %v2901_v16, 1 }
 0x4ca   :  { %v2914_v49 = vpack.c.bf16 %v650_v44, %v648_v18  ;;  %v1002_v18 = vld [vmem:[#allocation9 + $0x160] sm:$0xff] }
 0x4cb   :  { %v674_v52 = vpop.f32.mrf.mxu1  ;;  %v1484_v54 = vmul.f32 %v2259_v36, %v1483_v43 }
 0x4cc   :  { %v2920_v46 = vshll.u32 %v2914_v49, 16  ;;  %v2922_v47 = vpack.c.bf16 %v674_v52, %v672_v19  ;;  %2116 = vmatmul.msk.bf16.gmra.mxu3 %vm241_vm0, %v682_v39  ;;  %v1189_v17 = vrot.slane %v2914_v49, 3  ;;  %v1003_v19 = vld [vmem:[#allocation9 + $0x168] sm:$0xff]  ;;  %v885_v33 = vrot.slane %v2914_v49, 1  ;;  %v1157_v52 = vld [vmem:[#allocation9 + $0x1b8] sm:$0xff] }
 0x4cd   :  { %v1485_v50 = vadd.f32 %v2259_v36, %v1484_v54  ;;  %v1006_v20 = vpack.c.bf16 %v1003_v19, %v1002_v18  ;;  %v2969_v43 = vshrl.u32 %v2914_v49, 16  ;;  %v1159_v54 = vpack.c.bf16 %v1157_v52, %v1156_v51  ;;  %v1070_v18 = vld [vmem:[#allocation9 + $0xb8] sm:$0xff]  ;;  %v1076_v19 = vld [vmem:[#allocation9 + $0x190] sm:$0xff] }
 0x4ce   :  { %v2934_v63 = vshll.u32 %v2922_v47, 16  ;;  %2114 = vmatmul.msk.bf16.gmra.mxu2 %vm241_vm0, %v691_v48  ;;  %v806_v2 = vrot.slane %v2920_v46, 1  ;;  %v2952_v24 = vsel %vm1160_vm9, %v1188_v22, %v1189_v17  ;;  %v1162_v32 = vrot.slane %v2922_v47, 3 }
 0x4cf   :  { %v1489_v6 = vsel %vm2926_vm6, %v2259_v36, %v1485_v50  ;;  %1025 = vmatpush.bf16.msra.mxu2 %v1006_v20  ;;  %v856_v36 = vrot.slane %v2922_v47, 1  ;;  %v886_v37 = vsel %vm854_vm10, %v884_v35, %v885_v33  ;;  %v2974_v28 = vshrl.u32 %v2922_v47, 16  ;;  %v1077_v20 = vld [vmem:[#allocation9 + $0x198] sm:$0xff]  ;;  %v1068_v35 = vld [vmem:[#allocation9 + $0xa8] sm:$0xff] }
 0x4d0   :  { %v1494_v9 = vsel %vm1491_vm8, %v1493_v0, %v1489_v6  ;;  %v807_v10 = vsel %vm758_vm7, %v802_v1, %v806_v2  ;;  %v768_v12 = vrot.slane %v2934_v63, 1  ;;  %v2960_v34 = vsel %vm1160_vm9, %v1161_v27, %v1162_v32  ;;  %v1154_v1 = vld [vmem:[#allocation9 + $0x1a0] sm:$0xff] }
 0x4d1   :  { %2217 = vpush %v1494_v9  ;;  %2119 = vmatmul.msk.bf16.vlgmr.msra.gmra.mxu1 %vm241_vm0, %v807_v10  ;;  %v857_v39 = vsel %vm854_vm10, %v855_v38, %v856_v36  ;;  %v810_v44 = vor.u32 %v2969_v43, %v806_v2  ;;  %v1152_v50 = vpack.c.bf16 %v1150_v42, %v1149_v53  ;;  %v963_v61 = vrot.slane %v2969_v43, 1  ;;  %v1155_v2 = vld [vmem:[#allocation9 + $0x1a8] sm:$0xff]  ;;  %v1067_v27 = vld [vmem:[#allocation9 + $0xa0] sm:$0xff] }
 0x4d2   :  { %v769_v15 = vsel %vm758_vm7, %v764_v11, %v768_v12  ;;  %v772_v48 = vor.u32 %v2974_v28, %v768_v12  ;;  %v964_v0 = vrot.slane %v2920_v46, 2  ;;  %v1158_v3 = vpack.c.bf16 %v1155_v2, %v1154_v1  ;;  %v1148_v9 = vld [vmem:[#allocation9 + $0xc8] sm:$0xff] }
 0x4d3   :  { %2117 = vmatmul.msk.bf16.vlgmr.msrb.gmra.mxu0 %vm241_vm0, %v769_v15  ;;  %v932_v6 = vrot.slane %v2974_v28, 1  ;;  %v933_v7 = vrot.slane %v2934_v63, 2  ;;  %v1151_v10 = vpack.c.bf16 %v1148_v9, %v1147_v8  ;;  %v929_v12 = vrot.slane %v2931_v62, 1  ;;  %v1069_v15 = vld [vmem:[#allocation9 + $0xb0] sm:$0xff]  ;;  %v1075_v38 = vld [vmem:[#allocation9 + $0x188] sm:$0xff] }
 0x4d4   :  { %v965_v11 = vor.u32 %v964_v0, %v963_v61  ;;  %v1072_v45 = vpack.c.bf16 %v1070_v18, %v1069_v15  ;;  %v1079_v23 = vpack.c.bf16 %v1077_v20, %v1076_v19  ;;  %v1036_v52 = vrot.slane %v2897_v14, 2 }
 0x4d5   :  { %v934_v22 = vor.u32 %v933_v7, %v932_v6  ;;  %v1009_v42 = vrot.slane %v2901_v16, 2  ;;  %v1470_v61 = vstv %s2899_s3  ;;  %v1112_v8 = vrot.slane %v2917_v41, 2 }
 0x4d6   :  { %1131 = vmatpush.bf16.msra.mxu1 %v1072_v45  ;;  %1100 = vmatpush.bf16.msrb.mxu0 %v1079_v23  ;;  %v3005_v14 = vmul.f32 %v1470_v61, %v2739_v30  ;;  %v3008_v1 = vmul.f32 %v1470_v61, %v2741_v31  ;;  %v1115_v31 = vrot.slane %v2969_v43, 2  ;;  %v1081_v15 = vrot.slane %v2931_v62, 2  ;;  %v1506_v62 = vld [vmem:[%s3349_s15 + $0x8] sm:$0xff] }
 0x4d7   :  { %v1082_v43 = vrot.slane %v2911_v40, 3  ;;  %v1505_v40 = vld [vmem:[%s3349_s15] sm:$0xff] }
 0x4dc   :  { %2123 = vmatmul.msk.bf16.vlgmr.msrb.gmra.mxu3 %vm241_vm0, %v886_v37  ;;  %v1071_v37 = vpack.c.bf16 %v1068_v35, %v1067_v27 }
 0x4dd   :  { %1203 = vmatpush.bf16.msrb.mxu3 %v1152_v50 }
 0x4de   :  { %2121 = vmatmul.msk.bf16.vlgmr.msrb.gmra.mxu2 %vm241_vm0, %v857_v39  ;;  %v966_v39 = vsel %vm928_vm11, %v962_v21, %v965_v11  ;;  %1132 = vmatpush.bf16.msra.mxu1 %v1071_v37 }
 0x4df   :  { %1176 = vmatpush.bf16.msrb.mxu2 %v1159_v54  ;;  %v1010_v54 = vrot.slane %v2922_v47, 2  ;;  %v1507_v47 = vld [vmem:[%s3349_s15 + $0x10] sm:$0x3f] }
 0x4e0   :  { %v1509_v19 = vpack.c.bf16 %v1507_v47, %v1507_v47 }
 0x4e1   :  { %2120 = vmatmul.msk.bf16.gmra.mxu1 %vm241_vm0, %v810_v44  ;;  %1204 = vmatpush.bf16.msrb.mxu3 %v1151_v10  ;;  %v931_v44 = vor.u32 %v930_v13, %v929_v12  ;;  %v1011_v50 = vsel %vm1008_vm12, %v1009_v42, %v1010_v54  ;;  %v1113_v10 = vrot.slane %v2908_v29, 3  ;;  %v1085_v12 = vrot.slane %v2934_v63, 3 }
 0x4e2   :  { %v1083_v29 = vor.u32 %v1082_v43, %v1081_v15 }
 0x4e3   :  { %2118 = vmatmul.msk.bf16.gmra.mxu0 %vm241_vm0, %v772_v48  ;;  %1177 = vmatpush.bf16.msrb.mxu2 %v1158_v3  ;;  %v935_v51 = vsel %vm928_vm11, %v931_v44, %v934_v22  ;;  %v1114_v41 = vor.u32 %v1113_v10, %v1112_v8 }
 0x4ec   :  { %2124 = vmatmul.msk.bf16.gmra.mxu3 %vm241_vm0, %v885_v33  ;;  %v1074_v33 = vld [vmem:[#allocation9 + $0x180] sm:$0xff] }
 0x4ed   :  { %v1078_v48 = vpack.c.bf16 %v1075_v38, %v1074_v33 }
 0x4ee   :  { %2122 = vmatmul.msk.bf16.gmra.mxu2 %vm241_vm0, %v856_v36  ;;  %v1037_v36 = vrot.slane %v2914_v49, 2 }
 0x4ef   :  { %1101 = vmatpush.bf16.msrb.mxu0 %v1078_v48 }
 0x4f0   :  { %v1038_v53 = vsel %vm1008_vm12, %v1036_v52, %v1037_v36 }
 0x4f1   :  { %2127 = vmatmul.msk.bf16.vlgmr.msrb.gmra.mxu1 %vm241_vm0, %v966_v39 }
 0x4f3   :  { %2125 = vmatmul.msk.bf16.vlgmr.msra.gmra.mxu0 %vm241_vm0, %v935_v51 }
 0x4fc   :  { %2131 = vmatmul.msk.bf16.vlgmr.msra.gmra.mxu3 %vm241_vm0, %v1038_v53 }
 0x4fe   :  { %2129 = vmatmul.msk.bf16.vlgmr.msra.gmra.mxu2 %vm241_vm0, %v1011_v50 }
 0x501   :  { %2128 = vmatmul.msk.bf16.gmra.mxu1 %vm241_vm0, %v965_v11  ;;  %v1084_v11 = vrot.slane %v2974_v28, 2 }
 0x502   :  { %s2218_s10 = spop %2217 }
 0x503   :  { %v1496_v0 = vstv %s2218_s10  ;;  %2126 = vmatmul.msk.bf16.gmra.mxu0 %vm241_vm0, %v934_v22 }
 0x504   :  { %v3011_v16 = vmul.f32 %v1496_v0, %v2785_v25  ;;  %v3014_v2 = vmul.f32 %v1496_v0, %v2792_v26  ;;  %v1116_v26 = vrot.slane %v2920_v46, 3  ;;  %v1086_v46 = vor.u32 %v1085_v12, %v1084_v11 }
 0x506   :  { %v1499_v3 = vmax.f32 %v3005_v14, %v3011_v16  ;;  %v1500_v4 = vmax.f32 %v3008_v1, %v3014_v2  ;;  %v1501_v5 = vadd.f32 %v3011_v16, %v3005_v14  ;;  %v1502_v30 = vadd.f32 %v3014_v2, %v3008_v1 }
 0x507   :  { %v1117_v13 = vor.u32 %v1116_v26, %v1115_v31  ;;  %v1087_v63 = vsel %vm1080_vm13, %v1083_v29, %v1086_v46 }
 0x508   :  { %v1503_v6 = vmul.f32 0.5, %v1501_v5  ;;  %v1504_v25 = vmul.f32 0.5, %v1502_v30  ;;  %v1510_v7 = vpack.c.bf16 %v1500_v4, %v1499_v3 }
 0x509   :  { %v1118_v18 = vsel %vm1080_vm13, %v1114_v41, %v1117_v13 }
 0x50a   :  { %1524 = vmatpush.bf16.msra.mxu2 %v1510_v7  ;;  %v1535_v9 = vpack.c.bf16 %v1504_v25, %v1503_v6 }
 0x50c   :  { %1543 = vmatpush.bf16.msra.mxu3 %v1535_v9 }
 0x50d   :  { %2132 = vmatmul.msk.bf16.gmra.mxu3 %vm241_vm0, %v1037_v36 }
 0x50e   :  { %2130 = vmatmul.msk.bf16.gmra.mxu2 %vm241_vm0, %v1010_v54 }
 0x511   :  { %2135 = vmatmul.msk.bf16.vlgmr.msra.gmra.mxu1 %vm241_vm0, %v1118_v18 }
 0x513   :  { %2133 = vmatmul.msk.bf16.vlgmr.msrb.gmra.mxu0 %vm241_vm0, %v1087_v63 }
 0x51d   :  { %2139 = vmatmul.msk.bf16.vlgmr.msrb.gmra.mxu3 %vm241_vm0, %v2952_v24  ;;  %v1508_v24 = vpack.c.bf16 %v1506_v62, %v1505_v40 }
 0x51e   :  { %2137 = vmatmul.msk.bf16.vlgmr.msrb.gmra.mxu2 %vm241_vm0, %v2960_v34 }
 0x521   :  { %2136 = vmatmul.msk.bf16.gmra.mxu1 %vm241_vm0, %v1117_v13 }
 0x523   :  { %2134 = vmatmul.msk.bf16.gmra.mxu0 %vm241_vm0, %v1086_v46 }
 0x52d   :  { %2140 = vmatmul.msk.bf16.gmra.mxu3 %vm241_vm0, %v1189_v17 }
 0x52e   :  { %2138 = vmatmul.msk.bf16.gmra.mxu2 %vm241_vm0, %v1162_v32 }
 0x53d   :  { %2157 = vmatmul.msk.bf16.vlgmr.msra.gmra.mxu3 %vm374_vm2, %v1508_v24 }
 0x53e   :  { %2155 = vmatmul.msk.bf16.vlgmr.msra.gmra.mxu2 %vm374_vm2, %v1508_v24 }
 0x53f   :  { %v733_v49 = vpop.f32.mrf.mxu3 }
 0x541   :  { %v709_v34 = vpop.f32.mrf.mxu2 }
 0x542   :  { %v734_v17 = vadd.f32 %v733_v49, %v709_v34 }
 0x547   :  { %v735_v32 = vpop.f32.mrf.mxu3 }
 0x549   :  { %v711_v28 = vpop.f32.mrf.mxu2 }
 0x54d   :  { %2158 = vmatmul.msk.bf16.gmra.mxu3 %vm374_vm2, %v1509_v19 }
 0x54e   :  { %v826_v45 = vpop.f32.mrf.mxu1  ;;  %2156 = vmatmul.msk.bf16.gmra.mxu2 %vm374_vm2, %v1509_v19 }
 0x54f   :  { %v738_v20 = vpop.f32.mrf.mxu3 }
 0x550   :  { %v788_v21 = vpop.f32.mrf.mxu0 }
 0x551   :  { %v827_v22 = vadd.f32 %v826_v45, %v788_v21  ;;  %v714_v23 = vpop.f32.mrf.mxu2 }
 0x552   :  { %v739_v27 = vadd.f32 %v738_v20, %v714_v23 }
 0x553   :  { %v835_v35 = vadd.f32 %v827_v22, %v734_v17  ;;  %v736_v22 = vadd.f32 %v735_v32, %v711_v28  ;;  %v2146_v32 = vld [vmem:[%s3293_s12 + $0x30] sm:$0xff]  ;;  %v2147_v28 = vld [vmem:[%s3293_s12 + $0x38] sm:$0xff] }
 0x556   :  { %v828_v33 = vpop.f32.mrf.mxu1 }
 0x557   :  { %v740_v37 = vpop.f32.mrf.mxu3 }
 0x558   :  { %v790_v38 = vpop.f32.mrf.mxu0 }
 0x559   :  { %v716_v39 = vpop.f32.mrf.mxu2  ;;  %v829_v19 = vadd.f32 %v828_v33, %v790_v38  ;;  %v1283_v38 = vld [vmem:[%s3293_s12 + $0x10] sm:$0xff] }
 0x55e   :  { %v831_v44 = vpop.f32.mrf.mxu1 }
 0x55f   :  { %v902_v48 = vpop.f32.mrf.mxu3 }
 0x560   :  { %v793_v51 = vpop.f32.mrf.mxu0 }
 0x561   :  { %v832_v36 = vadd.f32 %v831_v44, %v793_v51  ;;  %v873_v52 = vpop.f32.mrf.mxu2  ;;  %v836_v44 = vadd.f32 %v829_v19, %v736_v22  ;;  %v1604_v22 = vld [vmem:[#allocation10 + $0x88] sm:$0xff] }
 0x562   :  { %v903_v54 = vadd.f32 %v902_v48, %v873_v52 }
 0x563   :  { %v837_v53 = vadd.f32 %v832_v36, %v739_v27 }
 0x564   :  { %v911_v42 = vadd.f32 %v903_v54, %v835_v35 }
 0x566   :  { %v833_v50 = vpop.f32.mrf.mxu1 }
 0x567   :  { %v904_v61 = vpop.f32.mrf.mxu3 }
 0x568   :  { %v795_v0 = vpop.f32.mrf.mxu0 }
 0x569   :  { %v875_v3 = vpop.f32.mrf.mxu2 }
 0x56a   :  { %v905_v23 = vadd.f32 %v904_v61, %v875_v3  ;;  %v1284_v61 = vld [vmem:[%s3293_s12 + $0x18] sm:$0xff] }
 0x56c   :  { %v912_v52 = vadd.f32 %v905_v23, %v836_v44  ;;  %v1599_v23 = vld [vmem:[#allocation10 + $0x18] sm:$0xff] }
 0x56e   :  { %v982_v4 = vpop.f32.mrf.mxu1 }
 0x56f   :  { %v907_v5 = vpop.f32.mrf.mxu3 }
 0x570   :  { %v951_v30 = vpop.f32.mrf.mxu0 }
 0x571   :  { %v878_v31 = vpop.f32.mrf.mxu2  ;;  %v983_v17 = vadd.f32 %v982_v4, %v951_v30 }
 0x572   :  { %v908_v6 = vadd.f32 %v907_v5, %v878_v31 }
 0x573   :  { %v991_v45 = vadd.f32 %v983_v17, %v911_v42  ;;  %v1300_v42 = vpack.c.bf16 %v2147_v28, %v2146_v32 }
 0x574   :  { %v3063_v25 = vadd.f32 %v908_v6, %v837_v53  ;;  %v1288_v6 = vpack.c.bf16 %v1284_v61, %v1283_v38  ;;  %v1724_v61 = vld [vmem:[#allocation10 + $0xa0] sm:$0xff] }
 0x575   :  { %1313 = vmatpush.bf16.msra.mxu0 %v1300_v42 }
 0x576   :  { %v984_v7 = vpop.f32.mrf.mxu1  ;;  %1337 = vmatpush.bf16.msrb.mxu1 %v1288_v6 }
 0x577   :  { %v909_v26 = vpop.f32.mrf.mxu3 }
 0x578   :  { %v953_v8 = vpop.f32.mrf.mxu0 }
 0x579   :  { %v880_v9 = vpop.f32.mrf.mxu2  ;;  %v985_v48 = vadd.f32 %v984_v7, %v953_v8 }
 0x57b   :  { %v992_v50 = vadd.f32 %v985_v48, %v912_v52  ;;  %v1559_v48 = vld [vmem:[#allocation10 + $0x70] sm:$0xff] }
 0x57e   :  { %v987_v10 = vpop.f32.mrf.mxu1 }
 0x57f   :  { %v1054_v11 = vpop.f32.mrf.mxu3 }
 0x580   :  { %v956_v12 = vpop.f32.mrf.mxu0 }
 0x581   :  { %v1027_v13 = vpop.f32.mrf.mxu2  ;;  %v988_v26 = vadd.f32 %v987_v10, %v956_v12  ;;  %v1282_v10 = vld [vmem:[%s3293_s12 + $0x8] sm:$0xff] }
 0x582   :  { %v1055_v47 = vadd.f32 %v1054_v11, %v1027_v13  ;;  %v2144_v11 = vld [vmem:[%s3293_s12 + $0x20] sm:$0xff]  ;;  %v2145_v13 = vld [vmem:[%s3293_s12 + $0x28] sm:$0xff] }
 0x584   :  { %v1063_v27 = vadd.f32 %v1055_v47, %v991_v45 }
 0x586   :  { %v989_v15 = vpop.f32.mrf.mxu1 }
 0x587   :  { %v1056_v43 = vpop.f32.mrf.mxu3  ;;  %v1281_v15 = vld [vmem:[%s3293_s12] sm:$0xff] }
 0x588   :  { %v958_v41 = vpop.f32.mrf.mxu0  ;;  %v1287_v12 = vpack.c.bf16 %v1282_v10, %v1281_v15 }
 0x589   :  { %v1029_v46 = vpop.f32.mrf.mxu2 }
 0x58a   :  { %v1057_v54 = vadd.f32 %v1056_v43, %v1029_v46  ;;  %v1299_v46 = vpack.c.bf16 %v2145_v13, %v2144_v11  ;;  %1338 = vmatpush.bf16.msrb.mxu1 %v1287_v12 }
 0x58c   :  { %v1064_v3 = vadd.f32 %v1057_v54, %v992_v50  ;;  %1314 = vmatpush.bf16.msra.mxu0 %v1299_v46 }
 0x58e   :  { %v1134_v18 = vpop.f32.mrf.mxu1 }
 0x590   :  { %v1059_v29 = vpop.f32.mrf.mxu3  ;;  %v1103_v63 = vpop.f32.mrf.mxu0 }
 0x591   :  { %v1032_v40 = vpop.f32.mrf.mxu2  ;;  %v1135_v20 = vadd.f32 %v1134_v18, %v1103_v63  ;;  %v993_v18 = vadd.f32 %v988_v26, %v3063_v25  ;;  %v1598_v25 = vld [vmem:[#allocation10 + $0x10] sm:$0xff] }
 0x592   :  { %v1060_v43 = vadd.f32 %v1059_v29, %v1032_v40 }
 0x593   :  { %v1143_v51 = vadd.f32 %v1135_v20, %v1063_v27  ;;  %v1603_v20 = vld [vmem:[#allocation10 + $0x80] sm:$0xff] }
 0x596   :  { %v1136_v62 = vpop.f32.mrf.mxu1 }
 0x598   :  { %v1061_v24 = vpop.f32.mrf.mxu3  ;;  %v1105_v49 = vpop.f32.mrf.mxu0 }
 0x599   :  { %v1034_v34 = vpop.f32.mrf.mxu2  ;;  %v1137_v0 = vadd.f32 %v1136_v62, %v1105_v49  ;;  %v1065_v49 = vadd.f32 %v1060_v43, %v993_v18 }
 0x59b   :  { %v1144_v8 = vadd.f32 %v1137_v0, %v1064_v3  ;;  %v1555_v0 = vld [vmem:[#allocation10 + $0x8] sm:$0xff] }
 0x59c   :  { %v1725_v3 = vld [vmem:[#allocation10 + $0xa8] sm:$0xff] }
 0x59d   :  { %v1726_v26 = vpack.c.bf16 %v1725_v3, %v1724_v61  ;;  %v1833_v61 = vld [vmem:[#allocation10 + $0x58] sm:$0xff] }
 0x59e   :  { %v1139_v21 = vpop.f32.mrf.mxu1 }
 0x5a0   :  { %v1206_v35 = vpop.f32.mrf.mxu3  ;;  %v1108_v37 = vpop.f32.mrf.mxu0 }
 0x5a1   :  { %v1179_v39 = vpop.f32.mrf.mxu2  ;;  %v1140_v63 = vadd.f32 %v1139_v21, %v1108_v37  ;;  %v1606_v21 = vpack.c.bf16 %v1604_v22, %v1603_v20 }
 0x5a2   :  { %v1207_v36 = vadd.f32 %v1206_v35, %v1179_v39  ;;  %v1601_v35 = vpack.c.bf16 %v1599_v23, %v1598_v25 }
 0x5a3   :  { %v1145_v40 = vadd.f32 %v1140_v63, %v1065_v49  ;;  %1628 = vmatpush.bf16.msrb.mxu2 %v1606_v21 }
 0x5a4   :  { %v1215_v53 = vadd.f32 %v1207_v36, %v1143_v51  ;;  %1656 = vmatpush.bf16.msrb.mxu3 %v1601_v35  ;;  %v1560_v51 = vld [vmem:[#allocation10 + $0x78] sm:$0xff]  ;;  %v1554_v36 = vld [vmem:[#allocation10] sm:$0xff] }
 0x5a5   :  { %v1562_v50 = vpack.c.bf16 %v1560_v51, %v1559_v48 }
 0x5a6   :  { %v2141_v4 = vmul.f32 -0.999995, %v1215_v53  ;;  %v1141_v33 = vpop.f32.mrf.mxu1 }
 0x5a7   :  { %v1557_v33 = vpack.c.bf16 %v1555_v0, %v1554_v36  ;;  %1573 = vmatpush.bf16.msrb.mxu0 %v1562_v50  ;;  %1746 = vmatpush.bf16.msra.mxu2 %v1726_v26  ;;  %v1786_v0 = vld [vmem:[#allocation10 + $0xb0] sm:$0xff] }
 0x5a8   :  { %v1224_v5 = vmul.f32 1.442695, %v2141_v4  ;;  %v1208_v30 = vpop.f32.mrf.mxu3  ;;  %v1110_v31 = vpop.f32.mrf.mxu0 }
 0x5a9   :  { %v1181_v7 = vpop.f32.mrf.mxu2  ;;  %1590 = vmatpush.bf16.msra.mxu1 %v1557_v33  ;;  %v1837_v33 = vld [vmem:[#allocation10 + $0xc8] sm:$0xff] }
 0x5aa   :  { %2260 = vpow2.f32 %v1224_v5  ;;  %v1209_v9 = vadd.f32 %v1208_v30, %v1181_v7  ;;  %v1720_v5 = vld [vmem:[#allocation10 + $0x30] sm:$0xff] }
 0x5ac   :  { %v1216_v41 = vadd.f32 %v1209_v9, %v1144_v8  ;;  %v1721_v8 = vld [vmem:[#allocation10 + $0x38] sm:$0xff] }
 0x5ad   :  { %v1722_v13 = vpack.c.bf16 %v1721_v8, %v1720_v5 }
 0x5ae   :  { %v2142_v62 = vmul.f32 -0.999995, %v1216_v41 }
 0x5af   :  { %1772 = vmatpush.bf16.msra.mxu3 %v1722_v13 }
 0x5b0   :  { %v2261_v24 = vpop.eup %2260  ;;  %v1226_v34 = vmul.f32 1.442695, %v2142_v62  ;;  %v1211_v17 = vpop.f32.mrf.mxu3 }
 0x5b1   :  { %v3090_v47 = vadd.f32 1.0, %v2261_v24  ;;  %v1184_v29 = vpop.f32.mrf.mxu2 }
 0x5b2   :  { %2262 = vpow2.f32 %v1226_v34  ;;  %v1212_v19 = vadd.f32 %v1211_v17, %v1184_v29 }
 0x5b3   :  { %2264 = vrcp.f32 %v3090_v47  ;;  %v1244_v9 = vand.u32 2147483648, %v3090_v47  ;;  %vm1238_vm15 = vweird.f32 %v3090_v47  ;;  %v1242_v15 = vand.u32 2147483647, %v3090_v47 }
 0x5b4   :  { %v1217_v45 = vadd.f32 %v1212_v19, %v1145_v40 }
 0x5b5   :  { %v1245_v10 = vor.u32 1.1754944e-38, %v1244_v9  ;;  %vm1243_vm4 = vcmp.eq.f32.partialorder %v1242_v15, 8.507059e+37 }
 0x5b6   :  { %v2143_v27 = vmul.f32 -0.999995, %v1217_v45 }
 0x5b8   :  { %v2263_v37 = vpop.eup %2262  ;;  %v1228_v39 = vmul.f32 1.442695, %v2143_v27  ;;  %v1213_v44 = vpop.f32.mrf.mxu3 }
 0x5b9   :  { %v2265_v52 = vpop.eup %2264  ;;  %v1231_v54 = vadd.f32 1.0, %v2263_v37  ;;  %v1186_v53 = vpop.f32.mrf.mxu2 }
 0x5ba   :  { %v1234_v4 = vmul.f32 %v2265_v52, %v3090_v47  ;;  %2266 = vpow2.f32 %v1228_v39  ;;  %vm1239_vm14 = vweird.f32 %v2265_v52 }
 0x5bb   :  { %2268 = vrcp.f32 %v1231_v54  ;;  %vm1240_vm1 = vmor %vm1238_vm15, %vm1239_vm14  ;;  %v1259_v41 = vand.u32 2147483648, %v1231_v54  ;;  %v1257_v18 = vand.u32 2147483647, %v1231_v54  ;;  %vm1253_vm5 = vweird.f32 %v1231_v54 }
 0x5bc   :  { %v1235_v32 = vsub.f32 1.0, %v1234_v4  ;;  %v1836_v4 = vld [vmem:[#allocation10 + $0xc0] sm:$0xff] }
 0x5bd   :  { %v1260_v34 = vor.u32 1.1754944e-38, %v1259_v41  ;;  %vm1258_vm8 = vcmp.eq.f32.partialorder %v1257_v18, 8.507059e+37  ;;  %v1671_v41 = vld [vmem:[#allocation10 + $0x98] sm:$0xff] }
 0x5be   :  { %v1236_v28 = vmul.f32 %v2265_v52, %v1235_v32 }
 0x5c0   :  { %v2267_v38 = vpop.eup %2266  ;;  %v1545_v42 = vpop.f32.mrf.mxu3  ;;  %v1237_v7 = vadd.f32 %v2265_v52, %v1236_v28 }
 0x5c1   :  { %v2269_v30 = vpop.eup %2268  ;;  %v3094_v31 = vadd.f32 1.0, %v2267_v38  ;;  %v1526_v6 = vpop.f32.mrf.mxu2 }
 0x5c2   :  { %v1249_v11 = vmul.f32 %v2269_v30, %v1231_v54  ;;  %v1241_v46 = vsel %vm1240_vm1, %v2265_v52, %v1237_v7  ;;  %vm1254_vm3 = vweird.f32 %v2269_v30 }
 0x5c3   :  { %2270 = vrcp.f32 %v3094_v31  ;;  %v1246_v62 = vsel %vm1243_vm4, %v1245_v10, %v1241_v46  ;;  %vm1255_vm6 = vmor %vm1253_vm5, %vm1254_vm3  ;;  %vm1268_vm15 = vweird.f32 %v3094_v31  ;;  %v1272_v53 = vand.u32 2147483647, %v3094_v31  ;;  %v1666_v46 = vld [vmem:[#allocation10 + $0x20] sm:$0xff] }
 0x5c4   :  { %v1250_v43 = vsub.f32 1.0, %v1249_v11  ;;  %v1278_v22 = vmul.f32 %v1246_v62, %v2838_v59  ;;  %v1289_v23 = vmul.f32 %v1246_v62, %v2827_v56  ;;  %v1667_v62 = vld [vmem:[#allocation10 + $0x28] sm:$0xff] }
 0x5c5   :  { %vm1273_vm3 = vcmp.eq.f32.partialorder %v1272_v53, 8.507059e+37 }
 0x5c6   :  { %v1251_v12 = vmul.f32 %v2269_v30, %v1250_v43  ;;  %v1670_v43 = vld [vmem:[#allocation10 + $0x90] sm:$0xff] }
 0x5c8   :  { %v1547_v63 = vpop.f32.mrf.mxu3  ;;  %v1252_v24 = vadd.f32 %v2269_v30, %v1251_v12 }
 0x5c9   :  { %v2271_v49 = vpop.eup %2270  ;;  %v3100_v17 = vpack.c.bf16 %v1547_v63, %v1545_v42  ;;  %v1528_v47 = vpop.f32.mrf.mxu2  ;;  %v1832_v42 = vld [vmem:[#allocation10 + $0x50] sm:$0xff]  ;;  %v1672_v63 = vpack.c.bf16 %v1671_v41, %v1670_v43  ;;  %v1891_v43 = vld [vmem:[#allocation10 + $0x68] sm:$0xff] }
 0x5ca   :  { %v3102_v29 = vpack.c.bf16 %v1528_v47, %v1526_v6  ;;  %v1256_v40 = vsel %vm1255_vm6, %v2269_v30, %v1252_v24  ;;  %v1264_v19 = vmul.f32 %v2271_v49, %v3094_v31  ;;  %vm1269_vm14 = vweird.f32 %v2271_v49 }
 0x5cb   :  { %v3106_v45 = vshll.u32 %v3100_v17, 16  ;;  %v1261_v20 = vsel %vm1258_vm8, %v1260_v34, %v1256_v40  ;;  %v3116_v44 = vshrl.u32 %v3100_v17, 16  ;;  %vm3132_vm1 = vmor %vm1268_vm15, %vm1269_vm14  ;;  %v1838_v6 = vpack.c.bf16 %v1837_v33, %v1836_v4  ;;  %v1787_v4 = vld [vmem:[#allocation10 + $0xb8] sm:$0xff]  ;;  %v1782_v33 = vld [vmem:[#allocation10 + $0x40] sm:$0xff] }
 0x5cc   :  { %v3110_v25 = vshll.u32 %v3102_v29, 16  ;;  %v1279_v21 = vmul.f32 %v1261_v20, %v2841_v60  ;;  %v1290_v27 = vmul.f32 %v1261_v20, %v2830_v57  ;;  %v1265_v35 = vsub.f32 1.0, %v1264_v19 }
 0x5cd   :  { %v1611_v48 = vrot.slane %v3106_v45, 1  ;;  %v3122_v60 = vshrl.u32 %v3102_v29, 16  ;;  %v1274_v57 = vand.u32 2147483648, %v3094_v31  ;;  %v1834_v8 = vpack.c.bf16 %v1833_v61, %v1832_v42 }
 0x5ce   :  { %v1297_v37 = vpack.c.bf16 %v1290_v27, %v1289_v23  ;;  %v1285_v39 = vpack.c.bf16 %v1279_v21, %v1278_v22  ;;  %v1266_v51 = vmul.f32 %v2271_v49, %v1265_v35  ;;  %v1639_v56 = vrot.slane %v3110_v25, 1 }
 0x5cf   :  { %v1612_v28 = vor.u32 %v1611_v48, %v3116_v44  ;;  %v1275_v30 = vor.u32 1.1754944e-38, %v1274_v57  ;;  %v1727_v34 = vrot.slane %v3116_v44, 1  ;;  %v1728_v47 = vrot.slane %v3106_v45, 2 }
 0x5d0   :  { %v1550_v59 = vpop.f32.mrf.mxu3  ;;  %2148 = vmatmul.msk.bf16.vlgmr.msra.gmra.mxu0 %vm241_vm0, %v1297_v37  ;;  %2150 = vmatmul.msk.bf16.vlgmr.msrb.gmra.mxu1 %vm241_vm0, %v1285_v39  ;;  %v1267_v54 = vadd.f32 %v2271_v49, %v1266_v51  ;;  %v1640_v5 = vor.u32 %v1639_v56, %v3122_v60  ;;  %v1753_v20 = vrot.slane %v3122_v60, 1  ;;  %v1917_v37 = vrot.slane %v3102_v29, 3 }
 0x5d1   :  { %v3126_v36 = vpack.c.bf16 %v1550_v59, %v1550_v59  ;;  %v1531_v52 = vpop.f32.mrf.mxu2  ;;  %1688 = vmatpush.bf16.msra.mxu0 %v1672_v63  ;;  %v1729_v59 = vor.u32 %v1728_v47, %v1727_v34  ;;  %v1839_v61 = vrot.slane %v3116_v44, 2  ;;  %v1809_v34 = vrot.slane %v3102_v29, 2 }
 0x5d2   :  { %v3130_v50 = vpack.c.bf16 %v1531_v52, %v1531_v52  ;;  %v1271_v38 = vsel %vm3132_vm1, %v2271_v49, %v1267_v54  ;;  %v1668_v49 = vpack.c.bf16 %v1667_v62, %v1666_v46  ;;  %v1697_v46 = vrot.slane %v3102_v29, 1 }
 0x5d3   :  { %v3137_v32 = vshll.u32 %v3126_v36, 16  ;;  %v1276_v26 = vsel %vm1273_vm3, %v1275_v30, %v1271_v38  ;;  %v1730_v11 = vshrl.u32 %v3126_v36, 16  ;;  %v1898_v35 = vrot.slane %v3126_v36, 3 }
 0x5d4   :  { %v3143_v3 = vshll.u32 %v3130_v50, 16  ;;  %v1756_v10 = vshrl.u32 %v3130_v50, 16  ;;  %v1280_v12 = vmul.f32 %v1276_v26, %v2824_v55  ;;  %v1291_v24 = vmul.f32 %v1276_v26, %v2833_v58  ;;  %1710 = vmatpush.bf16.msrb.mxu1 %v1668_v49 }
 0x5d5   :  { %v1616_v31 = vrot.slane %v3137_v32, 1  ;;  %v1732_v40 = vrot.slane %v1730_v11, 1  ;;  %v1733_v19 = vrot.slane %v3137_v32, 2  ;;  %v1754_v55 = vrot.slane %v3110_v25, 2 }
 0x5d6   :  { %v1644_v7 = vrot.slane %v3143_v3, 1  ;;  %v1286_v22 = vpack.c.bf16 %v1280_v12, %v1280_v12  ;;  %v1758_v21 = vrot.slane %v1756_v10, 1  ;;  %v1759_v23 = vrot.slane %v3143_v3, 2 }
 0x5d7   :  { %v1617_v9 = vsel %vm758_vm7, %v1612_v28, %v1616_v31  ;;  %v1897_v58 = vrot.slane %v3100_v17, 3  ;;  %v1298_v27 = vpack.c.bf16 %v1291_v24, %v1291_v24  ;;  %v1918_v39 = vrot.slane %v3130_v50, 3  ;;  %v1783_v28 = vld [vmem:[#allocation10 + $0x48] sm:$0xff] }
 0x5d8   :  { %2161 = vmatmul.msk.bf16.vlgmr.msrb.gmra.mxu2 %vm374_vm2, %v1617_v9  ;;  %v1645_v13 = vsel %vm758_vm7, %v1640_v5, %v1644_v7  ;;  %v1552_v15 = vpop.f32.mrf.mxu3  ;;  %v1734_v56 = vor.u32 %v1733_v19, %v1732_v40  ;;  %v1755_v57 = vor.u32 %v1754_v55, %v1753_v20  ;;  %v1760_v52 = vor.u32 %v1759_v23, %v1758_v21 }
 0x5d9   :  { %2162 = vmatmul.msk.bf16.vlgmr.msrb.gmra.mxu3 %vm374_vm2, %v1645_v13  ;;  %v1533_v18 = vpop.f32.mrf.mxu2  ;;  %1856 = vmatpush.bf16.msrb.mxu2 %v1838_v6  ;;  %v1899_v48 = vsel %vm1160_vm9, %v1897_v58, %v1898_v35  ;;  %v1919_v51 = vsel %vm1160_vm9, %v1917_v37, %v1918_v39  ;;  %v1788_v38 = vpack.c.bf16 %v1787_v4, %v1786_v0  ;;  %v1840_v5 = vrot.slane %v3106_v45, 3  ;;  %v1895_v15 = vld [vmem:[#allocation10 + $0xd8] sm:$0xff] }
 0x5da   :  { %1880 = vmatpush.bf16.msrb.mxu3 %v1834_v8  ;;  %v1735_v54 = vsel %vm928_vm11, %v1729_v59, %v1734_v56  ;;  %v1761_v53 = vsel %vm928_vm11, %v1755_v57, %v1760_v52  ;;  %v1784_v42 = vpack.c.bf16 %v1783_v28, %v1782_v33  ;;  %v1842_v30 = vrot.slane %v1730_v11, 2 }
 0x5db   :  { %v1843_v31 = vrot.slane %v3137_v32, 3  ;;  %v1863_v6 = vrot.slane %v3122_v60, 2  ;;  %v1864_v7 = vrot.slane %v3110_v25, 3  ;;  %v1866_v26 = vrot.slane %v1756_v10, 2  ;;  %v1894_v60 = vld [vmem:[#allocation10 + $0xd0] sm:$0xff]  ;;  %v1890_v25 = vld [vmem:[#allocation10 + $0x60] sm:$0xff] }
 0x5dc   :  { %v1867_v8 = vrot.slane %v3143_v3, 3  ;;  %v1841_v44 = vor.u32 %v1840_v5, %v1839_v61  ;;  %v1675_v3 = vrot.slane %v3100_v17, 1  ;;  %v1676_v41 = vrot.slane %v3126_v36, 1 }
 0x5dd   :  { %v1844_v45 = vor.u32 %v1843_v31, %v1842_v30  ;;  %v1865_v9 = vor.u32 %v1864_v7, %v1863_v6  ;;  %v1698_v10 = vrot.slane %v3130_v50, 1  ;;  %v1896_v12 = vpack.c.bf16 %v1895_v15, %v1894_v60 }
 0x5de   :  { %v1868_v11 = vor.u32 %v1867_v8, %v1866_v26  ;;  %v1892_v18 = vpack.c.bf16 %v1891_v43, %v1890_v25  ;;  %v1677_v63 = vsel %vm854_vm10, %v1675_v3, %v1676_v41  ;;  %v1789_v24 = vrot.slane %v3100_v17, 2 }
 0x5df   :  { %v1845_v32 = vsel %vm1080_vm13, %v1841_v44, %v1844_v45  ;;  %v1699_v62 = vsel %vm854_vm10, %v1697_v46, %v1698_v10  ;;  %v1790_v49 = vrot.slane %v3126_v36, 2  ;;  %v1810_v47 = vrot.slane %v3130_v50, 2 }
 0x5e0   :  { %2149 = vmatmul.msk.bf16.gmra.mxu0 %vm241_vm0, %v1298_v27  ;;  %2151 = vmatmul.msk.bf16.gmra.mxu1 %vm241_vm0, %v1286_v22  ;;  %v1869_v13 = vsel %vm1080_vm13, %v1865_v9, %v1868_v11  ;;  %vm2032_vm0 = vcmask 64512  }
 0x5e1   :  { %v1791_v40 = vsel %vm1008_vm12, %v1789_v24, %v1790_v49  ;;  %v1811_v19 = vsel %vm1008_vm12, %v1809_v34, %v1810_v47 }
 0x5e8   :  { %2165 = vmatmul.msk.bf16.vlgmr.msra.gmra.mxu2 %vm374_vm2, %v1735_v54 }
 0x5e9   :  { %2166 = vmatmul.msk.bf16.vlgmr.msra.gmra.mxu3 %vm374_vm2, %v1761_v53 }
 0x5f0   :  { %2159 = vmatmul.msk.bf16.vlgmr.msrb.gmra.mxu0 %vm374_vm2, %v3100_v17  ;;  %2160 = vmatmul.msk.bf16.vlgmr.msra.gmra.mxu1 %vm374_vm2, %v3102_v29  ;;  %v2238_v17 = vld [vmem:[%s3352_s4] ss:$0 sm:$0xff] }
 0x5f1   :  { %1802 = vmatpush.bf16.msrb.mxu0 %v1788_v38  ;;  %1822 = vmatpush.bf16.msra.mxu1 %v1784_v42 }
 0x5f8   :  { %2169 = vmatmul.msk.bf16.vlgmr.msrb.gmra.mxu2 %vm374_vm2, %v1845_v32 }
 0x5f9   :  { %2170 = vmatmul.msk.bf16.vlgmr.msrb.gmra.mxu3 %vm374_vm2, %v1869_v13 }
 0x600   :  { %2163 = vmatmul.msk.bf16.vlgmr.msra.gmra.mxu0 %vm374_vm2, %v1677_v63  ;;  %2164 = vmatmul.msk.bf16.vlgmr.msrb.gmra.mxu1 %vm374_vm2, %v1699_v62 }
 0x601   :  { %1910 = vmatpush.bf16.msra.mxu0 %v1896_v12  ;;  %1930 = vmatpush.bf16.msrb.mxu1 %v1892_v18 }
 0x610   :  { %2167 = vmatmul.msk.bf16.vlgmr.msrb.gmra.mxu0 %vm374_vm2, %v1791_v40  ;;  %2168 = vmatmul.msk.bf16.vlgmr.msra.gmra.mxu1 %vm374_vm2, %v1811_v19 }
 0x620   :  { %2171 = vmatmul.msk.bf16.vlgmr.msra.gmra.mxu0 %vm374_vm2, %v1899_v48  ;;  %2172 = vmatmul.msk.bf16.vlgmr.msrb.gmra.mxu1 %vm374_vm2, %v1919_v51 }
 0x64d   :  { %v1316_v36 = vpop.f32.mrf.mxu0  ;;  %v1340_v29 = vpop.f32.mrf.mxu1 }
 0x64e   :  { %v1341_v20 = vadd.f32 %v1340_v29, %v1316_v36 }
 0x650   :  { %v3209_v50 = vadd.f32 %v2238_v17, %v1341_v20 }
 0x652   :  { %2033 = vst.msk [vmem:[%s3353_s17] sm:$0xff] %vm2032_vm0, %v3209_v50 }
 0x655   :  { %v1318_v55 = vpop.f32.mrf.mxu0  ;;  %v1342_v22 = vpop.f32.mrf.mxu1 }
 0x656   :  { %v1343_v21 = vadd.f32 %v1342_v22, %v1318_v55 }
 0x658   :  { %v3216_v23 = vadd.f32 %v2238_v17, %v1343_v21 }
 0x65a   :  { %2034 = vst.msk [vmem:[%s3353_s17 + $0x8] sm:$0xff] %vm2032_vm0, %v3216_v23  ;;  %v2038_v58 = vpack.c.bf16 %v3216_v23, %v3209_v50 }
 0x65b   :  { %v1630_v52 = vpop.f32.mrf.mxu2 }
 0x65c   :  { %v1658_v57 = vpop.f32.mrf.mxu3 }
 0x65d   :  { %v1321_v27 = vpop.f32.mrf.mxu0  ;;  %v1345_v35 = vpop.f32.mrf.mxu1  ;;  %v1659_v8 = vadd.f32 %v1658_v57, %v1630_v52  ;;  %v1982_v52 = vld [vmem:[%s3354_s30 + $0x8] sm:$0xff] }
 0x65e   :  { %v1346_v37 = vadd.f32 %v1345_v35, %v1321_v27 }
 0x660   :  { %v3225_v39 = vadd.f32 %v2238_v17, %v1346_v37 }
 0x662   :  { %2035 = vst.msk [vmem:[%s3353_s17 + $0x10] sm:$0xff] %vm2032_vm0, %v3225_v39 }
 0x663   :  { %v1632_v4 = vpop.f32.mrf.mxu2 }
 0x664   :  { %v1660_v0 = vpop.f32.mrf.mxu3 }
 0x665   :  { %v1323_v48 = vpop.f32.mrf.mxu0  ;;  %v1347_v51 = vpop.f32.mrf.mxu1  ;;  %v1661_v43 = vadd.f32 %v1660_v0, %v1632_v4 }
 0x666   :  { %v2175_v51 = vld [vmem:[%s3354_s30 + $0x10] sm:$0xff] }
 0x66b   :  { %v1748_v42 = vpop.f32.mrf.mxu2 }
 0x66c   :  { %v1774_v38 = vpop.f32.mrf.mxu3 }
 0x66d   :  { %v1575_v59 = vpop.f32.mrf.mxu0  ;;  %v1592_v56 = vpop.f32.mrf.mxu1  ;;  %v1775_v13 = vadd.f32 %v1774_v38, %v1748_v42 }
 0x66e   :  { %v1593_v7 = vadd.f32 %v1592_v56, %v1575_v59  ;;  %v2176_v59 = vld [vmem:[%s3354_s30 + $0x18] sm:$0xff]  ;;  %v1981_v56 = vld [vmem:[%s3354_s30] sm:$0xff] }
 0x66f   :  { %v1991_v57 = vpack.c.bf16 %v2176_v59, %v2175_v51 }
 0x670   :  { %v1663_v45 = vadd.f32 %v1659_v8, %v1593_v7 }
 0x671   :  { %2002 = vmatpush.bf16.msra.mxu2 %v1991_v57 }
 0x673   :  { %v1750_v26 = vpop.f32.mrf.mxu2 }
 0x674   :  { %v1776_v30 = vpop.f32.mrf.mxu3 }
 0x675   :  { %v1577_v54 = vpop.f32.mrf.mxu0  ;;  %v1594_v53 = vpop.f32.mrf.mxu1  ;;  %v1777_v49 = vadd.f32 %v1776_v30, %v1750_v26 }
 0x676   :  { %v1595_v60 = vadd.f32 %v1594_v53, %v1577_v54  ;;  %v1984_v53 = vpack.c.bf16 %v1982_v52, %v1981_v56 }
 0x678   :  { %v1664_v10 = vadd.f32 %v1661_v43, %v1595_v60  ;;  %2019 = vmatpush.bf16.msra.mxu3 %v1984_v53 }
 0x67b   :  { %v1858_v46 = vpop.f32.mrf.mxu2 }
 0x67c   :  { %v1882_v25 = vpop.f32.mrf.mxu3 }
 0x67d   :  { %v1690_v33 = vpop.f32.mrf.mxu0  ;;  %v1712_v28 = vpop.f32.mrf.mxu1  ;;  %v1883_v18 = vadd.f32 %v1882_v25, %v1858_v46 }
 0x67e   :  { %v1713_v44 = vadd.f32 %v1712_v28, %v1690_v33 }
 0x680   :  { %v1717_v9 = vadd.f32 %v1713_v44, %v1663_v45 }
 0x682   :  { %v1779_v41 = vadd.f32 %v1775_v13, %v1717_v9 }
 0x683   :  { %v1860_v55 = vpop.f32.mrf.mxu2 }
 0x684   :  { %v1884_v36 = vpop.f32.mrf.mxu3 }
 0x685   :  { %v1692_v61 = vpop.f32.mrf.mxu0  ;;  %v1714_v5 = vpop.f32.mrf.mxu1  ;;  %v1885_v22 = vadd.f32 %v1884_v36, %v1860_v55  ;;  %v2039_v36 = vpack.c.bf16 %v3225_v39, %v3225_v39 }
 0x686   :  { %v1715_v3 = vadd.f32 %v1714_v5, %v1692_v61 }
 0x688   :  { %v1718_v63 = vadd.f32 %v1715_v3, %v1664_v10 }
 0x68a   :  { %v1780_v19 = vadd.f32 %v1777_v49, %v1718_v63 }
 0x68d   :  { %v1804_v31 = vpop.f32.mrf.mxu0  ;;  %v1824_v6 = vpop.f32.mrf.mxu1 }
 0x68e   :  { %v1825_v15 = vadd.f32 %v1824_v6, %v1804_v31 }
 0x690   :  { %v1829_v12 = vadd.f32 %v1825_v15, %v1779_v41 }
 0x692   :  { %v1887_v47 = vadd.f32 %v1883_v18, %v1829_v12 }
 0x695   :  { %v1806_v11 = vpop.f32.mrf.mxu0  ;;  %v1826_v32 = vpop.f32.mrf.mxu1 }
 0x696   :  { %v1827_v34 = vadd.f32 %v1826_v32, %v1806_v11 }
 0x698   :  { %v1830_v29 = vadd.f32 %v1827_v34, %v1780_v19 }
 0x69a   :  { %v1888_v37 = vadd.f32 %v1885_v22, %v1830_v29 }
 0x69d   :  { %v1912_v62 = vpop.f32.mrf.mxu0  ;;  %v1932_v24 = vpop.f32.mrf.mxu1 }
 0x69e   :  { %v1933_v40 = vadd.f32 %v1932_v24, %v1912_v62  ;;  %v2239_v24 = vld [vmem:[%s3355_s18] ss:$0 sm:$0xff] }
 0x6a0   :  { %v1937_v17 = vadd.f32 %v1933_v40, %v1887_v47 }
 0x6a2   :  { %v2173_v20 = vmul.f32 -0.999995, %v1937_v17 }
 0x6a4   :  { %v1943_v21 = vmul.f32 1.442695, %v2173_v20 }
 0x6a5   :  { %v1914_v27 = vpop.f32.mrf.mxu0  ;;  %v1934_v35 = vpop.f32.mrf.mxu1 }
 0x6a6   :  { %2272 = vpow2.f32 %v1943_v21  ;;  %v1935_v48 = vadd.f32 %v1934_v35, %v1914_v27 }
 0x6a8   :  { %v1938_v54 = vadd.f32 %v1935_v48, %v1888_v37 }
 0x6aa   :  { %v2174_v0 = vmul.f32 -0.999995, %v1938_v54 }
 0x6ac   :  { %v2273_v4 = vpop.eup %2272  ;;  %v1945_v33 = vmul.f32 1.442695, %v2174_v0 }
 0x6ad   :  { %v1947_v28 = vadd.f32 1.0, %v2273_v4 }
 0x6ae   :  { %2274 = vpow2.f32 %v1945_v33 }
 0x6af   :  { %2276 = vrcp.f32 %v1947_v28  ;;  %v1960_v8 = vand.u32 2147483648, %v1947_v28  ;;  %vm1954_vm9 = vweird.f32 %v1947_v28  ;;  %v1958_v44 = vand.u32 2147483647, %v1947_v28 }
 0x6b1   :  { %v1961_v60 = vor.u32 1.1754944e-38, %v1960_v8  ;;  %vm1959_vm12 = vcmp.eq.f32.partialorder %v1958_v44, 8.507059e+37 }
 0x6b4   :  { %v2275_v38 = vpop.eup %2274 }
 0x6b5   :  { %v2277_v42 = vpop.eup %2276  ;;  %v1948_v61 = vadd.f32 1.0, %v2275_v38 }
 0x6b6   :  { %v1950_v5 = vmul.f32 %v2277_v42, %v1947_v28  ;;  %vm1955_vm7 = vweird.f32 %v2277_v42 }
 0x6b7   :  { %2278 = vrcp.f32 %v1948_v61  ;;  %vm1956_vm10 = vmor %vm1954_vm9, %vm1955_vm7  ;;  %v1975_v9 = vand.u32 2147483648, %v1948_v61  ;;  %v1973_v13 = vand.u32 2147483647, %v1948_v61  ;;  %vm1969_vm13 = vweird.f32 %v1948_v61 }
 0x6b8   :  { %v1951_v30 = vsub.f32 1.0, %v1950_v5 }
 0x6b9   :  { %v1976_v25 = vor.u32 1.1754944e-38, %v1975_v9  ;;  %vm1974_vm5 = vcmp.eq.f32.partialorder %v1973_v13, 8.507059e+37 }
 0x6ba   :  { %v1952_v31 = vmul.f32 %v2277_v42, %v1951_v30 }
 0x6bc   :  { %v1953_v7 = vadd.f32 %v2277_v42, %v1952_v31 }
 0x6bd   :  { %v2279_v6 = vpop.eup %2278 }
 0x6be   :  { %v1965_v26 = vmul.f32 %v2279_v6, %v1948_v61  ;;  %v1957_v11 = vsel %vm1956_vm10, %v2277_v42, %v1953_v7  ;;  %vm1970_vm11 = vweird.f32 %v2279_v6 }
 0x6bf   :  { %vm1971_vm4 = vmor %vm1969_vm13, %vm1970_vm11  ;;  %v1962_v43 = vsel %vm1959_vm12, %v1961_v60, %v1957_v11 }
 0x6c0   :  { %v1966_v45 = vsub.f32 1.0, %v1965_v26  ;;  %v1985_v46 = vmul.f32 %v1962_v43, %v3011_v16  ;;  %v1979_v12 = vmul.f32 %v1962_v43, %v3005_v14 }
 0x6c2   :  { %v1967_v32 = vmul.f32 %v2279_v6, %v1966_v45 }
 0x6c4   :  { %v1968_v15 = vadd.f32 %v2279_v6, %v1967_v32 }
 0x6c6   :  { %v1972_v3 = vsel %vm1971_vm4, %v2279_v6, %v1968_v15 }
 0x6c7   :  { %v1977_v41 = vsel %vm1974_vm5, %v1976_v25, %v1972_v3 }
 0x6c8   :  { %v1986_v10 = vmul.f32 %v1977_v41, %v3014_v2  ;;  %v1980_v18 = vmul.f32 %v1977_v41, %v3008_v1 }
 0x6ca   :  { %v1990_v63 = vpack.c.bf16 %v1986_v10, %v1985_v46  ;;  %v1983_v62 = vpack.c.bf16 %v1980_v18, %v1979_v12 }
 0x6cc   :  { %2177 = vmatmul.msk.bf16.vlgmr.msra.gmra.mxu2 %vm374_vm2, %v1990_v63  ;;  %2178 = vmatmul.msk.bf16.vlgmr.msra.gmra.mxu3 %vm374_vm2, %v1983_v62 }
 0x74f   :  { %v2004_v49 = vpop.f32.mrf.mxu2  ;;  %v2021_v34 = vpop.f32.mrf.mxu3 }
 0x750   :  { %v2022_v47 = vadd.f32 %v2021_v34, %v2004_v49 }
 0x752   :  { %v2030_v16 = vadd.f32 %v2239_v24, %v2022_v47 }
 0x754   :  { %2036 = vst.msk [vmem:[%s3356_s8] sm:$0xff] %vm2032_vm0, %v2030_v16 }
 0x757   :  { %v2006_v14 = vpop.f32.mrf.mxu2  ;;  %v2023_v1 = vpop.f32.mrf.mxu3 }
 0x758   :  { %v2024_v2 = vadd.f32 %v2023_v1, %v2006_v14 }
 0x75a   :  { %v2031_v40 = vadd.f32 %v2239_v24, %v2024_v2 }
 0x75c   :  { %2037 = vst.msk [vmem:[%s3356_s8 + $0x8] sm:$0xff] %vm2032_vm0, %v2031_v40  ;;  %v2040_v19 = vpack.c.bf16 %v2031_v40, %v2030_v16 }
 0x75e   :  { %v2048_v17 = vsel %vm2032_vm0, %v2040_v19, 0 }
 0x75f   :  { %2057 = vmatpush.bf16.xpose.msrb.mxu0 %v2048_v17 }
 0x766   :  { %2179 = vmatmul.msk.bf16.vlgmr.msrb.gmra.mxu0 %vm2032_vm0, %v2038_v58 }
 0x776   :  { %2180 = vmatmul.msk.bf16.gmra.mxu0 %vm2032_vm0, %v2039_v36 }
 0x7e3   :  { %v2059_v29 = vpop.f32.mrf.mxu0 }
 0x7e4   :  { %2068 = vst.msk [vmem:[%s3357_s0] sm:$0xff] %vm374_vm2, %v2059_v29 }
 0x7eb   :  { %v2061_v20 = vpop.f32.mrf.mxu0 }
 0x7ec   :  { %2069 = vst.msk [vmem:[%s3357_s0 + $0x8] sm:$0xff] %vm374_vm2, %v2061_v20 }
 0x7f3   :  { %v2064_v50 = vpop.f32.mrf.mxu0 }
 0x7f4   :  { %2070 = vst.msk [vmem:[%s3357_s0 + $0x10] sm:$0xff] %vm374_vm2, %v2064_v50 }
 0x7fb   :  { %v2066_v23 = vpop.f32.mrf.mxu0 }
 0x7fc   :  { %2083 = vsyncpa [#allocation5], 1 }
 0x7fd   :  { %2084 = vsyncpa [#allocation8], 1 }
 0x7fe   :  { %2085 = vsyncpa [#allocation11], 1 }
 0x7ff   :  { %2086 = vsyncpa [#allocation6], 1 }
 0x800   :  { %2087 = vsyncpa [#allocation14], 1 }
 0x801   :  { %2088 = vsyncpa [#allocation17], 1 }
 0x802   :  { %2089 = vsyncpa [#allocation20], 1 }

</bundles_post_ra>
